<compile_context>
chip_gen: v6e
topology: v6e:2x2x1
jax: 0.10.0
libtpu: 0.0.40
codegen_flags: <defaults>
</compile_context>

<pallas_src>
import numpy as np
import jax
import jax.numpy as jnp
from jax.experimental import pallas as pl
from jax.experimental.pallas import tpu as pltpu

F32 = jnp.float32
PAD = 128   # lane-padded feature width


# ----------------------------------------------------------------------------- kernel
def _fused_forward_kernel(
        eps_ref,          # SMEM (L,)             per-layer (1 + eps)
        src_ref,          # VMEM [E, 1]  int32    edge source node ids (-1 = dummy)
        dst_ref,          # VMEM [1, E]  int32    edge destination node ids (-1 = dummy)
        xcat_ref,         # VMEM [N, PAD]         fused encoder input [x | extra]
        wenc_ref,         # VMEM [PAD, PAD]       block-diagonal encoder weights
        benc_ref,         # VMEM [1, PAD]
        ea_ref,           # VMEM [E, PAD]         edge attributes
        p0_ref,           # VMEM [G0, N]          masked add-pool one-hot (mask folded)
        p1_ref,           # VMEM [G1, G0]         inter-graph mean-pool matrix
        wconv_ref,        # VMEM [L*4, PAD, PAD]  per-layer (w1, w2, w3, w4)
        bconv_ref,        # VMEM [L, 8, PAD]      per-layer (b1,b2,b3,b4,bn_s,bn_b,0,0)
        whead_ref,        # VMEM [4, PAD, PAD]    head fc1..fc4 weights
        bhead_ref,        # VMEM [8, PAD]         head fc1..fc4 biases (rows 0..3)
        out_ref):         # VMEM [G1, PAD]
    f32 = jnp.float32
    e_pad = ea_ref.shape[0]
    n_pad = xcat_ref.shape[0]
    n_layers = bconv_ref.shape[0]

    # Lane-dense 0/1 gather / (pre-transposed) scatter matrices built in-kernel from
    # int32 indices: no [E, N] one-hots in HBM, no bf16->f32 upcast temporaries.
    col = jax.lax.broadcasted_iota(jnp.int32, (e_pad, n_pad), 1)
    gsrc = (col == src_ref[...]).astype(f32)                   # [E, N]   x_j = gsrc @ h
    row = jax.lax.broadcasted_iota(jnp.int32, (n_pad, e_pad), 0)
    gdst_t = (row == dst_ref[...]).astype(f32)                 # [N, E]   aggr = gdst_t @ m

    # fused encoders: h = relu([x | extra] @ blockdiag(Wx, We) + [bx | be])
    h = jnp.maximum(
        jnp.dot(xcat_ref[...], wenc_ref[...], preferred_element_type=f32) + benc_ref[...],
        0.0)

    ea = ea_ref[...]
    for l in range(n_layers):                                  # static unroll (L small)
        b = bconv_ref[l]                                       # [8, PAD]
        # bond encoder: Linear -> ReLU -> Linear
        e = jnp.maximum(
            jnp.dot(ea, wconv_ref[4 * l + 0], preferred_element_type=f32) + b[0:1], 0.0)
        e = jnp.dot(e, wconv_ref[4 * l + 1], preferred_element_type=f32) + b[1:2]
        # gather x_j = h[src]
        x_j = jnp.dot(gsrc, h, preferred_element_type=f32)     # [E, PAD]
        # message + scatter-add at dst (plain matmul; scatter matrix pre-transposed)
        m = jnp.maximum(x_j + e, 0.0)
        aggr = jnp.dot(gdst_t, m, preferred_element_type=f32)  # [N, PAD]
        out = eps_ref[l] * h + aggr                            # eps_ref holds (1 + eps)
        # node MLP: Linear -> ReLU -> Linear
        z = jnp.maximum(
            jnp.dot(out, wconv_ref[4 * l + 2], preferred_element_type=f32) + b[2:3], 0.0)
        z = jnp.dot(z, wconv_ref[4 * l + 3], preferred_element_type=f32) + b[3:4]
        # BatchNorm (eval, folded) + ReLU   (dropout = identity in eval)
        h = jnp.maximum(z * b[4:5] + b[5:6], 0.0)

    # head: masked add-pool (mask folded into p0), 3x Linear+ReLU, mean-pool, Linear
    bh = bhead_ref[...]
    g = jnp.dot(p0_ref[...], h, preferred_element_type=f32)                 # [G0, PAD]
    g = jnp.maximum(jnp.dot(g, whead_ref[0], preferred_element_type=f32) + bh[0:1], 0.0)
    g = jnp.maximum(jnp.dot(g, whead_ref[1], preferred_element_type=f32) + bh[1:2], 0.0)
    g = jnp.maximum(jnp.dot(g, whead_ref[2], preferred_element_type=f32) + bh[2:3], 0.0)
    g = jnp.dot(p1_ref[...], g, preferred_element_type=f32)                 # [G1, PAD]
    out_ref[...] = jnp.dot(g, whead_ref[3], preferred_element_type=f32) + bh[3:4]


# ----------------------------------------------------------------------------- wrapper
def _pad2(a, rows, cols):
    a = jnp.asarray(a, F32)
    out = jnp.zeros((rows, cols), F32)
    return out.at[:a.shape[0], :a.shape[1]].set(a)


def _round_up(x, m):
    return ((x + m - 1) // m) * m


def netgine_ordered_forward(data, params):
    x, extra = data["x"], data["extra_feature"]
    src, dst = data["edge_index"][0], data["edge_index"][1]
    edge_attr = data["edge_attr"]
    n = x.shape[0]
    e_cnt = edge_attr.shape[0]

    convs = params["convs"]
    head = params["head"]
    g0 = int(params["num_graphs0"])
    g1 = int(params["num_graphs1"])
    num_class = head["w4"].shape[1]
    n_layers = len(convs)

    d_in_x, dim = params["enc_x_w"].shape
    d_in_e, extra_dim = params["enc_e_w"].shape
    assert d_in_x + d_in_e <= PAD and dim + extra_dim <= PAD

    # lane-dense padding of the node / edge axes (dummy edges use index -1)
    n_pad = _round_up(max(n, 1), PAD)
    e_pad = _round_up(max(e_cnt, 1), PAD)

    # ---- glue built in plain JAX (tiny, one-time per call) ----
    # fused encoder input [x | extra] and block-diagonal encoder weight/bias
    xcat = jnp.zeros((n_pad, PAD), F32)
    xcat = xcat.at[:n, :d_in_x].set(x).at[:n, d_in_x:d_in_x + d_in_e].set(extra)
    wenc = jnp.zeros((PAD, PAD), F32)
    wenc = wenc.at[:d_in_x, :dim].set(params["enc_x_w"])
    wenc = wenc.at[d_in_x:d_in_x + d_in_e, dim:dim + extra_dim].set(params["enc_e_w"])
    benc = jnp.zeros((1, PAD), F32)
    benc = benc.at[:, :dim].set(params["enc_x_b"])
    benc = benc.at[:, dim:dim + extra_dim].set(params["enc_e_b"])

    ea = _pad2(edge_attr, e_pad, PAD)

    # int32 edge indices (one-hots are built in-kernel); -1 pad never matches any node
    src_col = jnp.full((e_pad, 1), -1, jnp.int32).at[:e_cnt, 0].set(src.astype(jnp.int32))
    dst_row = jnp.full((1, e_pad), -1, jnp.int32).at[0, :e_cnt].set(dst.astype(jnp.int32))

    # pooling matrices; node mask folded into the add-pool matrix; padded nodes -> 0
    mask = data["selected_node_masks"].astype(F32)
    p0 = jnp.zeros((g0, n_pad), F32)
    p0 = p0.at[:, :n].set(
        jax.nn.one_hot(data["original_node_mask"], g0, dtype=F32).T * mask[None, :])
    p1 = jax.nn.one_hot(data["inter_graph_idx"], g1, dtype=F32).T                 # [G1,G0]
    counts = jnp.maximum(p1.sum(axis=1, keepdims=True), 1.0)
    p1mean = p1 / counts

    # per-layer params, zero-padded to 128 lanes and packed
    eps1p = jnp.stack([1.0 + p["eps"][0, 0] for p in convs]).astype(F32)          # [L]
    wconv = jnp.stack([_pad2(p[k], PAD, PAD)
                       for p in convs for k in ("w1", "w2", "w3", "w4")])         # [L*4,128,128]

    def _bias_block(p):
        rows = (p["b1"], p["b2"], p["b3"], p["b4"], p["bn_scale"], p["bn_shift"])
        blk = jnp.zeros((8, PAD), F32)
        for i, r in enumerate(rows):
            r = jnp.asarray(r, F32)
            blk = blk.at[i:i + 1, :r.shape[1]].set(r)
        return blk

    bconv = jnp.stack([_bias_block(p) for p in convs])                            # [L,8,128]

    whead = jnp.stack([_pad2(head[k], PAD, PAD) for k in ("w1", "w2", "w3", "w4")])
    bhead = jnp.zeros((8, PAD), F32)
    for i, k in enumerate(("b1", "b2", "b3", "b4")):
        r = jnp.asarray(head[k], F32)
        bhead = bhead.at[i:i + 1, :r.shape[1]].set(r)

    # ---- cost estimate (advisory) ----
    flops = 2 * n_pad * PAD * PAD
    flops += n_layers * (2 * 2 * e_pad * PAD * PAD        # bond encoder
                         + 2 * e_pad * n_pad * PAD        # gather
                         + 2 * n_pad * e_pad * PAD        # scatter
                         + 2 * 2 * n_pad * PAD * PAD)     # node MLP
    flops += (2 * g0 * n_pad * PAD + 3 * 2 * g0 * PAD * PAD
              + 2 * g1 * g0 * PAD + 2 * g1 * PAD * PAD)
    args = (eps1p, src_col, dst_row, xcat, wenc, benc, ea, p0, p1mean,
            wconv, bconv, whead, bhead)
    bytes_accessed = sum(int(np.prod(a.shape)) * a.dtype.itemsize for a in args)
    bytes_accessed += g1 * PAD * 4
    cost = pl.CostEstimate(flops=int(flops), transcendentals=0,
                           bytes_accessed=int(bytes_accessed))

    vmem = pl.BlockSpec(memory_space=pltpu.MemorySpace.VMEM)
    smem = pl.BlockSpec(memory_space=pltpu.MemorySpace.SMEM)
    in_specs = [smem] + [vmem] * 12

    out_pad = pl.pallas_call(
        _fused_forward_kernel,
        out_shape=jax.ShapeDtypeStruct((g1, PAD), F32),
        in_specs=in_specs,
        out_specs=vmem,
        compiler_params=pltpu.CompilerParams(vmem_limit_bytes=64 * 1024 * 1024),
        cost_estimate=cost,
    )(*args)

    return out_pad[:, :num_class]


# ----------------------------------------------------------------------------- param init
def linear_init(key, fan_in, fan_out):
    k1, k2 = jax.random.split(key)
    bound = 1.0 / np.sqrt(fan_in)
    w = jax.random.uniform(k1, (fan_in, fan_out), F32, -bound, bound)
    b = jax.random.uniform(k2, (1, fan_out), F32, -bound, bound)
    return w, b


def gine_layer_init(key, edge_features, d_in, d_out):
    ks = jax.random.split(key, 8)
    w1, b1 = linear_init(ks[0], edge_features, d_in)   # bond_encoder Linear 1
    w2, b2 = linear_init(ks[1], d_in, d_in)            # bond_encoder Linear 2
    w3, b3 = linear_init(ks[2], d_in, d_in)            # mlp Linear 1
    w4, b4 = linear_init(ks[3], d_in, d_out)           # mlp Linear 2
    eps = jnp.zeros((1, 1), F32)                       # nn.Parameter([0])
    # BatchNorm1d(d_out) folded (eval mode)
    gamma = 1.0 + 0.1 * jax.random.normal(ks[4], (1, d_out), F32)
    beta = 0.1 * jax.random.normal(ks[5], (1, d_out), F32)
    r_mean = 0.1 * jax.random.normal(ks[6], (1, d_out), F32)
    r_var = jnp.abs(1.0 + 0.1 * jax.random.normal(ks[7], (1, d_out), F32))
    inv_std = 1.0 / jnp.sqrt(r_var + 1e-5)
    return {"w1": w1, "b1": b1, "w2": w2, "b2": b2, "eps": eps,
            "w3": w3, "b3": b3, "w4": w4, "b4": b4,
            "bn_scale": gamma * inv_std, "bn_shift": beta - r_mean * gamma * inv_std}


# ----------------------------------------------------------------------------- pure-JAX reference
def reference_forward(data, params):
    x, extra = data["x"], data["extra_feature"]
    src, dst = data["edge_index"][0], data["edge_index"][1]
    ea = data["edge_attr"]
    n = x.shape[0]
    relu = jax.nn.relu
    hx = relu(x @ params["enc_x_w"] + params["enc_x_b"])
    he = relu(extra @ params["enc_e_w"] + params["enc_e_b"])
    h = jnp.concatenate([hx, he], axis=-1)
    for p in params["convs"]:
        e = relu(ea @ p["w1"] + p["b1"]) @ p["w2"] + p["b2"]
        m = relu(h[src] + e)
        aggr = jax.ops.segment_sum(m, dst, num_segments=n)
        out = (1.0 + p["eps"][0, 0]) * h + aggr
        z = relu(out @ p["w3"] + p["b3"]) @ p["w4"] + p["b4"]
        h = relu(z * p["bn_scale"] + p["bn_shift"])
    h = h * data["selected_node_masks"][:, None]
    g0 = jax.ops.segment_sum(h, data["original_node_mask"], num_segments=params["num_graphs0"])
    hp = params["head"]
    g = relu(g0 @ hp["w1"] + hp["b1"])
    g = relu(g @ hp["w2"] + hp["b2"])
    g = relu(g @ hp["w3"] + hp["b3"])
    s = jax.ops.segment_sum(g, data["inter_graph_idx"], num_segments=params["num_graphs1"])
    cnt = jax.ops.segment_sum(jnp.ones_like(data["inter_graph_idx"], dtype=F32),
                              data["inter_graph_idx"], num_segments=params["num_graphs1"])
    g = s / jnp.maximum(cnt, 1.0)[:, None]
    return g @ hp["w4"] + hp["b4"]


# ----------------------------------------------------------------------------- main
if __name__ == "__main__":
    # module hyper-parameters (small synthetic sizes)
    N, E = 64, 128
    input_dims, edge_features = 16, 8
    dim, extra_in_dim, extra_encode_dim = 32, 4, 16
    num_convlayers, num_class = 3, 1
    G0, G1 = 8, 4            # graphs after add-pool, then after inter-graph mean-pool

    key = jax.random.PRNGKey(0)
    ks = jax.random.split(key, 20)

    # ---- data
    data = {
        "x": jax.random.normal(ks[0], (N, input_dims), F32),
        "edge_index": jax.random.randint(ks[1], (2, E), 0, N),
        "edge_attr": jax.random.normal(ks[2], (E, edge_features), F32),
        "extra_feature": jax.random.normal(ks[3], (N, extra_in_dim), F32),
        "selected_node_masks": (jax.random.uniform(ks[4], (N,)) > 0.3).astype(F32),
        "original_node_mask": jnp.sort(jax.random.randint(ks[5], (N,), 0, G0)),
        "inter_graph_idx": jnp.sort(jax.random.randint(ks[6], (G0,), 0, G1)),
    }

    # ---- parameters (deterministic init, PyTorch nn.Linear-style uniform)
    enc_x_w, enc_x_b = linear_init(ks[7], input_dims, dim)
    enc_e_w, enc_e_b = linear_init(ks[8], extra_in_dim, extra_encode_dim)
    convs = [gine_layer_init(ks[9], edge_features, dim + extra_encode_dim, dim)]
    for i in range(1, num_convlayers):
        convs.append(gine_layer_init(ks[9 + i], edge_features, dim, dim))
    hk = jax.random.split(ks[15], 4)
    fc1w, fc1b = linear_init(hk[0], dim, dim)     # jk is None -> fc1: dim -> dim
    fc2w, fc2b = linear_init(hk[1], dim, dim)
    fc3w, fc3b = linear_init(hk[2], dim, dim)
    fc4w, fc4b = linear_init(hk[3], dim, num_class)

    params = {
        "enc_x_w": enc_x_w, "enc_x_b": enc_x_b,
        "enc_e_w": enc_e_w, "enc_e_b": enc_e_b,
        "convs": convs,
        "head": {"w1": fc1w, "b1": fc1b, "w2": fc2w, "b2": fc2b,
                 "w3": fc3w, "b3": fc3b, "w4": fc4w, "b4": fc4b},
        "num_graphs0": G0, "num_graphs1": G1,
    }

    out = netgine_ordered_forward(data, params)
    out = jax.block_until_ready(out)

    ref = jax.block_until_ready(reference_forward(data, params))
    assert out.shape == (G1, num_class), out.shape
    np.testing.assert_allclose(np.asarray(out), np.asarray(ref), rtol=1e-4, atol=1e-4)

    print("KERNEL_OK")
</pallas_src>

<mosaic_0001>
module attributes {stable_mosaic.version = 11 : i64} {
  func.func @_fused_forward_kernel(%arg0: memref<3xf32, #tpu.memory_space<smem>>, %arg1: memref<128x1xi32, #tpu.memory_space<vmem>>, %arg2: memref<1x128xi32, #tpu.memory_space<vmem>>, %arg3: memref<128x128xf32, #tpu.memory_space<vmem>>, %arg4: memref<128x128xf32, #tpu.memory_space<vmem>>, %arg5: memref<1x128xf32, #tpu.memory_space<vmem>>, %arg6: memref<128x128xf32, #tpu.memory_space<vmem>>, %arg7: memref<8x128xf32, #tpu.memory_space<vmem>>, %arg8: memref<4x8xf32, #tpu.memory_space<vmem>>, %arg9: memref<12x128x128xf32, #tpu.memory_space<vmem>>, %arg10: memref<3x8x128xf32, #tpu.memory_space<vmem>>, %arg11: memref<4x128x128xf32, #tpu.memory_space<vmem>>, %arg12: memref<8x128xf32, #tpu.memory_space<vmem>>, %arg13: memref<4x128xf32, #tpu.memory_space<vmem>>) attributes {dimension_semantics = [], scalar_prefetch = 0 : i64, scratch_operands = 0 : i64, tpu.core_type = #tpu.core_type<tc>} {
    %0 = tpu.iota {dimensions = array<i32: 1>} : vector<128x128xi32>
    %c0 = arith.constant 0 : index
    %c0_0 = arith.constant 0 : index
    %1 = vector.load %arg1[%c0, %c0_0] : memref<128x1xi32, #tpu.memory_space<vmem>>, vector<128x1xi32>
    %2 = vector.broadcast %1 : vector<128x1xi32> to vector<128x128xi32>
    %3 = arith.cmpi eq, %0, %2 : vector<128x128xi32>
    %4 = arith.extui %3 : vector<128x128xi1> to vector<128x128xi32>
    %5 = arith.sitofp %4 : vector<128x128xi32> to vector<128x128xf32>
    %6 = tpu.iota {dimensions = array<i32: 0>} : vector<128x128xi32>
    %c0_1 = arith.constant 0 : index
    %c0_2 = arith.constant 0 : index
    %7 = vector.load %arg2[%c0_1, %c0_2] : memref<1x128xi32, #tpu.memory_space<vmem>>, vector<1x128xi32>
    %8 = vector.broadcast %7 : vector<1x128xi32> to vector<128x128xi32>
    %9 = arith.cmpi eq, %6, %8 : vector<128x128xi32>
    %10 = arith.extui %9 : vector<128x128xi1> to vector<128x128xi32>
    %11 = arith.sitofp %10 : vector<128x128xi32> to vector<128x128xf32>
    %c0_3 = arith.constant 0 : index
    %c0_4 = arith.constant 0 : index
    %12 = vector.load %arg3[%c0_3, %c0_4] : memref<128x128xf32, #tpu.memory_space<vmem>>, vector<128x128xf32>
    %c0_5 = arith.constant 0 : index
    %c0_6 = arith.constant 0 : index
    %13 = vector.load %arg4[%c0_5, %c0_6] : memref<128x128xf32, #tpu.memory_space<vmem>>, vector<128x128xf32>
    %cst = arith.constant dense<0.000000e+00> : vector<128x128xf32>
    %14 = tpu.matmul %12, %13, %cst {dimension_numbers = #tpu.dot_dimension_numbers<[1], [0], [0], [1], [0, 0, 1, 1], [], []>} : vector<128x128xf32>, vector<128x128xf32>, vector<128x128xf32> -> vector<128x128xf32>
    %c0_7 = arith.constant 0 : index
    %c0_8 = arith.constant 0 : index
    %15 = vector.load %arg5[%c0_7, %c0_8] : memref<1x128xf32, #tpu.memory_space<vmem>>, vector<1x128xf32>
    %16 = vector.broadcast %15 : vector<1x128xf32> to vector<128x128xf32>
    %17 = arith.addf %14, %16 : vector<128x128xf32>
    %cst_9 = arith.constant 0.000000e+00 : f32
    %18 = vector.broadcast %cst_9 : f32 to vector<128x128xf32>
    %19 = arith.maximumf %17, %18 : vector<128x128xf32>
    %c0_10 = arith.constant 0 : index
    %c0_11 = arith.constant 0 : index
    %20 = vector.load %arg6[%c0_10, %c0_11] : memref<128x128xf32, #tpu.memory_space<vmem>>, vector<128x128xf32>
    %c0_12 = arith.constant 0 : index
    %c0_13 = arith.constant 0 : index
    %c0_14 = arith.constant 0 : index
    %21 = vector.load %arg10[%c0_12, %c0_13, %c0_14] : memref<3x8x128xf32, #tpu.memory_space<vmem>>, vector<1x8x128xf32>
    %22 = vector.shape_cast %21 : vector<1x8x128xf32> to vector<8x128xf32>
    %c0_15 = arith.constant 0 : index
    %c0_16 = arith.constant 0 : index
    %c0_17 = arith.constant 0 : index
    %23 = vector.load %arg9[%c0_15, %c0_16, %c0_17] : memref<12x128x128xf32, #tpu.memory_space<vmem>>, vector<1x128x128xf32>
    %24 = vector.shape_cast %23 : vector<1x128x128xf32> to vector<128x128xf32>
    %cst_18 = arith.constant dense<0.000000e+00> : vector<128x128xf32>
    %25 = tpu.matmul %20, %24, %cst_18 {dimension_numbers = #tpu.dot_dimension_numbers<[1], [0], [0], [1], [0, 0, 1, 1], [], []>} : vector<128x128xf32>, vector<128x128xf32>, vector<128x128xf32> -> vector<128x128xf32>
    %26 = vector.extract_strided_slice %22 {offsets = [0, 0], sizes = [1, 128], strides = [1, 1]} : vector<8x128xf32> to vector<1x128xf32>
    %27 = vector.broadcast %26 : vector<1x128xf32> to vector<128x128xf32>
    %28 = arith.addf %25, %27 : vector<128x128xf32>
    %cst_19 = arith.constant 0.000000e+00 : f32
    %29 = vector.broadcast %cst_19 : f32 to vector<128x128xf32>
    %30 = arith.maximumf %28, %29 : vector<128x128xf32>
    %c1 = arith.constant 1 : index
    %c0_20 = arith.constant 0 : index
    %c0_21 = arith.constant 0 : index
    %31 = vector.load %arg9[%c1, %c0_20, %c0_21] : memref<12x128x128xf32, #tpu.memory_space<vmem>>, vector<1x128x128xf32>
    %32 = vector.shape_cast %31 : vector<1x128x128xf32> to vector<128x128xf32>
    %cst_22 = arith.constant dense<0.000000e+00> : vector<128x128xf32>
    %33 = tpu.matmul %30, %32, %cst_22 {dimension_numbers = #tpu.dot_dimension_numbers<[1], [0], [0], [1], [0, 0, 1, 1], [], []>} : vector<128x128xf32>, vector<128x128xf32>, vector<128x128xf32> -> vector<128x128xf32>
    %34 = vector.extract_strided_slice %22 {offsets = [1, 0], sizes = [1, 128], strides = [1, 1]} : vector<8x128xf32> to vector<1x128xf32>
    %35 = vector.broadcast %34 : vector<1x128xf32> to vector<128x128xf32>
    %36 = arith.addf %33, %35 : vector<128x128xf32>
    %cst_23 = arith.constant dense<0.000000e+00> : vector<128x128xf32>
    %37 = tpu.matmul %5, %19, %cst_23 {dimension_numbers = #tpu.dot_dimension_numbers<[1], [0], [0], [1], [0, 0, 1, 1], [], []>} : vector<128x128xf32>, vector<128x128xf32>, vector<128x128xf32> -> vector<128x128xf32>
    %38 = arith.addf %37, %36 : vector<128x128xf32>
    %cst_24 = arith.constant 0.000000e+00 : f32
    %39 = vector.broadcast %cst_24 : f32 to vector<128x128xf32>
    %40 = arith.maximumf %38, %39 : vector<128x128xf32>
    %cst_25 = arith.constant dense<0.000000e+00> : vector<128x128xf32>
    %41 = tpu.matmul %11, %40, %cst_25 {dimension_numbers = #tpu.dot_dimension_numbers<[1], [0], [0], [1], [0, 0, 1, 1], [], []>} : vector<128x128xf32>, vector<128x128xf32>, vector<128x128xf32> -> vector<128x128xf32>
    %c0_26 = arith.constant 0 : index
    %42 = memref.load %arg0[%c0_26] : memref<3xf32, #tpu.memory_space<smem>>
    %43 = vector.broadcast %42 : f32 to vector<128x128xf32>
    %44 = arith.mulf %43, %19 : vector<128x128xf32>
    %45 = arith.addf %44, %41 : vector<128x128xf32>
    %c2 = arith.constant 2 : index
    %c0_27 = arith.constant 0 : index
    %c0_28 = arith.constant 0 : index
    %46 = vector.load %arg9[%c2, %c0_27, %c0_28] : memref<12x128x128xf32, #tpu.memory_space<vmem>>, vector<1x128x128xf32>
    %47 = vector.shape_cast %46 : vector<1x128x128xf32> to vector<128x128xf32>
    %cst_29 = arith.constant dense<0.000000e+00> : vector<128x128xf32>
    %48 = tpu.matmul %45, %47, %cst_29 {dimension_numbers = #tpu.dot_dimension_numbers<[1], [0], [0], [1], [0, 0, 1, 1], [], []>} : vector<128x128xf32>, vector<128x128xf32>, vector<128x128xf32> -> vector<128x128xf32>
    %49 = vector.extract_strided_slice %22 {offsets = [2, 0], sizes = [1, 128], strides = [1, 1]} : vector<8x128xf32> to vector<1x128xf32>
    %50 = vector.broadcast %49 : vector<1x128xf32> to vector<128x128xf32>
    %51 = arith.addf %48, %50 : vector<128x128xf32>
    %cst_30 = arith.constant 0.000000e+00 : f32
    %52 = vector.broadcast %cst_30 : f32 to vector<128x128xf32>
    %53 = arith.maximumf %51, %52 : vector<128x128xf32>
    %c3 = arith.constant 3 : index
    %c0_31 = arith.constant 0 : index
    %c0_32 = arith.constant 0 : index
    %54 = vector.load %arg9[%c3, %c0_31, %c0_32] : memref<12x128x128xf32, #tpu.memory_space<vmem>>, vector<1x128x128xf32>
    %55 = vector.shape_cast %54 : vector<1x128x128xf32> to vector<128x128xf32>
    %cst_33 = arith.constant dense<0.000000e+00> : vector<128x128xf32>
    %56 = tpu.matmul %53, %55, %cst_33 {dimension_numbers = #tpu.dot_dimension_numbers<[1], [0], [0], [1], [0, 0, 1, 1], [], []>} : vector<128x128xf32>, vector<128x128xf32>, vector<128x128xf32> -> vector<128x128xf32>
    %57 = vector.extract_strided_slice %22 {offsets = [3, 0], sizes = [1, 128], strides = [1, 1]} : vector<8x128xf32> to vector<1x128xf32>
    %58 = vector.broadcast %57 : vector<1x128xf32> to vector<128x128xf32>
    %59 = arith.addf %56, %58 : vector<128x128xf32>
    %60 = vector.extract_strided_slice %22 {offsets = [4, 0], sizes = [1, 128], strides = [1, 1]} : vector<8x128xf32> to vector<1x128xf32>
    %61 = vector.broadcast %60 : vector<1x128xf32> to vector<128x128xf32>
    %62 = arith.mulf %59, %61 : vector<128x128xf32>
    %63 = vector.extract_strided_slice %22 {offsets = [5, 0], sizes = [1, 128], strides = [1, 1]} : vector<8x128xf32> to vector<1x128xf32>
    %64 = vector.broadcast %63 : vector<1x128xf32> to vector<128x128xf32>
    %65 = arith.addf %62, %64 : vector<128x128xf32>
    %cst_34 = arith.constant 0.000000e+00 : f32
    %66 = vector.broadcast %cst_34 : f32 to vector<128x128xf32>
    %67 = arith.maximumf %65, %66 : vector<128x128xf32>
    %c1_35 = arith.constant 1 : index
    %c0_36 = arith.constant 0 : index
    %c0_37 = arith.constant 0 : index
    %68 = vector.load %arg10[%c1_35, %c0_36, %c0_37] : memref<3x8x128xf32, #tpu.memory_space<vmem>>, vector<1x8x128xf32>
    %69 = vector.shape_cast %68 : vector<1x8x128xf32> to vector<8x128xf32>
    %c4 = arith.constant 4 : index
    %c0_38 = arith.constant 0 : index
    %c0_39 = arith.constant 0 : index
    %70 = vector.load %arg9[%c4, %c0_38, %c0_39] : memref<12x128x128xf32, #tpu.memory_space<vmem>>, vector<1x128x128xf32>
    %71 = vector.shape_cast %70 : vector<1x128x128xf32> to vector<128x128xf32>
    %cst_40 = arith.constant dense<0.000000e+00> : vector<128x128xf32>
    %72 = tpu.matmul %20, %71, %cst_40 {dimension_numbers = #tpu.dot_dimension_numbers<[1], [0], [0], [1], [0, 0, 1, 1], [], []>} : vector<128x128xf32>, vector<128x128xf32>, vector<128x128xf32> -> vector<128x128xf32>
    %73 = vector.extract_strided_slice %69 {offsets = [0, 0], sizes = [1, 128], strides = [1, 1]} : vector<8x128xf32> to vector<1x128xf32>
    %74 = vector.broadcast %73 : vector<1x128xf32> to vector<128x128xf32>
    %75 = arith.addf %72, %74 : vector<128x128xf32>
    %cst_41 = arith.constant 0.000000e+00 : f32
    %76 = vector.broadcast %cst_41 : f32 to vector<128x128xf32>
    %77 = arith.maximumf %75, %76 : vector<128x128xf32>
    %c5 = arith.constant 5 : index
    %c0_42 = arith.constant 0 : index
    %c0_43 = arith.constant 0 : index
    %78 = vector.load %arg9[%c5, %c0_42, %c0_43] : memref<12x128x128xf32, #tpu.memory_space<vmem>>, vector<1x128x128xf32>
    %79 = vector.shape_cast %78 : vector<1x128x128xf32> to vector<128x128xf32>
    %cst_44 = arith.constant dense<0.000000e+00> : vector<128x128xf32>
    %80 = tpu.matmul %77, %79, %cst_44 {dimension_numbers = #tpu.dot_dimension_numbers<[1], [0], [0], [1], [0, 0, 1, 1], [], []>} : vector<128x128xf32>, vector<128x128xf32>, vector<128x128xf32> -> vector<128x128xf32>
    %81 = vector.extract_strided_slice %69 {offsets = [1, 0], sizes = [1, 128], strides = [1, 1]} : vector<8x128xf32> to vector<1x128xf32>
    %82 = vector.broadcast %81 : vector<1x128xf32> to vector<128x128xf32>
    %83 = arith.addf %80, %82 : vector<128x128xf32>
    %cst_45 = arith.constant dense<0.000000e+00> : vector<128x128xf32>
    %84 = tpu.matmul %5, %67, %cst_45 {dimension_numbers = #tpu.dot_dimension_numbers<[1], [0], [0], [1], [0, 0, 1, 1], [], []>} : vector<128x128xf32>, vector<128x128xf32>, vector<128x128xf32> -> vector<128x128xf32>
    %85 = arith.addf %84, %83 : vector<128x128xf32>
    %cst_46 = arith.constant 0.000000e+00 : f32
    %86 = vector.broadcast %cst_46 : f32 to vector<128x128xf32>
    %87 = arith.maximumf %85, %86 : vector<128x128xf32>
    %cst_47 = arith.constant dense<0.000000e+00> : vector<128x128xf32>
    %88 = tpu.matmul %11, %87, %cst_47 {dimension_numbers = #tpu.dot_dimension_numbers<[1], [0], [0], [1], [0, 0, 1, 1], [], []>} : vector<128x128xf32>, vector<128x128xf32>, vector<128x128xf32> -> vector<128x128xf32>
    %c1_48 = arith.constant 1 : index
    %89 = memref.load %arg0[%c1_48] : memref<3xf32, #tpu.memory_space<smem>>
    %90 = vector.broadcast %89 : f32 to vector<128x128xf32>
    %91 = arith.mulf %90, %67 : vector<128x128xf32>
    %92 = arith.addf %91, %88 : vector<128x128xf32>
    %c6 = arith.constant 6 : index
    %c0_49 = arith.constant 0 : index
    %c0_50 = arith.constant 0 : index
    %93 = vector.load %arg9[%c6, %c0_49, %c0_50] : memref<12x128x128xf32, #tpu.memory_space<vmem>>, vector<1x128x128xf32>
    %94 = vector.shape_cast %93 : vector<1x128x128xf32> to vector<128x128xf32>
    %cst_51 = arith.constant dense<0.000000e+00> : vector<128x128xf32>
    %95 = tpu.matmul %92, %94, %cst_51 {dimension_numbers = #tpu.dot_dimension_numbers<[1], [0], [0], [1], [0, 0, 1, 1], [], []>} : vector<128x128xf32>, vector<128x128xf32>, vector<128x128xf32> -> vector<128x128xf32>
    %96 = vector.extract_strided_slice %69 {offsets = [2, 0], sizes = [1, 128], strides = [1, 1]} : vector<8x128xf32> to vector<1x128xf32>
    %97 = vector.broadcast %96 : vector<1x128xf32> to vector<128x128xf32>
    %98 = arith.addf %95, %97 : vector<128x128xf32>
    %cst_52 = arith.constant 0.000000e+00 : f32
    %99 = vector.broadcast %cst_52 : f32 to vector<128x128xf32>
    %100 = arith.maximumf %98, %99 : vector<128x128xf32>
    %c7 = arith.constant 7 : index
    %c0_53 = arith.constant 0 : index
    %c0_54 = arith.constant 0 : index
    %101 = vector.load %arg9[%c7, %c0_53, %c0_54] : memref<12x128x128xf32, #tpu.memory_space<vmem>>, vector<1x128x128xf32>
    %102 = vector.shape_cast %101 : vector<1x128x128xf32> to vector<128x128xf32>
    %cst_55 = arith.constant dense<0.000000e+00> : vector<128x128xf32>
    %103 = tpu.matmul %100, %102, %cst_55 {dimension_numbers = #tpu.dot_dimension_numbers<[1], [0], [0], [1], [0, 0, 1, 1], [], []>} : vector<128x128xf32>, vector<128x128xf32>, vector<128x128xf32> -> vector<128x128xf32>
    %104 = vector.extract_strided_slice %69 {offsets = [3, 0], sizes = [1, 128], strides = [1, 1]} : vector<8x128xf32> to vector<1x128xf32>
    %105 = vector.broadcast %104 : vector<1x128xf32> to vector<128x128xf32>
    %106 = arith.addf %103, %105 : vector<128x128xf32>
    %107 = vector.extract_strided_slice %69 {offsets = [4, 0], sizes = [1, 128], strides = [1, 1]} : vector<8x128xf32> to vector<1x128xf32>
    %108 = vector.broadcast %107 : vector<1x128xf32> to vector<128x128xf32>
    %109 = arith.mulf %106, %108 : vector<128x128xf32>
    %110 = vector.extract_strided_slice %69 {offsets = [5, 0], sizes = [1, 128], strides = [1, 1]} : vector<8x128xf32> to vector<1x128xf32>
    %111 = vector.broadcast %110 : vector<1x128xf32> to vector<128x128xf32>
    %112 = arith.addf %109, %111 : vector<128x128xf32>
    %cst_56 = arith.constant 0.000000e+00 : f32
    %113 = vector.broadcast %cst_56 : f32 to vector<128x128xf32>
    %114 = arith.maximumf %112, %113 : vector<128x128xf32>
    %c2_57 = arith.constant 2 : index
    %c0_58 = arith.constant 0 : index
    %c0_59 = arith.constant 0 : index
    %115 = vector.load %arg10[%c2_57, %c0_58, %c0_59] : memref<3x8x128xf32, #tpu.memory_space<vmem>>, vector<1x8x128xf32>
    %116 = vector.shape_cast %115 : vector<1x8x128xf32> to vector<8x128xf32>
    %c8 = arith.constant 8 : index
    %c0_60 = arith.constant 0 : index
    %c0_61 = arith.constant 0 : index
    %117 = vector.load %arg9[%c8, %c0_60, %c0_61] : memref<12x128x128xf32, #tpu.memory_space<vmem>>, vector<1x128x128xf32>
    %118 = vector.shape_cast %117 : vector<1x128x128xf32> to vector<128x128xf32>
    %cst_62 = arith.constant dense<0.000000e+00> : vector<128x128xf32>
    %119 = tpu.matmul %20, %118, %cst_62 {dimension_numbers = #tpu.dot_dimension_numbers<[1], [0], [0], [1], [0, 0, 1, 1], [], []>} : vector<128x128xf32>, vector<128x128xf32>, vector<128x128xf32> -> vector<128x128xf32>
    %120 = vector.extract_strided_slice %116 {offsets = [0, 0], sizes = [1, 128], strides = [1, 1]} : vector<8x128xf32> to vector<1x128xf32>
    %121 = vector.broadcast %120 : vector<1x128xf32> to vector<128x128xf32>
    %122 = arith.addf %119, %121 : vector<128x128xf32>
    %cst_63 = arith.constant 0.000000e+00 : f32
    %123 = vector.broadcast %cst_63 : f32 to vector<128x128xf32>
    %124 = arith.maximumf %122, %123 : vector<128x128xf32>
    %c9 = arith.constant 9 : index
    %c0_64 = arith.constant 0 : index
    %c0_65 = arith.constant 0 : index
    %125 = vector.load %arg9[%c9, %c0_64, %c0_65] : memref<12x128x128xf32, #tpu.memory_space<vmem>>, vector<1x128x128xf32>
    %126 = vector.shape_cast %125 : vector<1x128x128xf32> to vector<128x128xf32>
    %cst_66 = arith.constant dense<0.000000e+00> : vector<128x128xf32>
    %127 = tpu.matmul %124, %126, %cst_66 {dimension_numbers = #tpu.dot_dimension_numbers<[1], [0], [0], [1], [0, 0, 1, 1], [], []>} : vector<128x128xf32>, vector<128x128xf32>, vector<128x128xf32> -> vector<128x128xf32>
    %128 = vector.extract_strided_slice %116 {offsets = [1, 0], sizes = [1, 128], strides = [1, 1]} : vector<8x128xf32> to vector<1x128xf32>
    %129 = vector.broadcast %128 : vector<1x128xf32> to vector<128x128xf32>
    %130 = arith.addf %127, %129 : vector<128x128xf32>
    %cst_67 = arith.constant dense<0.000000e+00> : vector<128x128xf32>
    %131 = tpu.matmul %5, %114, %cst_67 {dimension_numbers = #tpu.dot_dimension_numbers<[1], [0], [0], [1], [0, 0, 1, 1], [], []>} : vector<128x128xf32>, vector<128x128xf32>, vector<128x128xf32> -> vector<128x128xf32>
    %132 = arith.addf %131, %130 : vector<128x128xf32>
    %cst_68 = arith.constant 0.000000e+00 : f32
    %133 = vector.broadcast %cst_68 : f32 to vector<128x128xf32>
    %134 = arith.maximumf %132, %133 : vector<128x128xf32>
    %cst_69 = arith.constant dense<0.000000e+00> : vector<128x128xf32>
    %135 = tpu.matmul %11, %134, %cst_69 {dimension_numbers = #tpu.dot_dimension_numbers<[1], [0], [0], [1], [0, 0, 1, 1], [], []>} : vector<128x128xf32>, vector<128x128xf32>, vector<128x128xf32> -> vector<128x128xf32>
    %c2_70 = arith.constant 2 : index
    %136 = memref.load %arg0[%c2_70] : memref<3xf32, #tpu.memory_space<smem>>
    %137 = vector.broadcast %136 : f32 to vector<128x128xf32>
    %138 = arith.mulf %137, %114 : vector<128x128xf32>
    %139 = arith.addf %138, %135 : vector<128x128xf32>
    %c10 = arith.constant 10 : index
    %c0_71 = arith.constant 0 : index
    %c0_72 = arith.constant 0 : index
    %140 = vector.load %arg9[%c10, %c0_71, %c0_72] : memref<12x128x128xf32, #tpu.memory_space<vmem>>, vector<1x128x128xf32>
    %141 = vector.shape_cast %140 : vector<1x128x128xf32> to vector<128x128xf32>
    %cst_73 = arith.constant dense<0.000000e+00> : vector<128x128xf32>
    %142 = tpu.matmul %139, %141, %cst_73 {dimension_numbers = #tpu.dot_dimension_numbers<[1], [0], [0], [1], [0, 0, 1, 1], [], []>} : vector<128x128xf32>, vector<128x128xf32>, vector<128x128xf32> -> vector<128x128xf32>
    %143 = vector.extract_strided_slice %116 {offsets = [2, 0], sizes = [1, 128], strides = [1, 1]} : vector<8x128xf32> to vector<1x128xf32>
    %144 = vector.broadcast %143 : vector<1x128xf32> to vector<128x128xf32>
    %145 = arith.addf %142, %144 : vector<128x128xf32>
    %cst_74 = arith.constant 0.000000e+00 : f32
    %146 = vector.broadcast %cst_74 : f32 to vector<128x128xf32>
    %147 = arith.maximumf %145, %146 : vector<128x128xf32>
    %c11 = arith.constant 11 : index
    %c0_75 = arith.constant 0 : index
    %c0_76 = arith.constant 0 : index
    %148 = vector.load %arg9[%c11, %c0_75, %c0_76] : memref<12x128x128xf32, #tpu.memory_space<vmem>>, vector<1x128x128xf32>
    %149 = vector.shape_cast %148 : vector<1x128x128xf32> to vector<128x128xf32>
    %cst_77 = arith.constant dense<0.000000e+00> : vector<128x128xf32>
    %150 = tpu.matmul %147, %149, %cst_77 {dimension_numbers = #tpu.dot_dimension_numbers<[1], [0], [0], [1], [0, 0, 1, 1], [], []>} : vector<128x128xf32>, vector<128x128xf32>, vector<128x128xf32> -> vector<128x128xf32>
    %151 = vector.extract_strided_slice %116 {offsets = [3, 0], sizes = [1, 128], strides = [1, 1]} : vector<8x128xf32> to vector<1x128xf32>
    %152 = vector.broadcast %151 : vector<1x128xf32> to vector<128x128xf32>
    %153 = arith.addf %150, %152 : vector<128x128xf32>
    %154 = vector.extract_strided_slice %116 {offsets = [4, 0], sizes = [1, 128], strides = [1, 1]} : vector<8x128xf32> to vector<1x128xf32>
    %155 = vector.broadcast %154 : vector<1x128xf32> to vector<128x128xf32>
    %156 = arith.mulf %153, %155 : vector<128x128xf32>
    %157 = vector.extract_strided_slice %116 {offsets = [5, 0], sizes = [1, 128], strides = [1, 1]} : vector<8x128xf32> to vector<1x128xf32>
    %158 = vector.broadcast %157 : vector<1x128xf32> to vector<128x128xf32>
    %159 = arith.addf %156, %158 : vector<128x128xf32>
    %cst_78 = arith.constant 0.000000e+00 : f32
    %160 = vector.broadcast %cst_78 : f32 to vector<128x128xf32>
    %161 = arith.maximumf %159, %160 : vector<128x128xf32>
    %c0_79 = arith.constant 0 : index
    %c0_80 = arith.constant 0 : index
    %162 = vector.load %arg12[%c0_79, %c0_80] : memref<8x128xf32, #tpu.memory_space<vmem>>, vector<8x128xf32>
    %c0_81 = arith.constant 0 : index
    %c0_82 = arith.constant 0 : index
    %163 = vector.load %arg7[%c0_81, %c0_82] : memref<8x128xf32, #tpu.memory_space<vmem>>, vector<8x128xf32>
    %cst_83 = arith.constant dense<0.000000e+00> : vector<8x128xf32>
    %164 = tpu.matmul %163, %161, %cst_83 {dimension_numbers = #tpu.dot_dimension_numbers<[1], [0], [0], [1], [0, 0, 1, 1], [], []>} : vector<8x128xf32>, vector<128x128xf32>, vector<8x128xf32> -> vector<8x128xf32>
    %c0_84 = arith.constant 0 : index
    %c0_85 = arith.constant 0 : index
    %c0_86 = arith.constant 0 : index
    %165 = vector.load %arg11[%c0_84, %c0_85, %c0_86] : memref<4x128x128xf32, #tpu.memory_space<vmem>>, vector<1x128x128xf32>
    %166 = vector.shape_cast %165 : vector<1x128x128xf32> to vector<128x128xf32>
    %cst_87 = arith.constant dense<0.000000e+00> : vector<8x128xf32>
    %167 = tpu.matmul %164, %166, %cst_87 {dimension_numbers = #tpu.dot_dimension_numbers<[1], [0], [0], [1], [0, 0, 1, 1], [], []>} : vector<8x128xf32>, vector<128x128xf32>, vector<8x128xf32> -> vector<8x128xf32>
    %168 = vector.extract_strided_slice %162 {offsets = [0, 0], sizes = [1, 128], strides = [1, 1]} : vector<8x128xf32> to vector<1x128xf32>
    %169 = vector.broadcast %168 : vector<1x128xf32> to vector<8x128xf32>
    %170 = arith.addf %167, %169 : vector<8x128xf32>
    %cst_88 = arith.constant 0.000000e+00 : f32
    %171 = vector.broadcast %cst_88 : f32 to vector<8x128xf32>
    %172 = arith.maximumf %170, %171 : vector<8x128xf32>
    %c1_89 = arith.constant 1 : index
    %c0_90 = arith.constant 0 : index
    %c0_91 = arith.constant 0 : index
    %173 = vector.load %arg11[%c1_89, %c0_90, %c0_91] : memref<4x128x128xf32, #tpu.memory_space<vmem>>, vector<1x128x128xf32>
    %174 = vector.shape_cast %173 : vector<1x128x128xf32> to vector<128x128xf32>
    %cst_92 = arith.constant dense<0.000000e+00> : vector<8x128xf32>
    %175 = tpu.matmul %172, %174, %cst_92 {dimension_numbers = #tpu.dot_dimension_numbers<[1], [0], [0], [1], [0, 0, 1, 1], [], []>} : vector<8x128xf32>, vector<128x128xf32>, vector<8x128xf32> -> vector<8x128xf32>
    %176 = vector.extract_strided_slice %162 {offsets = [1, 0], sizes = [1, 128], strides = [1, 1]} : vector<8x128xf32> to vector<1x128xf32>
    %177 = vector.broadcast %176 : vector<1x128xf32> to vector<8x128xf32>
    %178 = arith.addf %175, %177 : vector<8x128xf32>
    %cst_93 = arith.constant 0.000000e+00 : f32
    %179 = vector.broadcast %cst_93 : f32 to vector<8x128xf32>
    %180 = arith.maximumf %178, %179 : vector<8x128xf32>
    %c2_94 = arith.constant 2 : index
    %c0_95 = arith.constant 0 : index
    %c0_96 = arith.constant 0 : index
    %181 = vector.load %arg11[%c2_94, %c0_95, %c0_96] : memref<4x128x128xf32, #tpu.memory_space<vmem>>, vector<1x128x128xf32>
    %182 = vector.shape_cast %181 : vector<1x128x128xf32> to vector<128x128xf32>
    %cst_97 = arith.constant dense<0.000000e+00> : vector<8x128xf32>
    %183 = tpu.matmul %180, %182, %cst_97 {dimension_numbers = #tpu.dot_dimension_numbers<[1], [0], [0], [1], [0, 0, 1, 1], [], []>} : vector<8x128xf32>, vector<128x128xf32>, vector<8x128xf32> -> vector<8x128xf32>
    %184 = vector.extract_strided_slice %162 {offsets = [2, 0], sizes = [1, 128], strides = [1, 1]} : vector<8x128xf32> to vector<1x128xf32>
    %185 = vector.broadcast %184 : vector<1x128xf32> to vector<8x128xf32>
    %186 = arith.addf %183, %185 : vector<8x128xf32>
    %cst_98 = arith.constant 0.000000e+00 : f32
    %187 = vector.broadcast %cst_98 : f32 to vector<8x128xf32>
    %188 = arith.maximumf %186, %187 : vector<8x128xf32>
    %c0_99 = arith.constant 0 : index
    %c0_100 = arith.constant 0 : index
    %189 = vector.load %arg8[%c0_99, %c0_100] : memref<4x8xf32, #tpu.memory_space<vmem>>, vector<4x8xf32>
    %cst_101 = arith.constant dense<0.000000e+00> : vector<4x128xf32>
    %190 = tpu.matmul %189, %188, %cst_101 {dimension_numbers = #tpu.dot_dimension_numbers<[1], [0], [0], [1], [0, 0, 1, 1], [], []>} : vector<4x8xf32>, vector<8x128xf32>, vector<4x128xf32> -> vector<4x128xf32>
    %c3_102 = arith.constant 3 : index
    %c0_103 = arith.constant 0 : index
    %c0_104 = arith.constant 0 : index
    %191 = vector.load %arg11[%c3_102, %c0_103, %c0_104] : memref<4x128x128xf32, #tpu.memory_space<vmem>>, vector<1x128x128xf32>
    %192 = vector.shape_cast %191 : vector<1x128x128xf32> to vector<128x128xf32>
    %cst_105 = arith.constant dense<0.000000e+00> : vector<4x128xf32>
    %193 = tpu.matmul %190, %192, %cst_105 {dimension_numbers = #tpu.dot_dimension_numbers<[1], [0], [0], [1], [0, 0, 1, 1], [], []>} : vector<4x128xf32>, vector<128x128xf32>, vector<4x128xf32> -> vector<4x128xf32>
    %194 = vector.extract_strided_slice %162 {offsets = [3, 0], sizes = [1, 128], strides = [1, 1]} : vector<8x128xf32> to vector<1x128xf32>
    %195 = vector.broadcast %194 : vector<1x128xf32> to vector<4x128xf32>
    %196 = arith.addf %193, %195 : vector<4x128xf32>
    %c0_106 = arith.constant 0 : index
    %c0_107 = arith.constant 0 : index
    %197 = vector.load %arg13[%c0_106, %c0_107] : memref<4x128xf32, #tpu.memory_space<vmem>>, vector<4x128xf32>
    tpu.vector_store %arg13[%c0_106, %c0_107], %196 {strides = array<i32>} : memref<4x128xf32, #tpu.memory_space<vmem>>, vector<4x128xf32>,
    return
  }
}

</mosaic_0001>

<bundles_post_ra>
// kernel: tpu_custom_call.1
= control target key start
LH: loop header
LB: loop body
LE: loop exit
PB: predicated region body
PF: predicated region fallthrough
CT: control target
= control target key end

     0   :  { %18 = vsyncpa [#allocation5], 0  ;;  %s8323_s0 = inlined_call_operand.hbm [shape: f32[3], index: 0, kind: input, shape index: {}]   ;;  %s8324_s1 = inlined_call_operand.vmem [shape: s32[128,1], index: 1, kind: input, shape index: {}]   ;;  %s8325_s2 = inlined_call_operand.hbm [shape: s32[1,128], index: 2, kind: input, shape index: {}]   ;;  %s8326_s3 = inlined_call_operand.vmem [shape: f32[128,128], index: 3, kind: input, shape index: {}]   ;;  %s8327_s4 = inlined_call_operand.hbm [shape: f32[128,128], index: 4, kind: input, shape index: {}]   ;;  %s8328_s5 = inlined_call_operand.vmem [shape: f32[1,128], index: 5, kind: input, shape index: {}]   ;;  %s8329_s6 = inlined_call_operand.hbm [shape: f32[128,128], index: 6, kind: input, shape index: {}]   ;;  %s8330_s7 = inlined_call_operand.vmem [shape: f32[8,128], index: 7, kind: input, shape index: {}]   ;;  %s8331_s8 = inlined_call_operand.hbm [shape: f32[4,8], index: 8, kind: input, shape index: {}]   ;;  %s8332_s9 = inlined_call_operand.hbm [shape: f32[12,128,128], index: 9, kind: input, shape index: {}]   ;;  %s8333_s10 = inlined_call_operand.hbm [shape: f32[3,8,128], index: 10, kind: input, shape index: {}]   ;;  %s8334_s11 = inlined_call_operand.hbm [shape: f32[4,128,128], index: 11, kind: input, shape index: {}]   ;;  %s8335_s12 = inlined_call_operand.vmem [shape: f32[8,128], index: 12, kind: input, shape index: {}]   ;;  %s8336_s13 = inlined_call_operand.hbm [shape: f32[4,128], index: 13, kind: output, shape index: {}]  }
   0x1   :  { %19 = vsyncpa [#allocation3], 0 }
   0x2   :  { %20 = vsyncpa [#allocation8], 0 }
   0x3   :  { %21 = vsyncpa [#allocation11], 0 }
   0x4   :  { %22 = vsyncpa [#allocation14], 0 }
   0x5   :  { %23 = vsyncpa [#allocation4], 0  ;;  %s6664_s25 = smov [#allocation7]  }
   0x6   :  { %s51_s26 = sshll.u32 %s6664_s25, 4  ;;  %s52_s26 = int_to_ptr.vmem [resolvable:$true] %s51_s26 }
   0x7   :  { %s6492_s27 = scalar_lea.vmem %s52_s26, 2048  ;;  %p6497_p1 = scmp.lt.s32.totalorder %s52_s26, %s52_s26 }
   0x8   :  { %p6493_p0 = scmp.ne.s32.totalorder %s52_s26, %s6492_s27  ;;  %p6498_p2 = scmp.lt.s32.totalorder %s6492_s27, %s6492_s27 }
   0xa   :  { %p6499_p3 = por %p6498_p2, %p6497_p1 }
   0xc   :  { %p6500_p4 = pnand %p6499_p3, %p6493_p0 }
   0xe   :  { %6503 = shalt.err (!%p6500_p4)
}
   0xf   :  { %s6665_s28 = smov 128   ;;  %s6666_s29 = smov 8  }
  0x10   :  { %57 = dma.hbm_to_vmem [thread:$0]  %s8327_s4, 2048, %s52_s26, [#allocation8], %s6665_s28, %s6665_s28, %s6666_s29  }
  0x11   :  { %s6667_s15 = smov [#allocation10]   ;;  %s6668_s17 = smov [#allocation13]  }
  0x12   :  { %s80_s16 = sshll.u32 %s6667_s15, 4  ;;  %s101_s18 = sshll.u32 %s6668_s17, 4  ;;  %s81_s16 = int_to_ptr.vmem [resolvable:$true] %s80_s16  ;;  %s102_s18 = int_to_ptr.vmem [resolvable:$true] %s101_s18 }
  0x13   :  { %s6512_s19 = scalar_lea.vmem %s81_s16, 64  ;;  %p6517_p6 = scmp.lt.s32.totalorder %s81_s16, %s81_s16 }
  0x14   :  { %p6513_p5 = scmp.ne.s32.totalorder %s81_s16, %s6512_s19  ;;  %p6518_p7 = scmp.lt.s32.totalorder %s6512_s19, %s6512_s19 }
  0x16   :  { %p6519_p8 = por %p6518_p7, %p6517_p6 }
  0x18   :  { %p6520_p9 = pnand %p6519_p8, %p6513_p5 }
  0x1a   :  { %6523 = shalt.err (!%p6520_p9)
}
  0x1b   :  { %83 = dma.hbm_to_vmem [thread:$0]  %s8331_s8, 64, %s81_s16, [#allocation11]  }
  0x1c   :  { %s6532_s22 = scalar_lea.vmem %s102_s18, 384  ;;  %p6537_p11 = scmp.lt.s32.totalorder %s102_s18, %s102_s18 }
  0x1d   :  { %p6533_p10 = scmp.ne.s32.totalorder %s102_s18, %s6532_s22  ;;  %p6538_p12 = scmp.lt.s32.totalorder %s6532_s22, %s6532_s22 }
  0x1f   :  { %p6539_p13 = por %p6538_p12, %p6537_p11 }
  0x21   :  { %p6540_p0 = pnand %p6539_p13, %p6533_p10 }
  0x23   :  { %6543 = shalt.err (!%p6540_p0)
}
  0x24   :  { %107 = dma.hbm_to_vmem [thread:$0]  %s8333_s10, 384, %s102_s18, [#allocation14], %s6665_s28, %s6665_s28, %s6666_s29  }
  0x25   :  { %s6669_s24 = smov [#allocation2]   ;;  %s6670_s8 = smov [#allocation6]  }
  0x26   :  { %31 = dma.hbm_to_smem %s8323_s0, 16, %s6669_s24, [#allocation5]  }
  0x27   :  { %s40_s27 = sshll.u32 %s6670_s8, 4  ;;  %s6671_s30 = smov [#allocation9]   ;;  %s41_s27 = int_to_ptr.vmem [resolvable:$true] %s40_s27 }
  0x28   :  { %s65_s14 = sshll.u32 %s6671_s30, 4  ;;  %s6560_s15 = scalar_lea.vmem %s41_s27, 16  ;;  %s66_s14 = int_to_ptr.vmem [resolvable:$true] %s65_s14 }
  0x29   :  { %p6561_p1 = scmp.ne.s32.totalorder %s41_s27, %s6560_s15  ;;  %s6564_s16 = scalar_lea.vmem %s41_s27, 32 }
  0x2a   :  { %p6565_p2 = scmp.lt.s32.totalorder %s41_s27, %s41_s27  ;;  %p6566_p3 = scmp.lt.s32.totalorder %s6564_s16, %s6560_s15 }
  0x2c   :  { %p6567_p4 = por %p6566_p3, %p6565_p2 }
  0x2e   :  { %p6568_p5 = pnand %p6567_p4, %p6561_p1 }
  0x30   :  { %6571 = shalt.err (!%p6568_p5)
}
  0x31   :  { %43 = dma.hbm_to_vmem [thread:$0]  %s8325_s2, 16, %s41_s27, [#allocation3]  }
  0x32   :  { %s6580_s18 = scalar_lea.vmem %s66_s14, 2048  ;;  %p6585_p7 = scmp.lt.s32.totalorder %s66_s14, %s66_s14 }
  0x33   :  { %p6581_p6 = scmp.ne.s32.totalorder %s66_s14, %s6580_s18  ;;  %p6586_p8 = scmp.lt.s32.totalorder %s6580_s18, %s6580_s18 }
  0x35   :  { %p6587_p9 = por %p6586_p8, %p6585_p7 }
  0x37   :  { %p6588_p10 = pnand %p6587_p9, %p6581_p6 }
  0x39   :  { %6591 = shalt.err (!%p6588_p10)
}
  0x3a   :  { %71 = dma.hbm_to_vmem [thread:$0]  %s8329_s6, 2048, %s66_s14, [#allocation8], %s6665_s28, %s6665_s28, %s6666_s29  }
  0x3b   :  { %s6672_s20 = smov [#allocation12]   ;;  %s6673_s22 = smov [#allocation15]  }
  0x3c   :  { %s89_s21 = sshll.u32 %s6672_s20, 4  ;;  %s113_s4 = sshll.u32 %s6673_s22, 4  ;;  %s90_s21 = int_to_ptr.vmem [resolvable:$true] %s89_s21  ;;  %s114_s4 = int_to_ptr.vmem [resolvable:$true] %s113_s4 }
  0x3d   :  { %s6600_s2 = scalar_lea.vmem %s90_s21, 24576  ;;  %p6605_p12 = scmp.lt.s32.totalorder %s90_s21, %s90_s21 }
  0x3e   :  { %p6601_p11 = scmp.ne.s32.totalorder %s90_s21, %s6600_s2  ;;  %p6606_p13 = scmp.lt.s32.totalorder %s6600_s2, %s6600_s2 }
  0x40   :  { %p6607_p0 = por %p6606_p13, %p6605_p12 }
  0x42   :  { %p6608_p1 = pnand %p6607_p0, %p6601_p11 }
  0x44   :  { %6611 = shalt.err (!%p6608_p1)
}
  0x45   :  { %95 = dma.hbm_to_vmem [thread:$0]  %s8332_s9, 24576, %s90_s21, [#allocation11], %s6665_s28, %s6665_s28, %s6666_s29  }
  0x46   :  { %s6620_s6 = scalar_lea.vmem %s114_s4, 8192  ;;  %p6625_p3 = scmp.lt.s32.totalorder %s114_s4, %s114_s4 }
  0x47   :  { %p6621_p2 = scmp.ne.s32.totalorder %s114_s4, %s6620_s6  ;;  %p6626_p4 = scmp.lt.s32.totalorder %s6620_s6, %s6620_s6 }
  0x49   :  { %p6627_p5 = por %p6626_p4, %p6625_p3 }
  0x4b   :  { %p6628_p6 = pnand %p6627_p5, %p6621_p2 }
  0x4d   :  { %6631 = shalt.err (!%p6628_p6)
}
  0x4e   :  { %119 = dma.hbm_to_vmem [thread:$0]  %s8334_s11, 8192, %s114_s4, [#allocation14], %s6665_s28, %s6665_s28, %s6666_s29  }
  0x4f   :  { %6652 = dma.done.wait [#allocation5], 16  }
  0x50   :  { %6653 = vsyncadd [#allocation5], 4294967280 }
  0x51   :  { %6654 = dma.done.wait [#allocation3], 16  }
  0x52   :  { %6655 = vsyncadd [#allocation3], 4294967280 }
  0x53   :  { %6656 = dma.done.wait [#allocation8], 4096  }
  0x54   :  { %6657 = vsyncadd [#allocation8], 4294963200 }
  0x55   :  { %6658 = dma.done.wait [#allocation11], 24640  }
  0x56   :  { %6659 = vsyncadd [#allocation11], 4294942656 }
  0x57   :  { %6660 = dma.done.wait [#allocation14], 8576  }
  0x58   :  { %6661 = vsyncadd [#allocation14], 4294958720 }
  0x59   :  { %146 = sfence }
  0x5a   :  { %v362_v0 = vld [vmem:[#allocation7 + $0x78] sm:$0xff]  ;;  %v361_v1 = vld [vmem:[#allocation7 + $0x70] sm:$0xff]  ;;  %v6674_v2 = vmov 0   ;;  %v360_v3 = vld [vmem:[#allocation7 + $0x68] sm:$0xff]  ;;  %s4458_s19 = sld [smem:[#allocation2 + $0x1]] }
  0x5b   :  { %5188 = vmatprep.subr.mxu0 %v362_v0  ;;  %6447 = vset.pattern.permute.xlu0 %v6674_v2  ;;  %v359_v4 = vld [vmem:[#allocation7 + $0x60] sm:$0xff]  ;;  %v358_v6 = vld [vmem:[#allocation7 + $0x58] sm:$0xff]  ;;  %v357_v7 = vld [vmem:[#allocation7 + $0x50] sm:$0xff]  ;;  %s4491_s20 = sld [smem:[#allocation2 + $0x2]] }
  0x5c   :  { %5189 = vmatpush3.msra.mxu0 %v362_v0  ;;  %6448 = vset.pattern.permute.xlu1 %v6674_v2  ;;  %v331_v5 = vld [vmem:[%s8326_s3] sm:$0xff]  ;;  %v562_v9 = vld [vmem:[#allocation12 + $0x70] sm:$0xff]  ;;  %v356_v10 = vld [vmem:[#allocation7 + $0x48] sm:$0xff] }
  0x5d   :  { %5190 = vmatprep.subr.mxu0 %v361_v1  ;;  %5220 = vmatprep.mubr.f32.mxu0 %v331_v5  ;;  %v563_v8 = vld [vmem:[#allocation12 + $0x78] sm:$0xff]  ;;  %v561_v11 = vld [vmem:[#allocation12 + $0x68] sm:$0xff]  ;;  %v560_v13 = vld [vmem:[#allocation12 + $0x60] sm:$0xff] }
  0x5e   :  { %5191 = vmatpush3.msra.mxu0 %v361_v1  ;;  %5244 = vmatprep.subr.mxu1 %v563_v8  ;;  %v355_v12 = vld [vmem:[#allocation7 + $0x40] sm:$0xff]  ;;  %v354_v14 = vld [vmem:[#allocation7 + $0x38] sm:$0xff]  ;;  %v353_v16 = vld [vmem:[#allocation7 + $0x30] sm:$0xff] }
  0x5f   :  { %5192 = vmatprep.subr.mxu0 %v360_v3  ;;  %5245 = vmatpush3.msra.mxu1 %v563_v8  ;;  %v559_v15 = vld [vmem:[#allocation12 + $0x58] sm:$0xff]  ;;  %v558_v17 = vld [vmem:[#allocation12 + $0x50] sm:$0xff]  ;;  %v352_v18 = vld [vmem:[#allocation7 + $0x28] sm:$0xff] }
  0x60   :  { %5193 = vmatpush3.msra.mxu0 %v360_v3  ;;  %5246 = vmatprep.subr.mxu1 %v562_v9  ;;  %v557_v19 = vld [vmem:[#allocation12 + $0x48] sm:$0xff]  ;;  %v351_v20 = vld [vmem:[#allocation7 + $0x20] sm:$0xff]  ;;  %v350_v22 = vld [vmem:[#allocation7 + $0x18] sm:$0xff] }
  0x61   :  { %5194 = vmatprep.subr.mxu0 %v359_v4  ;;  %5247 = vmatpush3.msra.mxu1 %v562_v9  ;;  %v556_v21 = vld [vmem:[#allocation12 + $0x40] sm:$0xff]  ;;  %v555_v23 = vld [vmem:[#allocation12 + $0x38] sm:$0xff]  ;;  %v349_v24 = vld [vmem:[#allocation7 + $0x10] sm:$0xff] }
  0x62   :  { %5195 = vmatpush3.msra.mxu0 %v359_v4  ;;  %5248 = vmatprep.subr.mxu1 %v561_v11  ;;  %v554_v25 = vld [vmem:[#allocation12 + $0x30] sm:$0xff]  ;;  %v348_v26 = vld [vmem:[#allocation7 + $0x8] sm:$0xff]  ;;  %v347_v28 = vld [vmem:[#allocation7] sm:$0xff] }
  0x63   :  { %5196 = vmatprep.subr.mxu0 %v358_v6  ;;  %5249 = vmatpush3.msra.mxu1 %v561_v11  ;;  %v553_v27 = vld [vmem:[#allocation12 + $0x28] sm:$0xff]  ;;  %v552_v29 = vld [vmem:[#allocation12 + $0x20] sm:$0xff]  ;;  %v551_v31 = vld [vmem:[#allocation12 + $0x18] sm:$0xff] }
  0x64   :  { %5197 = vmatpush3.msra.mxu0 %v358_v6  ;;  %5250 = vmatprep.subr.mxu1 %v560_v13  ;;  %v332_v30 = vld [vmem:[%s8326_s3 + $0x8] sm:$0xff]  ;;  %v333_v32 = vld [vmem:[%s8326_s3 + $0x10] sm:$0xff]  ;;  %v149_v35 = vld [vmem:[%s8324_s1] sm:$0xff] }
  0x65   :  { %5198 = vmatprep.subr.mxu0 %v357_v7  ;;  %5251 = vmatpush3.msra.mxu1 %v560_v13  ;;  %v550_v33 = vld [vmem:[#allocation12 + $0x10] sm:$0xff]  ;;  %v531_v34 = vld [vmem:[#allocation9] sm:$0xff]  ;;  %v549_v37 = vld [vmem:[#allocation12 + $0x8] sm:$0xff] }
  0x66   :  { %5199 = vmatpush3.msra.mxu0 %v357_v7  ;;  %5252 = vmatprep.subr.mxu1 %v559_v15  ;;  %v334_v36 = vld [vmem:[%s8326_s3 + $0x18] sm:$0xff]  ;;  %v335_v38 = vld [vmem:[%s8326_s3 + $0x20] sm:$0xff]  ;;  %v151_v40 = vld [vmem:[%s8324_s1 + $0x10] sm:$0xff] }
  0x67   :  { %5200 = vmatprep.subr.mxu0 %v356_v10  ;;  %5253 = vmatpush3.msra.mxu1 %v559_v15  ;;  %v548_v39 = vld [vmem:[#allocation12] sm:$0xff]  ;;  %v337_v44 = vld [vmem:[%s8326_s3 + $0x30] sm:$0xff]  ;;  %v152_v46 = vld [vmem:[%s8324_s1 + $0x18] sm:$0xff] }
  0x68   :  { %5201 = vmatpush3.msra.mxu0 %v356_v10  ;;  %5254 = vmatprep.subr.mxu1 %v558_v17  ;;  %v150_v41 = vld [vmem:[%s8324_s1 + $0x8] sm:$0xff]  ;;  %v533_v45 = vld [vmem:[#allocation9 + $0x10] sm:$0xff]  ;;  %v153_v47 = vld [vmem:[%s8324_s1 + $0x20] sm:$0xff] }
  0x69   :  { %5202 = vmatprep.subr.mxu0 %v355_v12  ;;  %5255 = vmatpush3.msra.mxu1 %v558_v17  ;;  %v336_v42 = vld [vmem:[%s8326_s3 + $0x28] sm:$0xff]  ;;  %v338_v48 = vld [vmem:[%s8326_s3 + $0x38] sm:$0xff]  ;;  %v339_v50 = vld [vmem:[%s8326_s3 + $0x40] sm:$0xff] }
  0x6a   :  { %5203 = vmatpush3.msra.mxu0 %v355_v12  ;;  %5256 = vmatprep.subr.mxu1 %v557_v19  ;;  %v532_v43 = vld [vmem:[#allocation9 + $0x8] sm:$0xff]  ;;  %v534_v49 = vld [vmem:[#allocation9 + $0x18] sm:$0xff]  ;;  %v535_v51 = vld [vmem:[#allocation9 + $0x20] sm:$0xff] }
  0x6b   :  { %5204 = vmatprep.subr.mxu0 %v354_v14  ;;  %5257 = vmatpush3.msra.mxu1 %v557_v19  ;;  %v154_v52 = vld [vmem:[%s8324_s1 + $0x28] sm:$0xff]  ;;  %v155_v53 = vld [vmem:[%s8324_s1 + $0x30] sm:$0xff]  ;;  %v156_v58 = vld [vmem:[%s8324_s1 + $0x38] sm:$0xff] }
  0x6c   :  { %5205 = vmatpush3.msra.mxu0 %v354_v14  ;;  %5258 = vmatprep.subr.mxu1 %v556_v21  ;;  %v340_v54 = vld [vmem:[%s8326_s3 + $0x48] sm:$0xff]  ;;  %v341_v56 = vld [vmem:[%s8326_s3 + $0x50] sm:$0xff]  ;;  %v157_v59 = vld [vmem:[%s8324_s1 + $0x40] sm:$0xff] }
  0x6d   :  { %5206 = vmatprep.subr.mxu0 %v353_v16  ;;  %5259 = vmatpush3.msra.mxu1 %v556_v21  ;;  %v536_v55 = vld [vmem:[#allocation9 + $0x28] sm:$0xff]  ;;  %v537_v57 = vld [vmem:[#allocation9 + $0x30] sm:$0xff]  ;;  %v538_v61 = vld [vmem:[#allocation9 + $0x38] sm:$0xff] }
  0x6e   :  { %5207 = vmatpush3.msra.mxu0 %v353_v16  ;;  %5260 = vmatprep.subr.mxu1 %v555_v23  ;;  %v342_v60 = vld [vmem:[%s8326_s3 + $0x58] sm:$0xff]  ;;  %v343_v62 = vld [vmem:[%s8326_s3 + $0x60] sm:$0xff]  ;;  %v158_v0 = vld [vmem:[%s8324_s1 + $0x48] sm:$0xff] }
  0x6f   :  { %5208 = vmatprep.subr.mxu0 %v352_v18  ;;  %5261 = vmatpush3.msra.mxu1 %v555_v23  ;;  %v539_v63 = vld [vmem:[#allocation9 + $0x40] sm:$0xff]  ;;  %v159_v1 = vld [vmem:[%s8324_s1 + $0x50] sm:$0xff]  ;;  %v160_v6 = vld [vmem:[%s8324_s1 + $0x58] sm:$0xff] }
  0x70   :  { %5209 = vmatpush3.msra.mxu0 %v352_v18  ;;  %5262 = vmatprep.subr.mxu1 %v554_v25  ;;  %v344_v2 = vld [vmem:[%s8326_s3 + $0x68] sm:$0xff]  ;;  %v345_v4 = vld [vmem:[%s8326_s3 + $0x70] sm:$0xff]  ;;  %v161_v7 = vld [vmem:[%s8324_s1 + $0x60] sm:$0xff] }
  0x71   :  { %5210 = vmatprep.subr.mxu0 %v351_v20  ;;  %5263 = vmatpush3.msra.mxu1 %v554_v25  ;;  %v540_v3 = vld [vmem:[#allocation9 + $0x48] sm:$0xff]  ;;  %v541_v5 = vld [vmem:[#allocation9 + $0x50] sm:$0xff]  ;;  %v542_v9 = vld [vmem:[#allocation9 + $0x58] sm:$0xff] }
  0x72   :  { %5211 = vmatpush3.msra.mxu0 %v351_v20  ;;  %5264 = vmatprep.subr.mxu1 %v553_v27  ;;  %v346_v8 = vld [vmem:[%s8326_s3 + $0x78] sm:$0xff]  ;;  %v543_v10 = vld [vmem:[#allocation9 + $0x60] sm:$0xff]  ;;  %v163_v12 = vld [vmem:[%s8324_s1 + $0x70] sm:$0xff] }
  0x73   :  { %5212 = vmatprep.subr.mxu0 %v350_v22  ;;  %5265 = vmatpush3.msra.mxu1 %v553_v27  ;;  %v162_v11 = vld [vmem:[%s8324_s1 + $0x68] sm:$0xff]  ;;  %v545_v14 = vld [vmem:[#allocation9 + $0x70] sm:$0xff]  ;;  %v546_v16 = vld [vmem:[#allocation9 + $0x78] sm:$0xff] }
  0x74   :  { %5213 = vmatpush3.msra.mxu0 %v350_v22  ;;  %5266 = vmatprep.subr.mxu1 %v552_v29  ;;  %v544_v13 = vld [vmem:[#allocation9 + $0x68] sm:$0xff]  ;;  %v164_v15 = vld [vmem:[%s8324_s1 + $0x78] sm:$0xff] }
  0x75   :  { %5214 = vmatprep.subr.mxu0 %v349_v24  ;;  %5267 = vmatpush3.msra.mxu1 %v552_v29  ;;  %v745_v17 = vld [vmem:[#allocation12 + $0xf8] sm:$0xff]  ;;  %v744_v18 = vld [vmem:[#allocation12 + $0xf0] sm:$0xff]  ;;  %v743_v19 = vld [vmem:[#allocation12 + $0xe8] sm:$0xff] }
  0x76   :  { %5215 = vmatpush3.msra.mxu0 %v349_v24  ;;  %5268 = vmatprep.subr.mxu1 %v551_v31  ;;  %v742_v20 = vld [vmem:[#allocation12 + $0xe0] sm:$0xff]  ;;  %v741_v21 = vld [vmem:[#allocation12 + $0xd8] sm:$0xff]  ;;  %v740_v22 = vld [vmem:[#allocation12 + $0xd0] sm:$0xff] }
  0x77   :  { %5216 = vmatprep.subr.mxu0 %v348_v26  ;;  %5269 = vmatpush3.msra.mxu1 %v551_v31  ;;  %v739_v23 = vld [vmem:[#allocation12 + $0xc8] sm:$0xff]  ;;  %v738_v24 = vld [vmem:[#allocation12 + $0xc0] sm:$0xff]  ;;  %v737_v25 = vld [vmem:[#allocation12 + $0xb8] sm:$0xff] }
  0x78   :  { %5217 = vmatpush3.msra.mxu0 %v348_v26  ;;  %5270 = vmatprep.subr.mxu1 %v550_v33  ;;  %v736_v26 = vld [vmem:[#allocation12 + $0xb0] sm:$0xff]  ;;  %v735_v27 = vld [vmem:[#allocation12 + $0xa8] sm:$0xff]  ;;  %v733_v29 = vld [vmem:[#allocation12 + $0x98] sm:$0xff] }
  0x79   :  { %5218 = vmatprep.subr.mxu0 %v347_v28  ;;  %5276 = vmatprep.mubr.f32.mxu1 %v531_v34  ;;  %v731_v31 = vld [vmem:[#allocation12 + $0x88] sm:$0xff] }
  0x7a   :  { %5219 = vmatpush3.msra.mxu0 %v347_v28  ;;  %5271 = vmatpush3.msra.mxu1 %v550_v33  ;;  %v734_v28 = vld [vmem:[#allocation12 + $0xa0] sm:$0xff]  ;;  %v147_v33 = vlaneseq }
  0x7b   :  { %5221 = vmatmul.mubr.f32.vlgmr.msra.gmra.mxu0 %v332_v30  ;;  %166 = vperm.xlu0 %6447, %v149_v35   ;;  %v732_v30 = vld [vmem:[#allocation12 + $0x90] sm:$0xff] }
  0x7c   :  { %5223 = vmatprep.mubr.f32.mxu0 %v333_v32  ;;  %5272 = vmatprep.subr.mxu1 %v549_v37  ;;  %v730_v32 = vld [vmem:[#allocation12 + $0x80] sm:$0xff]  ;;  %v6884_v34 = vand.u32 127, %v147_v33 }
  0x7d   :  { %5273 = vmatpush3.msra.mxu1 %v549_v37  ;;  %172 = vperm.xlu1 %6448, %v151_v40   ;;  %v6894_v37 = vshrl.u32 %v147_v33, 7 }
  0x7e   :  { %5274 = vmatprep.subr.mxu1 %v548_v39  ;;  %5300 = vmatprep.subr.mxu0 %v745_v17  ;;  %8439 = vst [vmem:[#allocation23_spill] sm:$0xff] %v6884_v34 }
  0x7f   :  { %5224 = vmatmul.mubr.f32.gmra.mxu0 %v334_v36  ;;  %5275 = vmatpush3.msra.mxu1 %v548_v39  ;;  %v8338_v36 = vmov 1.0   ;;  %8441 = vst [vmem:[#allocation25_spill] sm:$0xff] %v6894_v37  ;;  %v6899_v39 = vsub.s32 0, %v6894_v37 }
  0x80   :  { %5226 = vmatprep.mubr.f32.mxu0 %v335_v38  ;;  %169 = vperm.xlu0 %6447, %v150_v41   ;;  %v6903_v41 = vld [vmem:[#allocation13] sm:$0xff] }
  0x81   :  { %5277 = vmatmul.mubr.f32.vlgmr.msra.gmra.mxu1 %v532_v43  ;;  %175 = vperm.xlu1 %6448, %v152_v46   ;;  %8442 = vst [vmem:[#allocation26_spill] sm:$0xff] %v6899_v39  ;;  %v6909_v43 = vrot.slane %v6903_v41, %v6899_v39 }
  0x82   :  { %5279 = vmatprep.mubr.f32.mxu1 %v533_v45  ;;  %5301 = vmatpush3.msra.mxu0 %v745_v17 }
  0x83   :  { %5227 = vmatmul.mubr.f32.gmra.mxu0 %v336_v42  ;;  %5302 = vmatprep.subr.mxu0 %v744_v18 }
  0x84   :  { %5229 = vmatprep.mubr.f32.mxu0 %v337_v44  ;;  %178 = vperm.xlu0 %6447, %v153_v47  }
  0x85   :  { %5280 = vmatmul.mubr.f32.gmra.mxu1 %v534_v49  ;;  %181 = vperm.xlu1 %6448, %v154_v52  }
  0x86   :  { %5282 = vmatprep.mubr.f32.mxu1 %v535_v51  ;;  %5303 = vmatpush3.msra.mxu0 %v744_v18 }
  0x87   :  { %5230 = vmatmul.mubr.f32.gmra.mxu0 %v338_v48  ;;  %5304 = vmatprep.subr.mxu0 %v743_v19 }
  0x88   :  { %5232 = vmatprep.mubr.f32.mxu0 %v339_v50  ;;  %184 = vperm.xlu0 %6447, %v155_v53  }
  0x89   :  { %5283 = vmatmul.mubr.f32.gmra.mxu1 %v536_v55  ;;  %187 = vperm.xlu1 %6448, %v156_v58  }
  0x8a   :  { %5285 = vmatprep.mubr.f32.mxu1 %v537_v57  ;;  %5305 = vmatpush3.msra.mxu0 %v743_v19  ;;  %v6938_v19 = vld [vmem:[%s8328_s5] ss:$0 sm:$0xff]  ;;  %s1201_s5 = sld [smem:[#allocation2]] }
  0x8b   :  { %5233 = vmatmul.mubr.f32.gmra.mxu0 %v340_v54  ;;  %5306 = vmatprep.subr.mxu0 %v742_v20 }
  0x8c   :  { %5235 = vmatprep.mubr.f32.mxu0 %v341_v56  ;;  %190 = vperm.xlu0 %6447, %v157_v59  }
  0x8d   :  { %5286 = vmatmul.mubr.f32.gmra.mxu1 %v538_v61  ;;  %193 = vperm.xlu1 %6448, %v158_v0  }
  0x8e   :  { %5288 = vmatprep.mubr.f32.mxu1 %v539_v63  ;;  %5307 = vmatpush3.msra.mxu0 %v742_v20 }
  0x8f   :  { %5236 = vmatmul.mubr.f32.gmra.mxu0 %v342_v60  ;;  %5308 = vmatprep.subr.mxu0 %v741_v21 }
  0x90   :  { %5238 = vmatprep.mubr.f32.mxu0 %v343_v62  ;;  %196 = vperm.xlu0 %6447, %v159_v1  }
  0x91   :  { %5289 = vmatmul.mubr.f32.gmra.mxu1 %v540_v3  ;;  %199 = vperm.xlu1 %6448, %v160_v6  }
  0x92   :  { %5291 = vmatprep.mubr.f32.mxu1 %v541_v5  ;;  %5309 = vmatpush3.msra.mxu0 %v741_v21 }
  0x93   :  { %5239 = vmatmul.mubr.f32.gmra.mxu0 %v344_v2  ;;  %5310 = vmatprep.subr.mxu0 %v740_v22 }
  0x94   :  { %5241 = vmatprep.mubr.f32.mxu0 %v345_v4  ;;  %202 = vperm.xlu0 %6447, %v161_v7  }
  0x95   :  { %5292 = vmatmul.mubr.f32.gmra.mxu1 %v542_v9  ;;  %205 = vperm.xlu1 %6448, %v162_v11  }
  0x96   :  { %5294 = vmatprep.mubr.f32.mxu1 %v543_v10  ;;  %5311 = vmatpush3.msra.mxu0 %v740_v22 }
  0x97   :  { %5242 = vmatmul.mubr.f32.gmra.mxu0 %v346_v8  ;;  %5312 = vmatprep.subr.mxu0 %v739_v23 }
  0x98   :  { %208 = vperm.xlu0 %6447, %v163_v12   ;;  %5313 = vmatpush3.msra.mxu0 %v739_v23 }
  0x99   :  { %5295 = vmatmul.mubr.f32.gmra.mxu1 %v544_v13  ;;  %211 = vperm.xlu1 %6448, %v164_v15  }
  0x9a   :  { %5297 = vmatprep.mubr.f32.mxu1 %v545_v14  ;;  %5314 = vmatprep.subr.mxu0 %v738_v24 }
  0x9b   :  { %5315 = vmatpush3.msra.mxu0 %v738_v24 }
  0x9c   :  { %5316 = vmatprep.subr.mxu0 %v737_v25 }
  0x9d   :  { %5298 = vmatmul.mubr.f32.gmra.mxu1 %v546_v16  ;;  %5317 = vmatpush3.msra.mxu0 %v737_v25 }
  0x9e   :  { %5318 = vmatprep.subr.mxu0 %v736_v26 }
  0x9f   :  { %5319 = vmatpush3.msra.mxu0 %v736_v26 }
  0xa0   :  { %5320 = vmatprep.subr.mxu0 %v735_v27 }
  0xa1   :  { %5321 = vmatpush3.msra.mxu0 %v735_v27 }
  0xa2   :  { %5322 = vmatprep.subr.mxu0 %v734_v28 }
  0xa3   :  { %5323 = vmatpush3.msra.mxu0 %v734_v28 }
  0xa4   :  { %5324 = vmatprep.subr.mxu0 %v733_v29 }
  0xa5   :  { %5325 = vmatpush3.msra.mxu0 %v733_v29 }
  0xa6   :  { %5326 = vmatprep.subr.mxu0 %v732_v30 }
  0xa7   :  { %5327 = vmatpush3.msra.mxu0 %v732_v30 }
  0xa8   :  { %5328 = vmatprep.subr.mxu0 %v731_v31 }
  0xa9   :  { %5329 = vmatpush3.msra.mxu0 %v731_v31 }
  0xaa   :  { %5330 = vmatprep.subr.mxu0 %v730_v32 }
  0xab   :  { %5331 = vmatpush3.msra.mxu0 %v730_v32 }
  0xf6   :  { %v6886_v35 = vpop.permute.xlu0 %166 }
  0xf7   :  { %8440 = vst [vmem:[#allocation24_spill] sm:$0xff] %v6886_v35  ;;  %vm213_vm0 = vcmp.eq.s32.totalorder %v6884_v34, %v6886_v35 }
  0xf8   :  { %5388 = vmatprep.mubr.msk.f32.mxu1 %vm213_vm0, %v8338_v36 }
 0x13b   :  { %v6896_v38 = vpop.f32.mrf.mxu0 }
 0x13d   :  { %v6901_v40 = vpop.f32.mrf.mxu0 }
 0x13f   :  { %v6905_v42 = vpop.f32.mrf.mxu0 }
 0x141   :  { %v6911_v44 = vpop.f32.mrf.mxu0  ;;  %v5278_v46 = vpop.f32.mrf.mxu1 }
 0x142   :  { %v640_v47 = vadd.f32 %v5278_v46, %v6909_v43 }
 0x143   :  { %v6913_v45 = vpop.f32.mrf.mxu0  ;;  %v634_v49 = vpop.f32.mrf.mxu1 }
 0x144   :  { %v635_v50 = vadd.f32 %v634_v49, %v6909_v43  ;;  %v714_v52 = vmax.f32 %v640_v47, 0.0 }
 0x145   :  { %v6916_v48 = vpop.f32.mrf.mxu0  ;;  %v5281_v53 = vpop.f32.mrf.mxu1 }
 0x146   :  { %v713_v54 = vmax.f32 %v635_v50, 0.0  ;;  %v650_v55 = vadd.f32 %v5281_v53, %v6909_v43 }
 0x147   :  { %v6919_v51 = vpop.f32.mrf.mxu0  ;;  %v644_v57 = vpop.f32.mrf.mxu1 }
 0x148   :  { %v645_v58 = vadd.f32 %v644_v57, %v6909_v43  ;;  %5332 = vmatprep.mubr.f32.mxu0 %v713_v54  ;;  %v716_v60 = vmax.f32 %v650_v55, 0.0 }
 0x149   :  { %v6922_v56 = vpop.f32.mrf.mxu0  ;;  %v5284_v61 = vpop.f32.mrf.mxu1  ;;  %5333 = vmatmul.mubr.f32.vlgmr.msra.gmra.mxu0 %v714_v52 }
 0x14a   :  { %v715_v62 = vmax.f32 %v645_v58, 0.0  ;;  %v660_v63 = vadd.f32 %v5284_v61, %v6909_v43 }
 0x14b   :  { %v6925_v59 = vpop.f32.mrf.mxu0  ;;  %v654_v1 = vpop.f32.mrf.mxu1 }
 0x14c   :  { %v655_v2 = vadd.f32 %v654_v1, %v6909_v43  ;;  %5335 = vmatprep.mubr.f32.mxu0 %v715_v62  ;;  %v718_v4 = vmax.f32 %v660_v63, 0.0 }
 0x14d   :  { %v6928_v0 = vpop.f32.mrf.mxu0  ;;  %v5287_v5 = vpop.f32.mrf.mxu1  ;;  %5336 = vmatmul.mubr.f32.gmra.mxu0 %v716_v60 }
 0x14e   :  { %v717_v6 = vmax.f32 %v655_v2, 0.0  ;;  %v670_v7 = vadd.f32 %v5287_v5, %v6909_v43  ;;  %v482_v2 = vadd.f32 %v6925_v59, %v6938_v19  ;;  %v472_v59 = vadd.f32 %v6919_v51, %v6938_v19 }
 0x14f   :  { %v5237_v3 = vpop.f32.mrf.mxu0  ;;  %v664_v9 = vpop.f32.mrf.mxu1  ;;  %v462_v51 = vadd.f32 %v6913_v45, %v6938_v19  ;;  %v452_v45 = vadd.f32 %v6905_v42, %v6938_v19  ;;  %v442_v42 = vadd.f32 %v6896_v38, %v6938_v19 }
 0x150   :  { %v665_v10 = vadd.f32 %v664_v9, %v6909_v43  ;;  %5338 = vmatprep.mubr.f32.mxu0 %v717_v6  ;;  %v720_v12 = vmax.f32 %v670_v7, 0.0  ;;  %v492_v53 = vadd.f32 %v5237_v3, %v6938_v19  ;;  %v477_v6 = vadd.f32 %v6938_v19, %v6928_v0 }
 0x151   :  { %v486_v8 = vpop.f32.mrf.mxu0  ;;  %v5290_v13 = vpop.f32.mrf.mxu1  ;;  %5339 = vmatmul.mubr.f32.gmra.mxu0 %v718_v4  ;;  %v6980_v9 = vmax.f32 %v482_v2, 0.0  ;;  %v1242_v2 = vld [vmem:[#allocation12 + $0x130] sm:$0xff] }
 0x152   :  { %v719_v14 = vmax.f32 %v665_v10, 0.0  ;;  %v680_v15 = vadd.f32 %v5290_v13, %v6909_v43  ;;  %v487_v60 = vadd.f32 %v6938_v19, %v486_v8  ;;  %v6967_v3 = vmax.f32 %v492_v53, 0.0  ;;  %v7003_v13 = vpop.permute.xlu0 %169 }
 0x153   :  { %v5240_v11 = vpop.f32.mrf.mxu0  ;;  %v674_v17 = vpop.f32.mrf.mxu1  ;;  %v6986_v0 = vmax.f32 %v477_v6, 0.0  ;;  %v6992_v10 = vmax.f32 %v472_v59, 0.0  ;;  %8444 = vst [vmem:[#allocation28_spill] sm:$0xff] %v7003_v13  ;;  %vm214_vm2 = vcmp.eq.s32.totalorder %v6884_v34, %v7003_v13  ;;  %v1240_v6 = vld [vmem:[#allocation12 + $0x120] sm:$0xff]  ;;  %v1239_v59 = vld [vmem:[#allocation12 + $0x118] sm:$0xff] }
 0x154   :  { %v675_v18 = vadd.f32 %v674_v17, %v6909_v43  ;;  %5341 = vmatprep.mubr.f32.mxu0 %v719_v14  ;;  %v722_v21 = vmax.f32 %v680_v15, 0.0  ;;  %v502_v28 = vadd.f32 %v5240_v11, %v6938_v19  ;;  %v6974_v7 = vmax.f32 %v487_v60, 0.0  ;;  %v6994_v11 = vpop.permute.xlu1 %172  ;;  %v1245_v60 = vld [vmem:[#allocation12 + $0x148] sm:$0xff] }
 0x155   :  { %v496_v16 = vpop.f32.mrf.mxu0  ;;  %v5293_v22 = vpop.f32.mrf.mxu1  ;;  %5342 = vmatmul.mubr.f32.gmra.mxu0 %v720_v12  ;;  %8443 = vst [vmem:[#allocation27_spill] sm:$0xff] %v6994_v11  ;;  %v7008_v14 = vmax.f32 %v462_v51, 0.0  ;;  %v7022_v17 = vmax.f32 %v452_v45, 0.0  ;;  %vm215_vm1 = vcmp.eq.s32.totalorder %v6884_v34, %v6994_v11 }
 0x156   :  { %v721_v24 = vmax.f32 %v675_v18, 0.0  ;;  %v690_v25 = vadd.f32 %v5293_v22, %v6909_v43  ;;  %v497_v46 = vadd.f32 %v6938_v19, %v496_v16  ;;  %v6954_v54 = vmax.f32 %v502_v28, 0.0  ;;  %v7025_v18 = vpop.permute.xlu0 %178 }
 0x157   :  { %v5243_v20 = vpop.f32.mrf.mxu0  ;;  %v684_v27 = vpop.f32.mrf.mxu1  ;;  %8446 = vst [vmem:[#allocation30_spill] sm:$0xff] %v7025_v18  ;;  %vm217_vm4 = vcmp.eq.s32.totalorder %v6884_v34, %v7025_v18 }
 0x158   :  { %v512_v23 = vadd.f32 %v5243_v20, %v6938_v19  ;;  %v685_v31 = vadd.f32 %v684_v27, %v6909_v43  ;;  %5344 = vmatprep.mubr.f32.mxu0 %v721_v24  ;;  %v724_v32 = vmax.f32 %v690_v25, 0.0  ;;  %v6960_v61 = vmax.f32 %v497_v46, 0.0  ;;  %v7016_v16 = vpop.permute.xlu1 %175  ;;  %v1250_v46 = vld [vmem:[#allocation12 + $0x170] sm:$0xff] }
 0x159   :  { %v506_v26 = vpop.f32.mrf.mxu0  ;;  %v5296_v33 = vpop.f32.mrf.mxu1  ;;  %5345 = vmatmul.mubr.f32.gmra.mxu0 %v722_v21  ;;  %8445 = vst [vmem:[#allocation29_spill] sm:$0xff] %v7016_v16  ;;  %v7034_v21 = vmax.f32 %v442_v42, 0.0  ;;  %vm216_vm3 = vcmp.eq.s32.totalorder %v6884_v34, %v7016_v16 }
 0x15a   :  { %v6943_v29 = vmax.f32 %v512_v23, 0.0  ;;  %v507_v30 = vadd.f32 %v6938_v19, %v506_v26  ;;  %v723_v49 = vmax.f32 %v685_v31, 0.0  ;;  %v700_v50 = vadd.f32 %v5296_v33, %v6909_v43  ;;  %v7043_v23 = vpop.permute.xlu0 %184  ;;  %v1251_v33 = vld [vmem:[#allocation12 + $0x178] sm:$0xff] }
 0x15b   :  { %v694_v52 = vpop.f32.mrf.mxu1  ;;  %8448 = vst [vmem:[#allocation32_spill] sm:$0xff] %v7043_v23  ;;  %vm8393_vm6 = vcmp.eq.s32.totalorder %v6884_v34, %v7043_v23 }
 0x15c   :  { %v6948_v47 = vmax.f32 %v507_v30, 0.0  ;;  %5356 = vmatprep.subr.mxu1 %v6943_v29  ;;  %v695_v55 = vadd.f32 %v694_v52, %v6909_v43  ;;  %5347 = vmatprep.mubr.f32.mxu0 %v723_v49  ;;  %v726_v57 = vmax.f32 %v700_v50, 0.0  ;;  %v7036_v38 = vpop.permute.xlu1 %181  ;;  %v1249_v50 = vld [vmem:[#allocation12 + $0x168] sm:$0xff]  ;;  %v1248_v52 = vld [vmem:[#allocation12 + $0x160] sm:$0xff] }
 0x15d   :  { %5357 = vmatpush3.msra.mxu1 %v6943_v29  ;;  %v5299_v58 = vpop.f32.mrf.mxu1  ;;  %5348 = vmatmul.mubr.f32.gmra.mxu0 %v724_v32  ;;  %8447 = vst [vmem:[#allocation31_spill] sm:$0xff] %v7036_v38  ;;  %vm218_vm5 = vcmp.eq.s32.totalorder %v6884_v34, %v7036_v38  ;;  %v7156_v32 = vld [vmem:[#allocation6] ss:$0 sm:$0xff] }
 0x15e   :  { %5358 = vmatprep.subr.mxu1 %v6948_v47  ;;  %v725_v62 = vmax.f32 %v695_v55, 0.0  ;;  %v710_v63 = vadd.f32 %v5299_v58, %v6909_v43  ;;  %v1247_v55 = vld [vmem:[#allocation12 + $0x158] sm:$0xff] }
 0x15f   :  { %5359 = vmatpush3.msra.mxu1 %v6948_v47  ;;  %v704_v1 = vpop.f32.mrf.mxu1 }
 0x160   :  { %5360 = vmatprep.subr.mxu1 %v6954_v54  ;;  %v705_v4 = vadd.f32 %v704_v1, %v6909_v43  ;;  %5350 = vmatprep.mubr.f32.mxu0 %v725_v62  ;;  %v728_v5 = vmax.f32 %v710_v63, 0.0  ;;  %v467_v43 = vadd.f32 %v6938_v19, %v6922_v56  ;;  %v457_v56 = vadd.f32 %v6938_v19, %v6916_v48  ;;  %v1244_v62 = vld [vmem:[#allocation12 + $0x140] sm:$0xff]  ;;  %v1243_v1 = vld [vmem:[#allocation12 + $0x138] sm:$0xff] }
 0x161   :  { %5361 = vmatpush3.msra.mxu1 %v6954_v54  ;;  %5351 = vmatmul.mubr.f32.gmra.mxu0 %v726_v57  ;;  %v447_v48 = vadd.f32 %v6938_v19, %v6911_v44  ;;  %v437_v44 = vadd.f32 %v6938_v19, %v6901_v40  ;;  %v7052_v40 = vpop.permute.xlu1 %187  ;;  %v7064_v19 = vpop.permute.xlu0 %190  ;;  %v1246_v57 = vld [vmem:[#allocation12 + $0x150] sm:$0xff] }
 0x162   :  { %5362 = vmatprep.subr.mxu1 %v6960_v61  ;;  %v727_v8 = vmax.f32 %v705_v4, 0.0  ;;  %v7000_v12 = vmax.f32 %v467_v43, 0.0  ;;  %v7014_v15 = vmax.f32 %v457_v56, 0.0  ;;  %8449 = vst [vmem:[#allocation33_spill] sm:$0xff] %v7052_v40  ;;  %8450 = vst [vmem:[#allocation34_spill] sm:$0xff] %v7064_v19  ;;  %vm8394_vm7 = vcmp.eq.s32.totalorder %v6884_v34, %v7052_v40 }
 0x163   :  { %5363 = vmatpush3.msra.mxu1 %v6960_v61  ;;  %v7030_v20 = vmax.f32 %v447_v48, 0.0  ;;  %v7040_v22 = vmax.f32 %v437_v44, 0.0  ;;  %vm8395_vm8 = vcmp.eq.s32.totalorder %v6884_v34, %v7064_v19 }
 0x164   :  { %5364 = vmatprep.subr.mxu1 %v6967_v3  ;;  %5353 = vmatprep.mubr.f32.mxu0 %v727_v8 }
 0x165   :  { %5365 = vmatpush3.msra.mxu1 %v6967_v3  ;;  %5354 = vmatmul.mubr.f32.gmra.mxu0 %v728_v5  ;;  %v7076_v24 = vpop.permute.xlu1 %193  ;;  %v7086_v25 = vpop.permute.xlu0 %196  ;;  %v1241_v5 = vld [vmem:[#allocation12 + $0x128] sm:$0xff] }
 0x166   :  { %5366 = vmatprep.subr.mxu1 %v6974_v7  ;;  %8451 = vst [vmem:[#allocation35_spill] sm:$0xff] %v7076_v24  ;;  %8452 = vst [vmem:[#allocation36_spill] sm:$0xff] %v7086_v25  ;;  %vm8396_vm9 = vcmp.eq.s32.totalorder %v6884_v34, %v7076_v24  ;;  %vm8397_vm10 = vcmp.eq.s32.totalorder %v6884_v34, %v7086_v25 }
 0x167   :  { %5367 = vmatpush3.msra.mxu1 %v6974_v7 }
 0x168   :  { %5368 = vmatprep.subr.mxu1 %v6980_v9 }
 0x169   :  { %5369 = vmatpush3.msra.mxu1 %v6980_v9  ;;  %v7096_v26 = vpop.permute.xlu1 %199  ;;  %v7108_v27 = vpop.permute.xlu0 %202 }
 0x16a   :  { %5370 = vmatprep.subr.mxu1 %v6986_v0  ;;  %8453 = vst [vmem:[#allocation37_spill] sm:$0xff] %v7096_v26  ;;  %8454 = vst [vmem:[#allocation38_spill] sm:$0xff] %v7108_v27  ;;  %vm8381_vm11 = vcmp.eq.s32.totalorder %v6884_v34, %v7096_v26  ;;  %vm8337_vm12 = vcmp.eq.s32.totalorder %v6884_v34, %v7108_v27 }
 0x16b   :  { %5371 = vmatpush3.msra.mxu1 %v6986_v0 }
 0x16c   :  { %5372 = vmatprep.subr.mxu1 %v6992_v10 }
 0x16d   :  { %5373 = vmatpush3.msra.mxu1 %v6992_v10  ;;  %v7120_v28 = vpop.permute.xlu1 %205  ;;  %v7130_v30 = vpop.permute.xlu0 %208 }
 0x16e   :  { %5374 = vmatprep.subr.mxu1 %v7000_v12  ;;  %8455 = vst [vmem:[#allocation39_spill] sm:$0xff] %v7120_v28  ;;  %8456 = vst [vmem:[#allocation40_spill] sm:$0xff] %v7130_v30  ;;  %vm8380_vm13 = vcmp.eq.s32.totalorder %v6884_v34, %v7120_v28  ;;  %vm8379_vm14 = vcmp.eq.s32.totalorder %v6884_v34, %v7130_v30 }
 0x16f   :  { %5375 = vmatpush3.msra.mxu1 %v7000_v12 }
 0x170   :  { %5376 = vmatprep.subr.mxu1 %v7008_v14 }
 0x171   :  { %5377 = vmatpush3.msra.mxu1 %v7008_v14  ;;  %v7140_v31 = vpop.permute.xlu1 %211 }
 0x172   :  { %5378 = vmatprep.subr.mxu1 %v7014_v15  ;;  %8457 = vst [vmem:[#allocation41_spill] sm:$0xff] %v7140_v31  ;;  %vm8378_vm15 = vcmp.eq.s32.totalorder %v6884_v34, %v7140_v31 }
 0x173   :  { %5379 = vmatpush3.msra.mxu1 %v7014_v15 }
 0x174   :  { %5380 = vmatprep.subr.mxu1 %v7022_v17 }
 0x175   :  { %5381 = vmatpush3.msra.mxu1 %v7022_v17 }
 0x176   :  { %5382 = vmatprep.subr.mxu1 %v7030_v20 }
 0x177   :  { %5383 = vmatpush3.msra.mxu1 %v7030_v20 }
 0x178   :  { %5384 = vmatprep.subr.mxu1 %v7034_v21 }
 0x179   :  { %5385 = vmatpush3.msra.mxu1 %v7034_v21 }
 0x17a   :  { %5386 = vmatprep.subr.mxu1 %v7040_v22 }
 0x17b   :  { %5387 = vmatpush3.msra.mxu1 %v7040_v22 }
 0x17c   :  { %5389 = vmatmul.mubr.msk.f32.vlgmr.msra.gmra.mxu1 %vm214_vm2, %v8338_v36  ;;  %5468 = vmatprep.subr.mxu1 %v1251_v33 }
 0x17d   :  { %5391 = vmatprep.mubr.msk.f32.mxu1 %vm215_vm1, %v8338_v36  ;;  %5469 = vmatpush3.msra.mxu1 %v1251_v33 }
 0x17e   :  { %5470 = vmatprep.subr.mxu1 %v1250_v46 }
 0x17f   :  { %5471 = vmatpush3.msra.mxu1 %v1250_v46 }
 0x180   :  { %5392 = vmatmul.mubr.msk.f32.gmra.mxu1 %vm216_vm3, %v8338_v36  ;;  %5472 = vmatprep.subr.mxu1 %v1249_v50 }
 0x181   :  { %5394 = vmatprep.mubr.msk.f32.mxu1 %vm217_vm4, %v8338_v36  ;;  %5473 = vmatpush3.msra.mxu1 %v1249_v50 }
 0x182   :  { %5474 = vmatprep.subr.mxu1 %v1248_v52 }
 0x183   :  { %5475 = vmatpush3.msra.mxu1 %v1248_v52 }
 0x184   :  { %5395 = vmatmul.mubr.msk.f32.gmra.mxu1 %vm218_vm5, %v8338_v36  ;;  %5476 = vmatprep.subr.mxu1 %v1247_v55 }
 0x185   :  { %5397 = vmatprep.mubr.msk.f32.mxu1 %vm8393_vm6, %v8338_v36  ;;  %5477 = vmatpush3.msra.mxu1 %v1247_v55 }
 0x186   :  { %5478 = vmatprep.subr.mxu1 %v1246_v57 }
 0x187   :  { %5479 = vmatpush3.msra.mxu1 %v1246_v57 }
 0x188   :  { %5398 = vmatmul.mubr.msk.f32.gmra.mxu1 %vm8394_vm7, %v8338_v36  ;;  %5480 = vmatprep.subr.mxu1 %v1245_v60 }
 0x189   :  { %5400 = vmatprep.mubr.msk.f32.mxu1 %vm8395_vm8, %v8338_v36  ;;  %5481 = vmatpush3.msra.mxu1 %v1245_v60 }
 0x18a   :  { %5482 = vmatprep.subr.mxu1 %v1244_v62 }
 0x18b   :  { %5483 = vmatpush3.msra.mxu1 %v1244_v62 }
 0x18c   :  { %5401 = vmatmul.mubr.msk.f32.gmra.mxu1 %vm8396_vm9, %v8338_v36  ;;  %5484 = vmatprep.subr.mxu1 %v1243_v1 }
 0x18d   :  { %5403 = vmatprep.mubr.msk.f32.mxu1 %vm8397_vm10, %v8338_v36  ;;  %5485 = vmatpush3.msra.mxu1 %v1243_v1 }
 0x18e   :  { %5486 = vmatprep.subr.mxu1 %v1242_v2 }
 0x18f   :  { %5487 = vmatpush3.msra.mxu1 %v1242_v2 }
 0x190   :  { %5404 = vmatmul.mubr.msk.f32.gmra.mxu1 %vm8381_vm11, %v8338_v36  ;;  %5488 = vmatprep.subr.mxu1 %v1241_v5 }
 0x191   :  { %5406 = vmatprep.mubr.msk.f32.mxu1 %vm8337_vm12, %v8338_v36  ;;  %vm283_vm12 = vcmp.eq.s32.totalorder %v6894_v37, %v7156_v32  ;;  %5489 = vmatpush3.msra.mxu1 %v1241_v5 }
 0x192   :  { %5444 = vmatprep.mubr.msk.f32.mxu0 %vm283_vm12, %v8338_v36  ;;  %5490 = vmatprep.subr.mxu1 %v1240_v6 }
 0x193   :  { %5491 = vmatpush3.msra.mxu1 %v1240_v6 }
 0x194   :  { %5407 = vmatmul.mubr.msk.f32.gmra.mxu1 %vm8380_vm13, %v8338_v36  ;;  %5492 = vmatprep.subr.mxu1 %v1239_v59 }
 0x195   :  { %5409 = vmatprep.mubr.msk.f32.mxu1 %vm8379_vm14, %v8338_v36  ;;  %5493 = vmatpush3.msra.mxu1 %v1239_v59  ;;  %v7189_v59 = vsub.s32 1, %v6894_v37 }
 0x197   :  { %8458 = vst [vmem:[#allocation42_spill] sm:$0xff] %v7189_v59  ;;  %v7193_v28 = vrot.slane %v6903_v41, %v7189_v59 }
 0x198   :  { %5410 = vmatmul.mubr.msk.f32.gmra.mxu1 %vm8378_vm15, %v8338_v36 }
 0x209   :  { %v7164_v49 = vpop.f32.mrf.mxu0 }
 0x20b   :  { %v7166_v53 = vpop.f32.mrf.mxu0 }
 0x20d   :  { %v7168_v58 = vpop.f32.mrf.mxu0 }
 0x20f   :  { %v7170_v63 = vpop.f32.mrf.mxu0 }
 0x211   :  { %v7172_v4 = vpop.f32.mrf.mxu0 }
 0x213   :  { %v7174_v8 = vpop.f32.mrf.mxu0 }
 0x215   :  { %v5343_v43 = vpop.f32.mrf.mxu0 }
 0x217   :  { %v846_v51 = vpop.f32.mrf.mxu0 }
 0x219   :  { %v5346_v56 = vpop.f32.mrf.mxu0 }
 0x21b   :  { %v856_v42 = vpop.f32.mrf.mxu0 }
 0x21d   :  { %v5349_v46 = vpop.f32.mrf.mxu0 }
 0x21e   :  { %v872_v39 = vadd.f32 %v5349_v46, %v7193_v28 }
 0x21f   :  { %v866_v55 = vpop.f32.mrf.mxu0 }
 0x221   :  { %v5352_v62 = vpop.f32.mrf.mxu0 }
 0x222   :  { %v882_v19 = vadd.f32 %v5352_v62, %v7193_v28  ;;  %v7227_v62 = vadd.s32 16, %v6894_v37 }
 0x223   :  { %v876_v5 = vpop.f32.mrf.mxu0 }
 0x224   :  { %v877_v18 = vadd.f32 %v876_v5, %v7193_v28  ;;  %vm8382_vm14 = vcmp.eq.s32.totalorder %v7227_v62, %v7156_v32  ;;  %v7268_v5 = vadd.s32 56, %v6894_v37 }
 0x225   :  { %v5355_v36 = vpop.f32.mrf.mxu0 }
 0x226   :  { %v892_v25 = vadd.f32 %v5355_v36, %v7193_v28  ;;  %v867_v36 = vadd.f32 %v866_v55, %v7193_v28 }
 0x227   :  { %v886_v27 = vpop.f32.mrf.mxu0 }
 0x228   :  { %v887_v40 = vadd.f32 %v886_v27, %v7193_v28 }
 0x23c   :  { %v7176_v45 = vpop.f32.mrf.mxu1 }
 0x23e   :  { %v7178_v48 = vpop.f32.mrf.mxu1 }
 0x240   :  { %v7180_v44 = vpop.f32.mrf.mxu1 }
 0x242   :  { %v7182_v33 = vpop.f32.mrf.mxu1 }
 0x244   :  { %v7184_v50 = vpop.f32.mrf.mxu1 }
 0x246   :  { %v7186_v52 = vpop.f32.mrf.mxu1 }
 0x248   :  { %v5399_v57 = vpop.f32.mrf.mxu1 }
 0x24a   :  { %v991_v60 = vpop.f32.mrf.mxu1 }
 0x24c   :  { %v5402_v1 = vpop.f32.mrf.mxu1 }
 0x24e   :  { %v1001_v2 = vpop.f32.mrf.mxu1 }
 0x250   :  { %v5405_v6 = vpop.f32.mrf.mxu1 }
 0x251   :  { %v1017_v35 = vadd.f32 %v5405_v6, %v872_v39  ;;  %v847_v39 = vadd.f32 %v846_v51, %v7193_v28  ;;  %v832_v51 = vadd.f32 %v7168_v58, %v7193_v28  ;;  %v817_v58 = vadd.f32 %v7166_v53, %v7193_v28 }
 0x252   :  { %v1011_v31 = vpop.f32.mrf.mxu1  ;;  %v7232_v53 = vadd.s32 24, %v6894_v37  ;;  %v7273_v6 = vadd.s32 64, %v6894_v37 }
 0x253   :  { %v977_v46 = vadd.f32 %v7180_v44, %v832_v51  ;;  %v1423_v51 = vld [vmem:[#allocation12 + $0x1a8] sm:$0xff] }
 0x254   :  { %v5408_v30 = vpop.f32.mrf.mxu1  ;;  %vm8385_vm13 = vcmp.eq.s32.totalorder %v7232_v53, %v7156_v32 }
 0x255   :  { %v1027_v16 = vadd.f32 %v5408_v30, %v882_v19 }
 0x256   :  { %v1021_v26 = vpop.f32.mrf.mxu1 }
 0x257   :  { %v1022_v41 = vadd.f32 %v1021_v26, %v877_v18  ;;  %v1053_v34 = vmax.f32 %v1027_v16, 0.0  ;;  %v992_v26 = vadd.f32 %v991_v60, %v847_v39  ;;  %v1043_v60 = vmax.f32 %v977_v46, 0.0  ;;  %v1432_v39 = vld [vmem:[#allocation12 + $0x1f0] sm:$0xff] }
 0x258   :  { %v5411_v24 = vpop.f32.mrf.mxu1 }
 0x259   :  { %v1037_v23 = vadd.f32 %v5411_v24, %v892_v25  ;;  %v862_v24 = vadd.f32 %v5346_v56, %v7193_v28  ;;  %v1012_v25 = vadd.f32 %v1011_v31, %v867_v36  ;;  %v1052_v27 = vmax.f32 %v1022_v41, 0.0 }
 0x25a   :  { %v1031_v38 = vpop.f32.mrf.mxu1  ;;  %v7291_v41 = vadd.s32 80, %v6894_v37  ;;  %v7304_v36 = vadd.s32 88, %v6894_v37 }
 0x25b   :  { %v1055_v11 = vmax.f32 %v1037_v23, 0.0  ;;  %v1032_v13 = vadd.f32 %v1031_v38, %v887_v40  ;;  %v857_v38 = vadd.f32 %v856_v42, %v7193_v28  ;;  %v1007_v23 = vadd.f32 %v5402_v1, %v862_v24 }
 0x25c   :  { %v1051_v40 = vmax.f32 %v1017_v35, 0.0  ;;  %v1050_v18 = vmax.f32 %v1012_v25, 0.0  ;;  %v837_v35 = vadd.f32 %v7174_v8, %v7193_v28  ;;  %v1046_v42 = vmax.f32 %v992_v26, 0.0  ;;  %v1428_v26 = vld [vmem:[#allocation12 + $0x1d0] sm:$0xff] }
 0x25d   :  { %v1054_v59 = vmax.f32 %v1032_v13, 0.0  ;;  %5412 = vmatprep.subr.mxu0 %v1055_v11  ;;  %v1002_v13 = vadd.f32 %v1001_v2, %v857_v38  ;;  %v1049_v19 = vmax.f32 %v1007_v23, 0.0  ;;  %v822_v8 = vadd.f32 %v7164_v49, %v7193_v28  ;;  %v1238_v23 = vld [vmem:[#allocation12 + $0x110] sm:$0xff] }
 0x25e   :  { %5413 = vmatpush3.msra.mxu0 %v1055_v11  ;;  %v852_v11 = vadd.f32 %v5343_v43, %v7193_v28  ;;  %v982_v56 = vadd.f32 %v7186_v52, %v837_v35  ;;  %v7224_v49 = vadd.s32 8, %v6894_v37  ;;  %v7250_v1 = vadd.s32 40, %v6894_v37  ;;  %5494 = vmatprep.subr.mxu1 %v1238_v23  ;;  %v1426_v35 = vld [vmem:[#allocation12 + $0x1c0] sm:$0xff] }
 0x25f   :  { %5414 = vmatprep.subr.mxu0 %v1054_v59  ;;  %v1048_v30 = vmax.f32 %v1002_v13, 0.0  ;;  %v967_v52 = vadd.f32 %v7176_v45, %v822_v8  ;;  %v7237_v45 = vadd.s32 32, %v6894_v37  ;;  %v7255_v2 = vadd.s32 48, %v6894_v37  ;;  %5495 = vmatpush3.msra.mxu1 %v1238_v23  ;;  %v1657_v13 = vld [vmem:[#allocation12 + $0x278] sm:$0xff] }
 0x260   :  { %5415 = vmatpush3.msra.mxu0 %v1054_v59  ;;  %v997_v16 = vadd.f32 %v5399_v57, %v852_v11  ;;  %v1044_v57 = vmax.f32 %v982_v56, 0.0  ;;  %vm8383_vm15 = vcmp.eq.s32.totalorder %v7224_v49, %v7156_v32  ;;  %v7286_v59 = vadd.s32 72, %v6894_v37  ;;  %v1236_v11 = vld [vmem:[#allocation12 + $0x100] sm:$0xff] }
 0x261   :  { %5416 = vmatprep.subr.mxu0 %v1053_v34  ;;  %vm8384_vm11 = vcmp.eq.s32.totalorder %v7237_v45, %v7156_v32  ;;  %v7309_v24 = vadd.s32 96, %v6894_v37  ;;  %v7322_v25 = vadd.s32 104, %v6894_v37  ;;  %v7340_v38 = vadd.s32 120, %v6894_v37  ;;  %v1422_v56 = vld [vmem:[#allocation12 + $0x1a0] sm:$0xff] }
 0x262   :  { %5417 = vmatpush3.msra.mxu0 %v1053_v34  ;;  %v842_v34 = vadd.f32 %v7172_v4, %v7193_v28  ;;  %v1047_v43 = vmax.f32 %v997_v16, 0.0  ;;  %v827_v4 = vadd.f32 %v7170_v63, %v7193_v28  ;;  %v962_v63 = vadd.f32 %v7178_v48, %v817_v58  ;;  %v1431_v16 = vld [vmem:[#allocation12 + $0x1e8] sm:$0xff] }
 0x263   :  { %5418 = vmatprep.subr.mxu0 %v1052_v27  ;;  %v8459_v48 = vmov 1.0  }
 0x264   :  { %5419 = vmatpush3.msra.mxu0 %v1052_v27  ;;  %v987_v31 = vadd.f32 %v7184_v50, %v842_v34  ;;  %v972_v50 = vadd.f32 %v7182_v33, %v827_v4  ;;  %v1041_v33 = vmax.f32 %v967_v52, 0.0  ;;  %v1040_v28 = vmax.f32 %v962_v63, 0.0  ;;  %v1429_v34 = vld [vmem:[#allocation12 + $0x1d8] sm:$0xff] }
 0x265   :  { %5420 = vmatprep.subr.mxu0 %v1051_v40  ;;  %v7327_v27 = vadd.s32 112, %v6894_v37 }
 0x266   :  { %5421 = vmatpush3.msra.mxu0 %v1051_v40  ;;  %v1045_v55 = vmax.f32 %v987_v31, 0.0  ;;  %v1042_v44 = vmax.f32 %v972_v50, 0.0  ;;  %v1237_v40 = vld [vmem:[#allocation12 + $0x108] sm:$0xff]  ;;  %v1425_v31 = vld [vmem:[#allocation12 + $0x1b8] sm:$0xff] }
 0x267   :  { %5422 = vmatprep.subr.mxu0 %v1050_v18  ;;  %5496 = vmatprep.subr.mxu1 %v1237_v40 }
 0x268   :  { %5423 = vmatpush3.msra.mxu0 %v1050_v18  ;;  %5497 = vmatpush3.msra.mxu1 %v1237_v40  ;;  %v1433_v18 = vld [vmem:[#allocation12 + $0x1f8] sm:$0xff]  ;;  %v1654_v40 = vld [vmem:[#allocation12 + $0x260] sm:$0xff] }
 0x269   :  { %5424 = vmatprep.subr.mxu0 %v1049_v19  ;;  %5498 = vmatprep.subr.mxu1 %v1236_v11 }
 0x26a   :  { %5425 = vmatpush3.msra.mxu0 %v1049_v19  ;;  %5499 = vmatpush3.msra.mxu1 %v1236_v11  ;;  %v1430_v19 = vld [vmem:[#allocation12 + $0x1e0] sm:$0xff] }
 0x26b   :  { %5426 = vmatprep.subr.mxu0 %v1048_v30  ;;  %5580 = vmatprep.subr.mxu1 %v1657_v13 }
 0x26c   :  { %5427 = vmatpush3.msra.mxu0 %v1048_v30  ;;  %v1427_v30 = vld [vmem:[#allocation12 + $0x1c8] sm:$0xff] }
 0x26d   :  { %5428 = vmatprep.subr.mxu0 %v1047_v43 }
 0x26e   :  { %5429 = vmatpush3.msra.mxu0 %v1047_v43  ;;  %v1424_v43 = vld [vmem:[#allocation12 + $0x1b0] sm:$0xff] }
 0x26f   :  { %5430 = vmatprep.subr.mxu0 %v1046_v42 }
 0x270   :  { %5431 = vmatpush3.msra.mxu0 %v1046_v42  ;;  %v7358_v42 = vstv %s1201_s5 }
 0x271   :  { %5432 = vmatprep.subr.mxu0 %v1045_v55  ;;  %v1203_v46 = vmul.f32 %v7358_v42, %v7040_v22  ;;  %v1205_v52 = vmul.f32 %v7358_v42, %v7030_v20  ;;  %v1206_v63 = vmul.f32 %v7358_v42, %v7022_v17  ;;  %v1655_v22 = vld [vmem:[#allocation12 + $0x268] sm:$0xff]  ;;  %v1208_v20 = vmul.f32 %v7358_v42, %v7008_v14 }
 0x272   :  { %5433 = vmatpush3.msra.mxu0 %v1045_v55  ;;  %v1204_v55 = vmul.f32 %v7358_v42, %v7034_v21  ;;  %v1207_v21 = vmul.f32 %v7358_v42, %v7014_v15  ;;  %v1210_v15 = vmul.f32 %v7358_v42, %v6992_v10 }
 0x273   :  { %5434 = vmatprep.subr.mxu0 %v1044_v57 }
 0x274   :  { %5435 = vmatpush3.msra.mxu0 %v1044_v57 }
 0x275   :  { %5436 = vmatprep.subr.mxu0 %v1043_v60 }
 0x276   :  { %5437 = vmatpush3.msra.mxu0 %v1043_v60  ;;  %v1656_v60 = vld [vmem:[#allocation12 + $0x270] sm:$0xff] }
 0x277   :  { %5438 = vmatprep.subr.mxu0 %v1042_v44 }
 0x278   :  { %5439 = vmatpush3.msra.mxu0 %v1042_v44 }
 0x279   :  { %5440 = vmatprep.subr.mxu0 %v1041_v33 }
 0x27a   :  { %5441 = vmatpush3.msra.mxu0 %v1041_v33 }
 0x27b   :  { %5442 = vmatprep.subr.mxu0 %v1040_v28 }
 0x27c   :  { %5443 = vmatpush3.msra.mxu0 %v1040_v28 }
 0x27d   :  { %5445 = vmatmul.mubr.msk.f32.vlgmr.msra.gmra.mxu0 %vm8383_vm15, %v8459_v48  ;;  %vm8386_vm15 = vcmp.eq.s32.totalorder %v7255_v2, %v7156_v32  ;;  %5524 = vmatprep.subr.mxu0 %v1433_v18 }
 0x27e   :  { %5447 = vmatprep.mubr.msk.f32.mxu0 %vm8382_vm14, %v8459_v48  ;;  %vm8387_vm14 = vcmp.eq.s32.totalorder %v7250_v1, %v7156_v32  ;;  %5525 = vmatpush3.msra.mxu0 %v1433_v18  ;;  %v1653_v18 = vld [vmem:[#allocation12 + $0x258] sm:$0xff] }
 0x27f   :  { %5526 = vmatprep.subr.mxu0 %v1432_v39 }
 0x280   :  { %5527 = vmatpush3.msra.mxu0 %v1432_v39 }
 0x281   :  { %5448 = vmatmul.mubr.msk.f32.gmra.mxu0 %vm8385_vm13, %v8459_v48  ;;  %vm8388_vm13 = vcmp.eq.s32.totalorder %v7273_v6, %v7156_v32  ;;  %5528 = vmatprep.subr.mxu0 %v1431_v16 }
 0x282   :  { %5450 = vmatprep.mubr.msk.f32.mxu0 %vm8384_vm11, %v8459_v48  ;;  %vm8389_vm11 = vcmp.eq.s32.totalorder %v7268_v5, %v7156_v32  ;;  %5529 = vmatpush3.msra.mxu0 %v1431_v16  ;;  %v1209_v16 = vmul.f32 %v7358_v42, %v7000_v12  ;;  %v1212_v12 = vmul.f32 %v7358_v42, %v6980_v9 }
 0x283   :  { %5530 = vmatprep.subr.mxu0 %v1430_v19 }
 0x284   :  { %5531 = vmatpush3.msra.mxu0 %v1430_v19  ;;  %v1652_v19 = vld [vmem:[#allocation12 + $0x250] sm:$0xff] }
 0x285   :  { %5451 = vmatmul.mubr.msk.f32.gmra.mxu0 %vm8387_vm14, %v8459_v48  ;;  %vm8390_vm14 = vcmp.eq.s32.totalorder %v7291_v41, %v7156_v32  ;;  %5532 = vmatprep.subr.mxu0 %v1429_v34 }
 0x286   :  { %5453 = vmatprep.mubr.msk.f32.mxu0 %vm8386_vm15, %v8459_v48  ;;  %vm8391_vm15 = vcmp.eq.s32.totalorder %v7286_v59, %v7156_v32  ;;  %5533 = vmatpush3.msra.mxu0 %v1429_v34 }
 0x287   :  { %5534 = vmatprep.subr.mxu0 %v1428_v26 }
 0x288   :  { %5535 = vmatpush3.msra.mxu0 %v1428_v26  ;;  %v1651_v26 = vld [vmem:[#allocation12 + $0x248] sm:$0xff] }
 0x289   :  { %5454 = vmatmul.mubr.msk.f32.gmra.mxu0 %vm8389_vm11, %v8459_v48  ;;  %vm8392_vm11 = vcmp.eq.s32.totalorder %v7309_v24, %v7156_v32  ;;  %5536 = vmatprep.subr.mxu0 %v1427_v30 }
 0x28a   :  { %5456 = vmatprep.mubr.msk.f32.mxu0 %vm8388_vm13, %v8459_v48  ;;  %vm294_vm13 = vcmp.eq.s32.totalorder %v7304_v36, %v7156_v32  ;;  %5537 = vmatpush3.msra.mxu0 %v1427_v30  ;;  %v3612_v36 = vld [vmem:[#allocation12 + $0x5b0] sm:$0xff] }
 0x28b   :  { %5538 = vmatprep.subr.mxu0 %v1426_v35 }
 0x28c   :  { %5539 = vmatpush3.msra.mxu0 %v1426_v35 }
 0x28d   :  { %5457 = vmatmul.mubr.msk.f32.gmra.mxu0 %vm8391_vm15, %v8459_v48  ;;  %vm297_vm15 = vcmp.eq.s32.totalorder %v7327_v27, %v7156_v32  ;;  %5540 = vmatprep.subr.mxu0 %v1425_v31  ;;  %v3390_v27 = vstv %s4491_s20 }
 0x28e   :  { %5459 = vmatprep.mubr.msk.f32.mxu0 %vm8390_vm14, %v8459_v48  ;;  %vm296_vm14 = vcmp.eq.s32.totalorder %v7322_v25, %v7156_v32  ;;  %5541 = vmatpush3.msra.mxu0 %v1425_v31  ;;  %v1211_v31 = vmul.f32 %v7358_v42, %v6986_v0  ;;  %v1214_v0 = vmul.f32 %v7358_v42, %v6967_v3  ;;  %v3610_v25 = vld [vmem:[#allocation12 + $0x5a0] sm:$0xff] }
 0x28f   :  { %5542 = vmatprep.subr.mxu0 %v1424_v43 }
 0x290   :  { %5543 = vmatpush3.msra.mxu0 %v1424_v43  ;;  %v1650_v43 = vld [vmem:[#allocation12 + $0x240] sm:$0xff] }
 0x291   :  { %5460 = vmatmul.mubr.msk.f32.gmra.mxu0 %vm294_vm13, %v8459_v48  ;;  %5544 = vmatprep.subr.mxu0 %v1423_v51 }
 0x292   :  { %5462 = vmatprep.mubr.msk.f32.mxu0 %vm8392_vm11, %v8459_v48  ;;  %vm298_vm11 = vcmp.eq.s32.totalorder %v7340_v38, %v7156_v32  ;;  %5545 = vmatpush3.msra.mxu0 %v1423_v51 }
 0x293   :  { %5546 = vmatprep.subr.mxu0 %v1422_v56 }
 0x294   :  { %5547 = vmatpush3.msra.mxu0 %v1422_v56  ;;  %v1649_v56 = vld [vmem:[#allocation12 + $0x238] sm:$0xff] }
 0x295   :  { %5463 = vmatmul.mubr.msk.f32.gmra.mxu0 %vm296_vm14, %v8459_v48 }
 0x296   :  { %5465 = vmatprep.mubr.msk.f32.mxu0 %vm297_vm15, %v8459_v48 }
 0x299   :  { %5466 = vmatmul.mubr.msk.f32.gmra.mxu0 %vm298_vm11, %v8459_v48 }
 0x33d   :  { %v5446_v4 = vpop.f32.mrf.mxu0 }
 0x33e   :  { %v1220_v57 = vadd.f32 %v5446_v4, %v1204_v55  ;;  %v1213_v55 = vmul.f32 %v7358_v42, %v6974_v7  ;;  %v1216_v7 = vmul.f32 %v7358_v42, %v6954_v54 }
 0x33f   :  { %v1122_v8 = vpop.f32.mrf.mxu0 }
 0x340   :  { %v1219_v50 = vadd.f32 %v1203_v46, %v1122_v8  ;;  %v1648_v8 = vld [vmem:[#allocation12 + $0x230] sm:$0xff] }
 0x341   :  { %v5449_v58 = vpop.f32.mrf.mxu0 }
 0x342   :  { %5500 = vmatprep.mubr.f32.mxu1 %v1219_v50  ;;  %v1222_v28 = vadd.f32 %v5449_v58, %v1206_v63  ;;  %v1646_v63 = vld [vmem:[#allocation12 + $0x220] sm:$0xff] }
 0x343   :  { %v1132_v44 = vpop.f32.mrf.mxu0  ;;  %5501 = vmatmul.mubr.f32.vlgmr.msra.gmra.mxu1 %v1220_v57  ;;  %v1647_v57 = vld [vmem:[#allocation12 + $0x228] sm:$0xff] }
 0x344   :  { %v1221_v33 = vadd.f32 %v1205_v52, %v1132_v44  ;;  %5581 = vmatpush3.msra.mxu1 %v1657_v13 }
 0x345   :  { %v5452_v23 = vpop.f32.mrf.mxu0  ;;  %5582 = vmatprep.subr.mxu1 %v1656_v60 }
 0x346   :  { %5503 = vmatprep.mubr.f32.mxu1 %v1221_v33  ;;  %5583 = vmatpush3.msra.mxu1 %v1656_v60  ;;  %v1224_v13 = vadd.f32 %v5452_v23, %v1208_v20  ;;  %v1215_v60 = vmul.f32 %v7358_v42, %v6960_v61  ;;  %v1645_v33 = vld [vmem:[#allocation12 + $0x218] sm:$0xff]  ;;  %v1217_v23 = vmul.f32 %v7358_v42, %v6948_v47  ;;  %v1643_v20 = vld [vmem:[#allocation12 + $0x208] sm:$0xff] }
 0x347   :  { %v1142_v11 = vpop.f32.mrf.mxu0  ;;  %5504 = vmatmul.mubr.f32.gmra.mxu1 %v1222_v28  ;;  %5584 = vmatprep.subr.mxu1 %v1655_v22  ;;  %v1218_v61 = vmul.f32 %v7358_v42, %v6943_v29  ;;  %v6450_v47 = vld [vmem:[#allocation9 + $0x8] sm:$0xff]  ;;  %v6451_v29 = vld [vmem:[#allocation9 + $0x10] sm:$0xff]  ;;  %v6452_v42 = vld [vmem:[#allocation9 + $0x18] sm:$0xff] }
 0x348   :  { %v1223_v17 = vadd.f32 %v1207_v21, %v1142_v11  ;;  %5585 = vmatpush3.msra.mxu1 %v1655_v22  ;;  %v1644_v21 = vld [vmem:[#allocation12 + $0x210] sm:$0xff] }
 0x349   :  { %v5455_v39 = vpop.f32.mrf.mxu0  ;;  %5586 = vmatprep.subr.mxu1 %v1654_v40 }
 0x34a   :  { %5506 = vmatprep.mubr.f32.mxu1 %v1223_v17  ;;  %5587 = vmatpush3.msra.mxu1 %v1654_v40  ;;  %v1226_v30 = vadd.f32 %v5455_v39, %v1210_v15  ;;  %v1642_v17 = vld [vmem:[#allocation12 + $0x200] sm:$0xff] }
 0x34b   :  { %v1152_v34 = vpop.f32.mrf.mxu0  ;;  %5507 = vmatmul.mubr.f32.gmra.mxu1 %v1224_v13  ;;  %5588 = vmatprep.subr.mxu1 %v1653_v18  ;;  %v6453_v13 = vld [vmem:[#allocation9 + $0x20] sm:$0xff]  ;;  %v6454_v39 = vld [vmem:[#allocation9 + $0x28] sm:$0xff] }
 0x34c   :  { %v1225_v14 = vadd.f32 %v1209_v16, %v1152_v34  ;;  %5589 = vmatpush3.msra.mxu1 %v1653_v18  ;;  %v6449_v18 = vld [vmem:[#allocation9] sm:$0xff]  ;;  %v6455_v16 = vld [vmem:[#allocation9 + $0x30] sm:$0xff]  ;;  %v6458_v34 = vld [vmem:[#allocation9 + $0x48] sm:$0xff] }
 0x34d   :  { %v5458_v35 = vpop.f32.mrf.mxu0  ;;  %5590 = vmatprep.subr.mxu1 %v1652_v19  ;;  %v6457_v15 = vld [vmem:[#allocation9 + $0x40] sm:$0xff] }
 0x34e   :  { %5509 = vmatprep.mubr.f32.mxu1 %v1225_v14  ;;  %5591 = vmatpush3.msra.mxu1 %v1652_v19  ;;  %v1228_v4 = vadd.f32 %v5458_v35, %v1212_v12  ;;  %v6456_v19 = vld [vmem:[#allocation9 + $0x38] sm:$0xff]  ;;  %v6459_v14 = vld [vmem:[#allocation9 + $0x50] sm:$0xff]  ;;  %v6462_v35 = vld [vmem:[#allocation9 + $0x68] sm:$0xff] }
 0x34f   :  { %v1162_v51 = vpop.f32.mrf.mxu0  ;;  %5510 = vmatmul.mubr.f32.gmra.mxu1 %v1226_v30  ;;  %5592 = vmatprep.subr.mxu1 %v1651_v26  ;;  %v6461_v30 = vld [vmem:[#allocation9 + $0x60] sm:$0xff] }
 0x350   :  { %v1227_v10 = vadd.f32 %v1211_v31, %v1162_v51  ;;  %5593 = vmatpush3.msra.mxu1 %v1651_v26  ;;  %v6460_v26 = vld [vmem:[#allocation9 + $0x58] sm:$0xff]  ;;  %v6463_v31 = vld [vmem:[#allocation9 + $0x70] sm:$0xff]  ;;  %v8460_v12 = vld [vmem:[#allocation23_spill] sm:$0xff] }
 0x351   :  { %v5461_v46 = vpop.f32.mrf.mxu0  ;;  %5594 = vmatprep.subr.mxu1 %v1650_v43  ;;  %v8502_v51 = vld [vmem:[#allocation42_spill] sm:$0xff] }
 0x352   :  { %5512 = vmatprep.mubr.f32.mxu1 %v1227_v10  ;;  %5595 = vmatpush3.msra.mxu1 %v1650_v43  ;;  %v1230_v58 = vadd.f32 %v5461_v46, %v1214_v0  ;;  %v6464_v43 = vld [vmem:[#allocation9 + $0x78] sm:$0xff]  ;;  %v1418_v46 = vld [vmem:[#allocation12 + $0x180] sm:$0xff] }
 0x353   :  { %v1172_v50 = vpop.f32.mrf.mxu0  ;;  %5513 = vmatmul.mubr.f32.gmra.mxu1 %v1228_v4  ;;  %5596 = vmatprep.subr.mxu1 %v1649_v56  ;;  %v1421_v10 = vld [vmem:[#allocation12 + $0x198] sm:$0xff]  ;;  %v1419_v4 = vld [vmem:[#allocation12 + $0x188] sm:$0xff] }
 0x354   :  { %v1229_v9 = vadd.f32 %v1213_v55, %v1172_v50  ;;  %5597 = vmatpush3.msra.mxu1 %v1649_v56  ;;  %5548 = vmatprep.subr.mxu0 %v1421_v10  ;;  %v1420_v56 = vld [vmem:[#allocation12 + $0x190] sm:$0xff]  ;;  %v7397_v55 = vsub.s32 2, %v6894_v37 }
 0x355   :  { %v5464_v52 = vpop.f32.mrf.mxu0  ;;  %5598 = vmatprep.subr.mxu1 %v1648_v8  ;;  %5549 = vmatpush3.msra.mxu0 %v1421_v10 }
 0x356   :  { %5515 = vmatprep.mubr.f32.mxu1 %v1229_v9  ;;  %5599 = vmatpush3.msra.mxu1 %v1648_v8  ;;  %v1232_v22 = vadd.f32 %v5464_v52, %v1216_v7  ;;  %8462 = vst [vmem:[#allocation43_spill] sm:$0xff] %v7397_v55  ;;  %v7399_v8 = vld [vmem:[#allocation13] sm:$0xff] }
 0x357   :  { %v1182_v44 = vpop.f32.mrf.mxu0  ;;  %5516 = vmatmul.mubr.f32.gmra.mxu1 %v1230_v58  ;;  %5600 = vmatprep.subr.mxu1 %v1647_v57  ;;  %v1255_v0 = vrot.slane %v7399_v8, %v7397_v55 }
 0x358   :  { %v1231_v3 = vadd.f32 %v1215_v60, %v1182_v44  ;;  %5601 = vmatpush3.msra.mxu1 %v1647_v57  ;;  %5550 = vmatprep.subr.mxu0 %v1420_v56 }
 0x359   :  { %v5467_v28 = vpop.f32.mrf.mxu0  ;;  %5602 = vmatprep.subr.mxu1 %v1646_v63  ;;  %5551 = vmatpush3.msra.mxu0 %v1420_v56 }
 0x35a   :  { %5518 = vmatprep.mubr.f32.mxu1 %v1231_v3  ;;  %5603 = vmatpush3.msra.mxu1 %v1646_v63  ;;  %v1234_v11 = vadd.f32 %v5467_v28, %v1218_v61 }
 0x35b   :  { %v1192_v40 = vpop.f32.mrf.mxu0  ;;  %5519 = vmatmul.mubr.f32.gmra.mxu1 %v1232_v22  ;;  %5604 = vmatprep.subr.mxu1 %v1645_v33 }
 0x35c   :  { %v1233_v54 = vadd.f32 %v1217_v23, %v1192_v40  ;;  %5605 = vmatpush3.msra.mxu1 %v1645_v33  ;;  %5552 = vmatprep.subr.mxu0 %v1419_v4 }
 0x35d   :  { %5606 = vmatprep.subr.mxu1 %v1644_v21  ;;  %5553 = vmatpush3.msra.mxu0 %v1419_v4 }
 0x35e   :  { %5521 = vmatprep.mubr.f32.mxu1 %v1233_v54  ;;  %5607 = vmatpush3.msra.mxu1 %v1644_v21 }
 0x35f   :  { %5522 = vmatmul.mubr.f32.gmra.mxu1 %v1234_v11  ;;  %5608 = vmatprep.subr.mxu1 %v1643_v20 }
 0x360   :  { %5609 = vmatpush3.msra.mxu1 %v1643_v20  ;;  %5612 = vmatprep.mubr.f32.mxu1 %v6449_v18 }
 0x361   :  { %5610 = vmatprep.subr.mxu1 %v1642_v17  ;;  %5554 = vmatprep.subr.mxu0 %v1418_v46 }
 0x362   :  { %5611 = vmatpush3.msra.mxu1 %v1642_v17  ;;  %5555 = vmatpush3.msra.mxu0 %v1418_v46 }
 0x363   :  { %5613 = vmatmul.mubr.f32.vlgmr.msra.gmra.mxu1 %v6450_v47 }
 0x364   :  { %5615 = vmatprep.mubr.f32.mxu1 %v6451_v29 }
 0x367   :  { %5616 = vmatmul.mubr.f32.gmra.mxu1 %v6452_v42 }
 0x368   :  { %5618 = vmatprep.mubr.f32.mxu1 %v6453_v13 }
 0x36b   :  { %5619 = vmatmul.mubr.f32.gmra.mxu1 %v6454_v39 }
 0x36c   :  { %5621 = vmatprep.mubr.f32.mxu1 %v6455_v16 }
 0x36f   :  { %5622 = vmatmul.mubr.f32.gmra.mxu1 %v6456_v19 }
 0x370   :  { %5624 = vmatprep.mubr.f32.mxu1 %v6457_v15 }
 0x373   :  { %5625 = vmatmul.mubr.f32.gmra.mxu1 %v6458_v34 }
 0x374   :  { %5627 = vmatprep.mubr.f32.mxu1 %v6459_v14 }
 0x377   :  { %5628 = vmatmul.mubr.f32.gmra.mxu1 %v6460_v26 }
 0x378   :  { %5630 = vmatprep.mubr.f32.mxu1 %v6461_v30 }
 0x37b   :  { %5631 = vmatmul.mubr.f32.gmra.mxu1 %v6462_v35 }
 0x37c   :  { %5633 = vmatprep.mubr.f32.mxu1 %v6463_v31 }
 0x37f   :  { %5634 = vmatmul.mubr.f32.gmra.mxu1 %v6464_v43 }
 0x380   :  { %5724 = vmatprep.mubr.msk.f32.mxu1 %vm213_vm0, %v8459_v48 }
 0x403   :  { %v5502_v50 = vpop.f32.mrf.mxu1 }
 0x404   :  { %v1328_v9 = vadd.f32 %v5502_v50, %v1255_v0 }
 0x405   :  { %v1322_v57 = vpop.f32.mrf.mxu1 }
 0x406   :  { %v1323_v58 = vadd.f32 %v1322_v57, %v1255_v0  ;;  %v1402_v63 = vmax.f32 %v1328_v9, 0.0 }
 0x407   :  { %v5505_v52 = vpop.f32.mrf.mxu1 }
 0x408   :  { %v1401_v60 = vmax.f32 %v1323_v58, 0.0  ;;  %v1338_v7 = vadd.f32 %v5505_v52, %v1255_v0 }
 0x409   :  { %v1332_v44 = vpop.f32.mrf.mxu1 }
 0x40a   :  { %v1333_v3 = vadd.f32 %v1332_v44, %v1255_v0  ;;  %5556 = vmatprep.mubr.f32.mxu0 %v1401_v60  ;;  %v1404_v28 = vmax.f32 %v1338_v7, 0.0  ;;  %v1839_v7 = vld [vmem:[#allocation12 + $0x2f8] sm:$0xff]  ;;  %v1838_v44 = vld [vmem:[#allocation12 + $0x2f0] sm:$0xff] }
 0x40b   :  { %v5508_v33 = vpop.f32.mrf.mxu1  ;;  %5557 = vmatmul.mubr.f32.vlgmr.msra.gmra.mxu0 %v1402_v63  ;;  %5636 = vmatprep.subr.mxu0 %v1839_v7 }
 0x40c   :  { %v1403_v22 = vmax.f32 %v1333_v3, 0.0  ;;  %v1348_v23 = vadd.f32 %v5508_v33, %v1255_v0  ;;  %5637 = vmatpush3.msra.mxu0 %v1839_v7  ;;  %v1837_v3 = vld [vmem:[#allocation12 + $0x2e8] sm:$0xff]  ;;  %v1836_v33 = vld [vmem:[#allocation12 + $0x2e0] sm:$0xff] }
 0x40d   :  { %v1342_v21 = vpop.f32.mrf.mxu1  ;;  %5638 = vmatprep.subr.mxu0 %v1838_v44 }
 0x40e   :  { %v1343_v61 = vadd.f32 %v1342_v21, %v1255_v0  ;;  %5559 = vmatprep.mubr.f32.mxu0 %v1403_v22  ;;  %v1406_v20 = vmax.f32 %v1348_v23, 0.0  ;;  %5639 = vmatpush3.msra.mxu0 %v1838_v44  ;;  %v1835_v22 = vld [vmem:[#allocation12 + $0x2d8] sm:$0xff]  ;;  %v1832_v23 = vld [vmem:[#allocation12 + $0x2c0] sm:$0xff] }
 0x40f   :  { %v5511_v40 = vpop.f32.mrf.mxu1  ;;  %5560 = vmatmul.mubr.f32.gmra.mxu0 %v1404_v28  ;;  %5640 = vmatprep.subr.mxu0 %v1837_v3  ;;  %v1833_v28 = vld [vmem:[#allocation12 + $0x2c8] sm:$0xff]  ;;  %v1831_v21 = vld [vmem:[#allocation12 + $0x2b8] sm:$0xff] }
 0x410   :  { %v1405_v54 = vmax.f32 %v1343_v61, 0.0  ;;  %v1358_v11 = vadd.f32 %v5511_v40, %v1255_v0  ;;  %5641 = vmatpush3.msra.mxu0 %v1837_v3  ;;  %v1830_v61 = vld [vmem:[#allocation12 + $0x2b0] sm:$0xff]  ;;  %v1829_v40 = vld [vmem:[#allocation12 + $0x2a8] sm:$0xff] }
 0x411   :  { %v1352_v17 = vpop.f32.mrf.mxu1  ;;  %5642 = vmatprep.subr.mxu0 %v1836_v33 }
 0x412   :  { %v1353_v18 = vadd.f32 %v1352_v17, %v1255_v0  ;;  %5562 = vmatprep.mubr.f32.mxu0 %v1405_v54  ;;  %v1408_v42 = vmax.f32 %v1358_v11, 0.0  ;;  %5643 = vmatpush3.msra.mxu0 %v1836_v33  ;;  %v1828_v54 = vld [vmem:[#allocation12 + $0x2a0] sm:$0xff]  ;;  %v1827_v17 = vld [vmem:[#allocation12 + $0x298] sm:$0xff] }
 0x413   :  { %v5514_v47 = vpop.f32.mrf.mxu1  ;;  %5563 = vmatmul.mubr.f32.gmra.mxu0 %v1406_v20  ;;  %5644 = vmatprep.subr.mxu0 %v1835_v22  ;;  %v7403_v20 = vld [vmem:[#allocation13 + $0x8] sm:$0xff] }
 0x414   :  { %v1407_v29 = vmax.f32 %v1353_v18, 0.0  ;;  %v1368_v13 = vadd.f32 %v5514_v47, %v1255_v0  ;;  %5645 = vmatpush3.msra.mxu0 %v1835_v22  ;;  %v8463_v18 = vld [vmem:[#allocation26_spill] sm:$0xff] }
 0x415   :  { %v1362_v39 = vpop.f32.mrf.mxu1  ;;  %v7407_v47 = vrot.slane %v7403_v20, %v8463_v18 }
 0x416   :  { %v1363_v16 = vadd.f32 %v1362_v39, %v1255_v0  ;;  %5565 = vmatprep.mubr.f32.mxu0 %v1407_v29  ;;  %v1410_v34 = vmax.f32 %v1368_v13, 0.0 }
 0x417   :  { %v5517_v19 = vpop.f32.mrf.mxu1  ;;  %5566 = vmatmul.mubr.f32.gmra.mxu0 %v1408_v42  ;;  %v1826_v42 = vld [vmem:[#allocation12 + $0x290] sm:$0xff] }
 0x418   :  { %v1409_v15 = vmax.f32 %v1363_v16, 0.0  ;;  %v1378_v14 = vadd.f32 %v5517_v19, %v1255_v0  ;;  %v1825_v19 = vld [vmem:[#allocation12 + $0x288] sm:$0xff] }
 0x419   :  { %v1372_v26 = vpop.f32.mrf.mxu1 }
 0x41a   :  { %v1373_v30 = vadd.f32 %v1372_v26, %v1255_v0  ;;  %5568 = vmatprep.mubr.f32.mxu0 %v1409_v15  ;;  %v1412_v43 = vmax.f32 %v1378_v14, 0.0 }
 0x41b   :  { %v5520_v35 = vpop.f32.mrf.mxu1  ;;  %5569 = vmatmul.mubr.f32.gmra.mxu0 %v1410_v34 }
 0x41c   :  { %v1411_v31 = vmax.f32 %v1373_v30, 0.0  ;;  %v1388_v10 = vadd.f32 %v5520_v35, %v1255_v0  ;;  %v1824_v30 = vld [vmem:[#allocation12 + $0x280] sm:$0xff] }
 0x41d   :  { %v1382_v56 = vpop.f32.mrf.mxu1 }
 0x41e   :  { %v1383_v4 = vadd.f32 %v1382_v56, %v1255_v0  ;;  %5571 = vmatprep.mubr.f32.mxu0 %v1411_v31  ;;  %v1414_v9 = vmax.f32 %v1388_v10, 0.0 }
 0x41f   :  { %v5523_v46 = vpop.f32.mrf.mxu1  ;;  %5572 = vmatmul.mubr.f32.gmra.mxu0 %v1412_v43 }
 0x420   :  { %v1413_v50 = vmax.f32 %v1383_v4, 0.0  ;;  %v1398_v57 = vadd.f32 %v5523_v46, %v1255_v0 }
 0x421   :  { %v1392_v58 = vpop.f32.mrf.mxu1 }
 0x422   :  { %v1393_v52 = vadd.f32 %v1392_v58, %v1255_v0  ;;  %5574 = vmatprep.mubr.f32.mxu0 %v1413_v50  ;;  %v1416_v63 = vmax.f32 %v1398_v57, 0.0  ;;  %v1834_v0 = vld [vmem:[#allocation12 + $0x2d0] sm:$0xff] }
 0x423   :  { %5575 = vmatmul.mubr.f32.gmra.mxu0 %v1414_v9  ;;  %5646 = vmatprep.subr.mxu0 %v1834_v0  ;;  %v5614_v11 = vpop.f32.mrf.mxu1 }
 0x424   :  { %v1415_v60 = vmax.f32 %v1393_v52, 0.0  ;;  %5647 = vmatpush3.msra.mxu0 %v1834_v0  ;;  %v1734_v13 = vadd.f32 %v5614_v11, %v7407_v47 }
 0x425   :  { %5648 = vmatprep.subr.mxu0 %v1833_v28  ;;  %v1728_v29 = vpop.f32.mrf.mxu1 }
 0x426   :  { %5577 = vmatprep.mubr.f32.mxu0 %v1415_v60  ;;  %5649 = vmatpush3.msra.mxu0 %v1833_v28  ;;  %v1729_v39 = vadd.f32 %v1728_v29, %v7407_v47  ;;  %v1808_v34 = vmax.f32 %v1734_v13, 0.0 }
 0x427   :  { %5578 = vmatmul.mubr.f32.gmra.mxu0 %v1416_v63  ;;  %5650 = vmatprep.subr.mxu0 %v1832_v23  ;;  %v5617_v16 = vpop.f32.mrf.mxu1 }
 0x428   :  { %5651 = vmatpush3.msra.mxu0 %v1832_v23  ;;  %v1807_v15 = vmax.f32 %v1729_v39, 0.0  ;;  %v1744_v14 = vadd.f32 %v5617_v16, %v7407_v47 }
 0x429   :  { %5652 = vmatprep.subr.mxu0 %v1831_v21  ;;  %v1738_v26 = vpop.f32.mrf.mxu1 }
 0x42a   :  { %5653 = vmatpush3.msra.mxu0 %v1831_v21  ;;  %v1739_v35 = vadd.f32 %v1738_v26, %v7407_v47  ;;  %5668 = vmatprep.mubr.f32.mxu0 %v1807_v15  ;;  %v1810_v10 = vmax.f32 %v1744_v14, 0.0 }
 0x42b   :  { %5654 = vmatprep.subr.mxu0 %v1830_v61  ;;  %v5620_v31 = vpop.f32.mrf.mxu1 }
 0x42c   :  { %5655 = vmatpush3.msra.mxu0 %v1830_v61  ;;  %v1809_v43 = vmax.f32 %v1739_v35, 0.0  ;;  %v1754_v56 = vadd.f32 %v5620_v31, %v7407_v47 }
 0x42d   :  { %5656 = vmatprep.subr.mxu0 %v1829_v40  ;;  %v1748_v4 = vpop.f32.mrf.mxu1 }
 0x42e   :  { %5657 = vmatpush3.msra.mxu0 %v1829_v40  ;;  %v1749_v46 = vadd.f32 %v1748_v4, %v7407_v47  ;;  %v1812_v57 = vmax.f32 %v1754_v56, 0.0 }
 0x42f   :  { %5658 = vmatprep.subr.mxu0 %v1828_v54  ;;  %v5623_v50 = vpop.f32.mrf.mxu1 }
 0x430   :  { %5659 = vmatpush3.msra.mxu0 %v1828_v54  ;;  %v1811_v9 = vmax.f32 %v1749_v46, 0.0  ;;  %v1764_v58 = vadd.f32 %v5623_v50, %v7407_v47 }
 0x431   :  { %5660 = vmatprep.subr.mxu0 %v1827_v17  ;;  %v1758_v52 = vpop.f32.mrf.mxu1 }
 0x432   :  { %5661 = vmatpush3.msra.mxu0 %v1827_v17  ;;  %v1759_v60 = vadd.f32 %v1758_v52, %v7407_v47  ;;  %v1814_v44 = vmax.f32 %v1764_v58, 0.0  ;;  %v7438_v58 = vsub.s32 3, %v6894_v37 }
 0x433   :  { %5662 = vmatprep.subr.mxu0 %v1826_v42  ;;  %v5626_v63 = vpop.f32.mrf.mxu1 }
 0x434   :  { %5663 = vmatpush3.msra.mxu0 %v1826_v42  ;;  %v1813_v7 = vmax.f32 %v1759_v60, 0.0  ;;  %v1774_v3 = vadd.f32 %v5626_v63, %v7407_v47  ;;  %8464 = vst [vmem:[#allocation44_spill] sm:$0xff] %v7438_v58  ;;  %v7442_v63 = vrot.slane %v7399_v8, %v7438_v58 }
 0x435   :  { %5664 = vmatprep.subr.mxu0 %v1825_v19  ;;  %v1768_v33 = vpop.f32.mrf.mxu1 }
 0x436   :  { %5665 = vmatpush3.msra.mxu0 %v1825_v19  ;;  %v1769_v22 = vadd.f32 %v1768_v33, %v7407_v47  ;;  %v1816_v23 = vmax.f32 %v1774_v3, 0.0  ;;  %v7448_v3 = vsub.s32 5, %v6894_v37 }
 0x437   :  { %5666 = vmatprep.subr.mxu0 %v1824_v30  ;;  %v5629_v0 = vpop.f32.mrf.mxu1 }
 0x438   :  { %5667 = vmatpush3.msra.mxu0 %v1824_v30  ;;  %v1815_v28 = vmax.f32 %v1769_v22, 0.0  ;;  %v1784_v21 = vadd.f32 %v5629_v0, %v7407_v47  ;;  %8466 = vst [vmem:[#allocation46_spill] sm:$0xff] %v7448_v3 }
 0x439   :  { %5669 = vmatmul.mubr.f32.vlgmr.msra.gmra.mxu0 %v1808_v34  ;;  %v1778_v61 = vpop.f32.mrf.mxu1 }
 0x43a   :  { %5671 = vmatprep.mubr.f32.mxu0 %v1809_v43  ;;  %v1779_v40 = vadd.f32 %v1778_v61, %v7407_v47  ;;  %v1818_v17 = vmax.f32 %v1784_v21, 0.0  ;;  %v7459_v61 = vrot.slane %v7399_v8, %v7448_v3 }
 0x43b   :  { %v5632_v54 = vpop.f32.mrf.mxu1 }
 0x43c   :  { %v1817_v11 = vmax.f32 %v1779_v40, 0.0  ;;  %v1794_v29 = vadd.f32 %v5632_v54, %v7407_v47 }
 0x43d   :  { %5672 = vmatmul.mubr.f32.gmra.mxu0 %v1810_v10  ;;  %v1788_v42 = vpop.f32.mrf.mxu1 }
 0x43e   :  { %5674 = vmatprep.mubr.f32.mxu0 %v1811_v9  ;;  %v1789_v13 = vadd.f32 %v1788_v42, %v7407_v47  ;;  %v1820_v19 = vmax.f32 %v1794_v29, 0.0 }
 0x43f   :  { %v5635_v39 = vpop.f32.mrf.mxu1 }
 0x440   :  { %v1819_v16 = vmax.f32 %v1789_v13, 0.0  ;;  %v1804_v15 = vadd.f32 %v5635_v39, %v7407_v47 }
 0x441   :  { %5675 = vmatmul.mubr.f32.gmra.mxu0 %v1812_v57  ;;  %v1798_v34 = vpop.f32.mrf.mxu1 }
 0x442   :  { %5677 = vmatprep.mubr.f32.mxu0 %v1813_v7  ;;  %v1799_v14 = vadd.f32 %v1798_v34, %v7407_v47  ;;  %v1822_v30 = vmax.f32 %v1804_v15, 0.0  ;;  %v7445_v7 = vsub.s32 4, %v6894_v37 }
 0x444   :  { %v1821_v26 = vmax.f32 %v1799_v14, 0.0  ;;  %8465 = vst [vmem:[#allocation45_spill] sm:$0xff] %v7445_v7  ;;  %v7453_v0 = vrot.slane %v7399_v8, %v7445_v7 }
 0x445   :  { %5678 = vmatmul.mubr.f32.gmra.mxu0 %v1814_v44 }
 0x446   :  { %5680 = vmatprep.mubr.f32.mxu0 %v1815_v28 }
 0x449   :  { %5681 = vmatmul.mubr.f32.gmra.mxu0 %v1816_v23 }
 0x44a   :  { %5683 = vmatprep.mubr.f32.mxu0 %v1817_v11 }
 0x44d   :  { %5684 = vmatmul.mubr.f32.gmra.mxu0 %v1818_v17 }
 0x44e   :  { %5686 = vmatprep.mubr.f32.mxu0 %v1819_v16 }
 0x451   :  { %5687 = vmatmul.mubr.f32.gmra.mxu0 %v1820_v19 }
 0x452   :  { %5689 = vmatprep.mubr.f32.mxu0 %v1821_v26 }
 0x455   :  { %5690 = vmatmul.mubr.f32.gmra.mxu0 %v1822_v30 }
 0x456   :  { %5780 = vmatprep.mubr.msk.f32.mxu0 %vm283_vm12, %v8459_v48 }
 0x4cb   :  { %v7429_v35 = vpop.f32.mrf.mxu0 }
 0x4cd   :  { %v7431_v31 = vpop.f32.mrf.mxu0 }
 0x4cf   :  { %v7433_v43 = vpop.f32.mrf.mxu0 }
 0x4d1   :  { %v7435_v10 = vpop.f32.mrf.mxu0 }
 0x4d3   :  { %v5564_v47 = vpop.f32.mrf.mxu0 }
 0x4d5   :  { %v1524_v56 = vpop.f32.mrf.mxu0 }
 0x4d7   :  { %v5567_v4 = vpop.f32.mrf.mxu0 }
 0x4d9   :  { %v1534_v46 = vpop.f32.mrf.mxu0 }
 0x4db   :  { %v5570_v50 = vpop.f32.mrf.mxu0 }
 0x4dc   :  { %v1550_v16 = vadd.f32 %v5570_v50, %v7442_v63  ;;  %v1540_v50 = vadd.f32 %v5567_v4, %v7442_v63 }
 0x4dd   :  { %v1544_v9 = vpop.f32.mrf.mxu0 }
 0x4de   :  { %v1545_v14 = vadd.f32 %v1544_v9, %v7442_v63 }
 0x4df   :  { %v5573_v57 = vpop.f32.mrf.mxu0 }
 0x4e0   :  { %v1560_v40 = vadd.f32 %v5573_v57, %v7442_v63 }
 0x4e1   :  { %v1554_v52 = vpop.f32.mrf.mxu0 }
 0x4e2   :  { %v1555_v29 = vadd.f32 %v1554_v52, %v7442_v63  ;;  %v1598_v8 = vmul.f32 %v7453_v0, %v1560_v40  ;;  %v1596_v52 = vmul.f32 %v7453_v0, %v1550_v16  ;;  %v1525_v40 = vadd.f32 %v1524_v56, %v7442_v63 }
 0x4e3   :  { %v5576_v60 = vpop.f32.mrf.mxu0 }
 0x4e4   :  { %v1570_v33 = vadd.f32 %v5576_v60, %v7442_v63  ;;  %v1597_v26 = vmul.f32 %v7453_v0, %v1555_v29  ;;  %v1618_v9 = vadd.f32 %v7459_v61, %v1598_v8  ;;  %v1510_v8 = vadd.f32 %v7429_v35, %v7442_v63 }
 0x4e5   :  { %v1564_v44 = vpop.f32.mrf.mxu0 }
 0x4e6   :  { %v1565_v28 = vadd.f32 %v1564_v44, %v7442_v63  ;;  %v1600_v54 = vmul.f32 %v7453_v0, %v1570_v33  ;;  %v1535_v44 = vadd.f32 %v1534_v46, %v7442_v63  ;;  %v1595_v33 = vmul.f32 %v7453_v0, %v1545_v14 }
 0x4e7   :  { %v5579_v22 = vpop.f32.mrf.mxu0  ;;  %v1617_v4 = vadd.f32 %v7459_v61, %v1597_v26  ;;  %v1616_v46 = vadd.f32 %v7459_v61, %v1596_v52  ;;  %v1505_v14 = vadd.f32 %v7431_v31, %v7442_v63 }
 0x4e8   :  { %v1580_v23 = vadd.f32 %v5579_v22, %v7442_v63  ;;  %v1599_v42 = vmul.f32 %v7453_v0, %v1565_v28  ;;  %v1620_v34 = vadd.f32 %v7459_v61, %v1600_v54  ;;  %v1530_v28 = vadd.f32 %v5564_v47, %v7442_v63 }
 0x4e9   :  { %v1574_v21 = vpop.f32.mrf.mxu0  ;;  %v1593_v54 = vmul.f32 %v7453_v0, %v1535_v44  ;;  %v1615_v47 = vadd.f32 %v7459_v61, %v1595_v33  ;;  %v1587_v31 = vmul.f32 %v7453_v0, %v1505_v14  ;;  %v8498_v14 = vld [vmem:[#allocation40_spill] sm:$0xff] }
 0x4ea   :  { %v1602_v11 = vmul.f32 %v7453_v0, %v1580_v23  ;;  %v1575_v17 = vadd.f32 %v1574_v21, %v7442_v63  ;;  %v1619_v57 = vadd.f32 %v7459_v61, %v1599_v42  ;;  %v7485_v60 = vmax.f32 %v1620_v34, 0.0 }
 0x4eb   :  { %v1594_v23 = vmul.f32 %v7453_v0, %v1540_v50  ;;  %v7499_v21 = vmax.f32 %v1618_v9, 0.0  ;;  %v1592_v29 = vmul.f32 %v7453_v0, %v1530_v28  ;;  %v7514_v42 = vmax.f32 %v1616_v46, 0.0 }
 0x4ec   :  { %v1601_v13 = vmul.f32 %v7453_v0, %v1575_v17  ;;  %v1622_v39 = vadd.f32 %v7459_v61, %v1602_v11  ;;  %8469 = vst [vmem:[#allocation49_spill] sm:$0xff] %v7485_v60  ;;  %v7492_v22 = vmax.f32 %v1619_v57, 0.0  ;;  %v7506_v11 = vmax.f32 %v1617_v4, 0.0 }
 0x4ed   :  { %8471 = vst [vmem:[#allocation51_spill] sm:$0xff] %v7499_v21  ;;  %v1520_v17 = vadd.f32 %v7433_v43, %v7442_v63  ;;  %8473 = vst [vmem:[#allocation53_spill] sm:$0xff] %v7514_v42  ;;  %v1614_v56 = vadd.f32 %v7459_v61, %v1594_v23  ;;  %v7522_v16 = vmax.f32 %v1615_v47, 0.0  ;;  %v1613_v43 = vadd.f32 %v7459_v61, %v1593_v54 }
 0x4ee   :  { %v7471_v19 = vmax.f32 %v1622_v39, 0.0  ;;  %v1621_v15 = vadd.f32 %v7459_v61, %v1601_v13  ;;  %8470 = vst [vmem:[#allocation50_spill] sm:$0xff] %v7492_v22  ;;  %8472 = vst [vmem:[#allocation52_spill] sm:$0xff] %v7506_v11  ;;  %v1515_v13 = vadd.f32 %v7435_v10, %v7442_v63  ;;  %v1591_v39 = vmul.f32 %v7453_v0, %v1525_v40 }
 0x4ef   :  { %8474 = vst [vmem:[#allocation54_spill] sm:$0xff] %v7522_v16  ;;  %v7530_v34 = vmax.f32 %v1614_v56, 0.0  ;;  %v1612_v10 = vadd.f32 %v7459_v61, %v1592_v29  ;;  %v7538_v57 = vmax.f32 %v1613_v43, 0.0  ;;  %v1588_v50 = vmul.f32 %v7453_v0, %v1510_v8  ;;  %v8492_v8 = vld [vmem:[#allocation37_spill] sm:$0xff] }
 0x4f0   :  { %8467 = vst [vmem:[#allocation47_spill] sm:$0xff] %v7471_v19  ;;  %5692 = vmatprep.subr.mxu1 %v7471_v19  ;;  %v7478_v30 = vmax.f32 %v1621_v15, 0.0  ;;  %v1590_v15 = vmul.f32 %v7453_v0, %v1520_v17  ;;  %v1589_v26 = vmul.f32 %v7453_v0, %v1515_v13  ;;  %v1611_v35 = vadd.f32 %v7459_v61, %v1591_v39 }
 0x4f1   :  { %5693 = vmatpush3.msra.mxu1 %v7471_v19  ;;  %8475 = vst [vmem:[#allocation55_spill] sm:$0xff] %v7530_v34  ;;  %8476 = vst [vmem:[#allocation56_spill] sm:$0xff] %v7538_v57  ;;  %v7544_v52 = vmax.f32 %v1612_v10, 0.0  ;;  %v1608_v4 = vadd.f32 %v7459_v61, %v1588_v50  ;;  %v1607_v0 = vadd.f32 %v7459_v61, %v1587_v31  ;;  %v8496_v10 = vld [vmem:[#allocation39_spill] sm:$0xff]  ;;  %v2344_v50 = vld [vmem:[#allocation12 + $0x370] sm:$0xff] }
 0x4f2   :  { %8468 = vst [vmem:[#allocation48_spill] sm:$0xff] %v7478_v30  ;;  %5694 = vmatprep.subr.mxu1 %v7478_v30  ;;  %v1610_v9 = vadd.f32 %v7459_v61, %v1590_v15  ;;  %v7550_v63 = vmax.f32 %v1611_v35, 0.0  ;;  %v1609_v44 = vadd.f32 %v7459_v61, %v1589_v26  ;;  %v8494_v15 = vld [vmem:[#allocation38_spill] sm:$0xff]  ;;  %v8500_v26 = vld [vmem:[#allocation41_spill] sm:$0xff] }
 0x4f3   :  { %5695 = vmatpush3.msra.mxu1 %v7478_v30  ;;  %8477 = vst [vmem:[#allocation57_spill] sm:$0xff] %v7544_v52  ;;  %v7565_v23 = vmax.f32 %v1608_v4, 0.0  ;;  %v7569_v46 = vmax.f32 %v1607_v0, 0.0  ;;  %v2345_v35 = vld [vmem:[#allocation12 + $0x378] sm:$0xff]  ;;  %v2343_v31 = vld [vmem:[#allocation12 + $0x368] sm:$0xff] }
 0x4f4   :  { %5696 = vmatprep.subr.mxu1 %v7485_v60  ;;  %8478 = vst [vmem:[#allocation58_spill] sm:$0xff] %v7550_v63  ;;  %v7555_v33 = vmax.f32 %v1610_v9, 0.0  ;;  %v7560_v28 = vmax.f32 %v1609_v44, 0.0  ;;  %v2342_v44 = vld [vmem:[#allocation12 + $0x360] sm:$0xff]  ;;  %v2341_v0 = vld [vmem:[#allocation12 + $0x358] sm:$0xff] }
 0x4f5   :  { %5697 = vmatpush3.msra.mxu1 %v7485_v60  ;;  %8481 = vst [vmem:[#allocation61_spill] sm:$0xff] %v7565_v23 }
 0x4f6   :  { %5698 = vmatprep.subr.mxu1 %v7492_v22  ;;  %8479 = vst [vmem:[#allocation59_spill] sm:$0xff] %v7555_v33  ;;  %8480 = vst [vmem:[#allocation60_spill] sm:$0xff] %v7560_v28 }
 0x4f7   :  { %5699 = vmatpush3.msra.mxu1 %v7492_v22 }
 0x4f8   :  { %5700 = vmatprep.subr.mxu1 %v7499_v21 }
 0x4f9   :  { %5701 = vmatpush3.msra.mxu1 %v7499_v21  ;;  %v7634_v9 = vpop.f32.mrf.mxu0 }
 0x4fa   :  { %5702 = vmatprep.subr.mxu1 %v7506_v11 }
 0x4fb   :  { %5703 = vmatpush3.msra.mxu1 %v7506_v11  ;;  %v7636_v4 = vpop.f32.mrf.mxu0 }
 0x4fc   :  { %5704 = vmatprep.subr.mxu1 %v7514_v42 }
 0x4fd   :  { %5705 = vmatpush3.msra.mxu1 %v7514_v42 }
 0x4fe   :  { %5706 = vmatprep.subr.mxu1 %v7522_v16 }
 0x4ff   :  { %5707 = vmatpush3.msra.mxu1 %v7522_v16 }
 0x500   :  { %5708 = vmatprep.subr.mxu1 %v7530_v34 }
 0x501   :  { %5709 = vmatpush3.msra.mxu1 %v7530_v34 }
 0x502   :  { %5710 = vmatprep.subr.mxu1 %v7538_v57 }
 0x503   :  { %5711 = vmatpush3.msra.mxu1 %v7538_v57 }
 0x504   :  { %5712 = vmatprep.subr.mxu1 %v7544_v52 }
 0x505   :  { %5713 = vmatpush3.msra.mxu1 %v7544_v52 }
 0x506   :  { %5714 = vmatprep.subr.mxu1 %v7550_v63 }
 0x507   :  { %5715 = vmatpush3.msra.mxu1 %v7550_v63 }
 0x508   :  { %5716 = vmatprep.subr.mxu1 %v7555_v33 }
 0x509   :  { %5717 = vmatpush3.msra.mxu1 %v7555_v33 }
 0x50a   :  { %5718 = vmatprep.subr.mxu1 %v7560_v28 }
 0x50b   :  { %5719 = vmatpush3.msra.mxu1 %v7560_v28 }
 0x50c   :  { %5720 = vmatprep.subr.mxu1 %v7565_v23 }
 0x50d   :  { %5721 = vmatpush3.msra.mxu1 %v7565_v23 }
 0x50e   :  { %5722 = vmatprep.subr.mxu1 %v7569_v46 }
 0x50f   :  { %5723 = vmatpush3.msra.mxu1 %v7569_v46 }
 0x510   :  { %5725 = vmatmul.mubr.msk.f32.vlgmr.msra.gmra.mxu1 %vm214_vm2, %v8459_v48  ;;  %5804 = vmatprep.subr.mxu1 %v2345_v35 }
 0x511   :  { %5727 = vmatprep.mubr.msk.f32.mxu1 %vm215_vm1, %v8459_v48  ;;  %5805 = vmatpush3.msra.mxu1 %v2345_v35  ;;  %v2338_v35 = vld [vmem:[#allocation12 + $0x340] sm:$0xff] }
 0x512   :  { %5806 = vmatprep.subr.mxu1 %v2344_v50 }
 0x513   :  { %5807 = vmatpush3.msra.mxu1 %v2344_v50  ;;  %v2337_v50 = vld [vmem:[#allocation12 + $0x338] sm:$0xff] }
 0x514   :  { %5728 = vmatmul.mubr.msk.f32.gmra.mxu1 %vm216_vm3, %v8459_v48  ;;  %5808 = vmatprep.subr.mxu1 %v2343_v31 }
 0x515   :  { %5730 = vmatprep.mubr.msk.f32.mxu1 %vm217_vm4, %v8459_v48  ;;  %5809 = vmatpush3.msra.mxu1 %v2343_v31  ;;  %v2336_v31 = vld [vmem:[#allocation12 + $0x330] sm:$0xff] }
 0x516   :  { %5810 = vmatprep.subr.mxu1 %v2342_v44 }
 0x517   :  { %5811 = vmatpush3.msra.mxu1 %v2342_v44  ;;  %v2335_v44 = vld [vmem:[#allocation12 + $0x328] sm:$0xff] }
 0x518   :  { %5731 = vmatmul.mubr.msk.f32.gmra.mxu1 %vm218_vm5, %v8459_v48  ;;  %5812 = vmatprep.subr.mxu1 %v2341_v0 }
 0x519   :  { %5733 = vmatprep.mubr.msk.f32.mxu1 %vm8393_vm6, %v8459_v48  ;;  %vm8493_vm6 = vcmp.eq.s32.totalorder %v8460_v12, %v8492_v8  ;;  %5813 = vmatpush3.msra.mxu1 %v2341_v0  ;;  %v2334_v0 = vld [vmem:[#allocation12 + $0x320] sm:$0xff] }
 0x51c   :  { %5734 = vmatmul.mubr.msk.f32.gmra.mxu1 %vm8394_vm7, %v8459_v48  ;;  %vm8495_vm7 = vcmp.eq.s32.totalorder %v8460_v12, %v8494_v15 }
 0x51d   :  { %5736 = vmatprep.mubr.msk.f32.mxu1 %vm8395_vm8, %v8459_v48  ;;  %vm8497_vm8 = vcmp.eq.s32.totalorder %v8460_v12, %v8496_v10  ;;  %v2339_v10 = vld [vmem:[#allocation12 + $0x348] sm:$0xff] }
 0x520   :  { %5737 = vmatmul.mubr.msk.f32.gmra.mxu1 %vm8396_vm9, %v8459_v48  ;;  %vm8499_vm9 = vcmp.eq.s32.totalorder %v8460_v12, %v8498_v14  ;;  %v2340_v14 = vld [vmem:[#allocation12 + $0x350] sm:$0xff] }
 0x521   :  { %5739 = vmatprep.mubr.msk.f32.mxu1 %vm8397_vm10, %v8459_v48  ;;  %vm8501_vm10 = vcmp.eq.s32.totalorder %v8460_v12, %v8500_v26  ;;  %v7638_v26 = vpop.f32.mrf.mxu0  ;;  %5814 = vmatprep.subr.mxu1 %v2340_v14  ;;  %v7658_v12 = vrot.slane %v7403_v20, %v8502_v51 }
 0x522   :  { %5815 = vmatpush3.msra.mxu1 %v2340_v14  ;;  %v2333_v14 = vld [vmem:[#allocation12 + $0x318] sm:$0xff] }
 0x523   :  { %v7640_v15 = vpop.f32.mrf.mxu0  ;;  %5816 = vmatprep.subr.mxu1 %v2339_v10 }
 0x524   :  { %5740 = vmatmul.mubr.msk.f32.gmra.mxu1 %vm8493_vm6, %v8459_v48  ;;  %vm8503_vm6 = vcmp.eq.s32.totalorder %v7224_v49, %v7156_v32 }
 0x525   :  { %5742 = vmatprep.mubr.msk.f32.mxu1 %vm8495_vm7, %v8459_v48  ;;  %5817 = vmatpush3.msra.mxu1 %v2339_v10  ;;  %v7642_v8 = vpop.f32.mrf.mxu0  ;;  %vm8504_vm7 = vcmp.eq.s32.totalorder %v7227_v62, %v7156_v32 }
 0x526   :  { %5818 = vmatprep.subr.mxu1 %v2338_v35 }
 0x527   :  { %5819 = vmatpush3.msra.mxu1 %v2338_v35  ;;  %v7644_v43 = vpop.f32.mrf.mxu0 }
 0x528   :  { %5743 = vmatmul.mubr.msk.f32.gmra.mxu1 %vm8497_vm8, %v8459_v48  ;;  %5820 = vmatprep.subr.mxu1 %v2337_v50  ;;  %vm8505_vm8 = vcmp.eq.s32.totalorder %v7232_v53, %v7156_v32 }
 0x529   :  { %5745 = vmatprep.mubr.msk.f32.mxu1 %vm8499_vm9, %v8459_v48  ;;  %5821 = vmatpush3.msra.mxu1 %v2337_v50  ;;  %v5679_v10 = vpop.f32.mrf.mxu0  ;;  %vm8506_vm9 = vcmp.eq.s32.totalorder %v7237_v45, %v7156_v32 }
 0x52a   :  { %5822 = vmatprep.subr.mxu1 %v2336_v31 }
 0x52b   :  { %5823 = vmatpush3.msra.mxu1 %v2336_v31  ;;  %v1940_v35 = vpop.f32.mrf.mxu0 }
 0x52c   :  { %5746 = vmatmul.mubr.msk.f32.gmra.mxu1 %vm8501_vm10, %v8459_v48  ;;  %5824 = vmatprep.subr.mxu1 %v2335_v44  ;;  %vm8507_vm10 = vcmp.eq.s32.totalorder %v7250_v1, %v7156_v32 }
 0x52d   :  { %5825 = vmatpush3.msra.mxu1 %v2335_v44  ;;  %v5682_v39 = vpop.f32.mrf.mxu0 }
 0x52e   :  { %5826 = vmatprep.subr.mxu1 %v2334_v0 }
 0x52f   :  { %5827 = vmatpush3.msra.mxu1 %v2334_v0  ;;  %v1950_v50 = vpop.f32.mrf.mxu0 }
 0x530   :  { %5828 = vmatprep.subr.mxu1 %v2333_v14 }
 0x531   :  { %5829 = vmatpush3.msra.mxu1 %v2333_v14  ;;  %v5685_v17 = vpop.f32.mrf.mxu0 }
 0x532   :  { %v1966_v33 = vadd.f32 %v5685_v17, %v7658_v12 }
 0x533   :  { %v1960_v54 = vpop.f32.mrf.mxu0 }
 0x535   :  { %v5688_v61 = vpop.f32.mrf.mxu0 }
 0x536   :  { %v1976_v21 = vadd.f32 %v5688_v61, %v7658_v12  ;;  %v1921_v61 = vadd.f32 %v7640_v15, %v7658_v12 }
 0x537   :  { %v1970_v7 = vpop.f32.mrf.mxu0 }
 0x538   :  { %v1971_v34 = vadd.f32 %v1970_v7, %v7658_v12 }
 0x539   :  { %v5691_v37 = vpop.f32.mrf.mxu0 }
 0x53a   :  { %v1986_v60 = vadd.f32 %v5691_v37, %v7658_v12  ;;  %v1961_v37 = vadd.f32 %v1960_v54, %v7658_v12 }
 0x53b   :  { %v1980_v19 = vpop.f32.mrf.mxu0 }
 0x53c   :  { %v1981_v11 = vadd.f32 %v1980_v19, %v7658_v12  ;;  %v1956_v19 = vadd.f32 %v5682_v39, %v7658_v12 }
 0x5d0   :  { %v7646_v13 = vpop.f32.mrf.mxu1 }
 0x5d2   :  { %v7648_v56 = vpop.f32.mrf.mxu1 }
 0x5d4   :  { %v7650_v29 = vpop.f32.mrf.mxu1 }
 0x5d6   :  { %v7652_v31 = vpop.f32.mrf.mxu1 }
 0x5d7   :  { %v2066_v17 = vadd.f32 %v7652_v31, %v1921_v61  ;;  %v2525_v31 = vld [vmem:[#allocation12 + $0x3e8] sm:$0xff] }
 0x5d8   :  { %v5732_v47 = vpop.f32.mrf.mxu1 }
 0x5d9   :  { %v2136_v15 = vmax.f32 %v2066_v17, 0.0  ;;  %v8518_v17 = vld [vmem:[#allocation57_spill] sm:$0xff] }
 0x5da   :  { %v7654_v44 = vpop.f32.mrf.mxu1 }
 0x5dc   :  { %v5735_v0 = vpop.f32.mrf.mxu1 }
 0x5de   :  { %v2085_v40 = vpop.f32.mrf.mxu1 }
 0x5e0   :  { %v5738_v14 = vpop.f32.mrf.mxu1 }
 0x5e1   :  { %v2101_v7 = vadd.f32 %v5738_v14, %v1956_v19  ;;  %v2522_v14 = vld [vmem:[#allocation12 + $0x3d0] sm:$0xff]  ;;  %v2519_v19 = vld [vmem:[#allocation12 + $0x3b8] sm:$0xff] }
 0x5e2   :  { %v2095_v3 = vpop.f32.mrf.mxu1 }
 0x5e4   :  { %v5741_v58 = vpop.f32.mrf.mxu1 }
 0x5e5   :  { %v2111_v28 = vadd.f32 %v5741_v58, %v1966_v33  ;;  %v1926_v33 = vadd.f32 %v7638_v26, %v7658_v12 }
 0x5e6   :  { %v2105_v18 = vpop.f32.mrf.mxu1 }
 0x5e8   :  { %v5744_v55 = vpop.f32.mrf.mxu1 }
 0x5e9   :  { %v2121_v57 = vadd.f32 %v5744_v55, %v1976_v21  ;;  %v1951_v55 = vadd.f32 %v1950_v50, %v7658_v12  ;;  %v2145_v21 = vmax.f32 %v2111_v28, 0.0  ;;  %v2526_v50 = vld [vmem:[#allocation12 + $0x3f0] sm:$0xff] }
 0x5ea   :  { %v2115_v30 = vpop.f32.mrf.mxu1 }
 0x5eb   :  { %v2116_v20 = vadd.f32 %v2115_v30, %v1971_v34  ;;  %v2147_v23 = vmax.f32 %v2121_v57, 0.0  ;;  %v1946_v30 = vadd.f32 %v5679_v10, %v7658_v12 }
 0x5ec   :  { %v5747_v22 = vpop.f32.mrf.mxu1 }
 0x5ed   :  { %v2131_v42 = vadd.f32 %v5747_v22, %v1986_v60  ;;  %v2106_v60 = vadd.f32 %v2105_v18, %v1961_v37  ;;  %v2146_v22 = vmax.f32 %v2116_v20, 0.0  ;;  %v2091_v58 = vadd.f32 %v5735_v0, %v1946_v30  ;;  %v2523_v0 = vld [vmem:[#allocation12 + $0x3d8] sm:$0xff]  ;;  %v2521_v20 = vld [vmem:[#allocation12 + $0x3c8] sm:$0xff]  ;;  %v2520_v37 = vld [vmem:[#allocation12 + $0x3c0] sm:$0xff] }
 0x5ee   :  { %v2125_v16 = vpop.f32.mrf.mxu1  ;;  %v1936_v18 = vadd.f32 %v7642_v8, %v7658_v12 }
 0x5ef   :  { %v2149_v52 = vmax.f32 %v2131_v42, 0.0  ;;  %v2126_v63 = vadd.f32 %v2125_v16, %v1981_v11  ;;  %v2096_v11 = vadd.f32 %v2095_v3, %v1951_v55  ;;  %v2144_v42 = vmax.f32 %v2106_v60, 0.0  ;;  %v2518_v60 = vld [vmem:[#allocation12 + $0x3b0] sm:$0xff]  ;;  %v2516_v55 = vld [vmem:[#allocation12 + $0x3a0] sm:$0xff] }
 0x5f0   :  { %v2143_v16 = vmax.f32 %v2101_v7, 0.0  ;;  %v2081_v3 = vadd.f32 %v5732_v47, %v1936_v18  ;;  %v1916_v47 = vadd.f32 %v7634_v9, %v7658_v12  ;;  %v7747_v7 = vstv %s4458_s19 }
 0x5f1   :  { %v2148_v51 = vmax.f32 %v2126_v63, 0.0  ;;  %5748 = vmatprep.subr.mxu0 %v2149_v52  ;;  %v2142_v57 = vmax.f32 %v2096_v11, 0.0  ;;  %v2141_v63 = vmax.f32 %v2091_v58, 0.0  ;;  %v2297_v30 = vmul.f32 %v7747_v7, %v7569_v46  ;;  %v8514_v11 = vld [vmem:[#allocation61_spill] sm:$0xff] }
 0x5f2   :  { %5749 = vmatpush3.msra.mxu0 %v2149_v52  ;;  %v1931_v52 = vadd.f32 %v7644_v43, %v7658_v12  ;;  %v2139_v54 = vmax.f32 %v2081_v3, 0.0  ;;  %v1911_v43 = vadd.f32 %v7636_v4, %v7658_v12  ;;  %v2061_v8 = vadd.f32 %v7646_v13, %v1916_v47  ;;  %v2330_v13 = vld [vmem:[#allocation12 + $0x300] sm:$0xff]  ;;  %v2751_v4 = vld [vmem:[#allocation12 + $0x478] sm:$0xff]  ;;  %v2749_v46 = vld [vmem:[#allocation12 + $0x468] sm:$0xff] }
 0x5f3   :  { %5750 = vmatprep.subr.mxu0 %v2148_v51  ;;  %v8516_v3 = vld [vmem:[#allocation59_spill] sm:$0xff] }
 0x5f4   :  { %5751 = vmatpush3.msra.mxu0 %v2148_v51  ;;  %v1941_v51 = vadd.f32 %v1940_v35, %v7658_v12  ;;  %v2076_v28 = vadd.f32 %v7654_v44, %v1931_v52  ;;  %v2135_v10 = vmax.f32 %v2061_v8, 0.0  ;;  %v2332_v12 = vld [vmem:[#allocation12 + $0x310] sm:$0xff]  ;;  %v2527_v35 = vld [vmem:[#allocation12 + $0x3f8] sm:$0xff]  ;;  %v2524_v44 = vld [vmem:[#allocation12 + $0x3e0] sm:$0xff] }
 0x5f5   :  { %5752 = vmatprep.subr.mxu0 %v2147_v23  ;;  %5830 = vmatprep.subr.mxu1 %v2332_v12  ;;  %v2750_v52 = vld [vmem:[#allocation12 + $0x470] sm:$0xff]  ;;  %v2748_v47 = vld [vmem:[#allocation12 + $0x460] sm:$0xff] }
 0x5f6   :  { %5753 = vmatpush3.msra.mxu0 %v2147_v23  ;;  %v2086_v34 = vadd.f32 %v2085_v40, %v1941_v51  ;;  %v2071_v40 = vadd.f32 %v7650_v29, %v1926_v33  ;;  %v2138_v39 = vmax.f32 %v2076_v28, 0.0  ;;  %v2056_v29 = vadd.f32 %v7648_v56, %v1911_v43  ;;  %5831 = vmatpush3.msra.mxu1 %v2332_v12  ;;  %v2331_v56 = vld [vmem:[#allocation12 + $0x308] sm:$0xff]  ;;  %v2746_v12 = vld [vmem:[#allocation12 + $0x450] sm:$0xff] }
 0x5f7   :  { %5754 = vmatprep.subr.mxu0 %v2146_v22  ;;  %5832 = vmatprep.subr.mxu1 %v2331_v56 }
 0x5f8   :  { %5755 = vmatpush3.msra.mxu0 %v2146_v22  ;;  %v2140_v23 = vmax.f32 %v2086_v34, 0.0  ;;  %v2137_v26 = vmax.f32 %v2071_v40, 0.0  ;;  %v2134_v9 = vmax.f32 %v2056_v29, 0.0  ;;  %5833 = vmatpush3.msra.mxu1 %v2331_v56  ;;  %v2517_v22 = vld [vmem:[#allocation12 + $0x3a8] sm:$0xff]  ;;  %v8517_v40 = vld [vmem:[#allocation58_spill] sm:$0xff]  ;;  %v8520_v56 = vld [vmem:[#allocation55_spill] sm:$0xff] }
 0x5f9   :  { %5756 = vmatprep.subr.mxu0 %v2145_v21  ;;  %5834 = vmatprep.subr.mxu1 %v2330_v13  ;;  %v8515_v34 = vld [vmem:[#allocation60_spill] sm:$0xff] }
 0x5fa   :  { %5757 = vmatpush3.msra.mxu0 %v2145_v21  ;;  %5835 = vmatpush3.msra.mxu1 %v2330_v13  ;;  %v2304_v13 = vmul.f32 %v7747_v7, %v8520_v56  ;;  %v2736_v56 = vld [vmem:[#allocation12 + $0x400] sm:$0xff] }
 0x5fb   :  { %5758 = vmatprep.subr.mxu0 %v2144_v42  ;;  %5916 = vmatprep.subr.mxu1 %v2751_v4 }
 0x5fc   :  { %5759 = vmatpush3.msra.mxu0 %v2144_v42  ;;  %v2298_v42 = vmul.f32 %v7747_v7, %v8514_v11  ;;  %v8523_v11 = vld [vmem:[#allocation52_spill] sm:$0xff] }
 0x5fd   :  { %5760 = vmatprep.subr.mxu0 %v2143_v16 }
 0x5fe   :  { %5761 = vmatpush3.msra.mxu0 %v2143_v16 }
 0x5ff   :  { %5762 = vmatprep.subr.mxu0 %v2142_v57 }
 0x600   :  { %5763 = vmatpush3.msra.mxu0 %v2142_v57  ;;  %v2299_v57 = vmul.f32 %v7747_v7, %v8515_v34 }
 0x601   :  { %5764 = vmatprep.subr.mxu0 %v2141_v63 }
 0x602   :  { %5765 = vmatpush3.msra.mxu0 %v2141_v63  ;;  %v2300_v63 = vmul.f32 %v7747_v7, %v8516_v3 }
 0x603   :  { %5766 = vmatprep.subr.mxu0 %v2140_v23 }
 0x604   :  { %5767 = vmatpush3.msra.mxu0 %v2140_v23 }
 0x605   :  { %5768 = vmatprep.subr.mxu0 %v2139_v54 }
 0x606   :  { %5769 = vmatpush3.msra.mxu0 %v2139_v54  ;;  %v2301_v54 = vmul.f32 %v7747_v7, %v8517_v40 }
 0x607   :  { %5770 = vmatprep.subr.mxu0 %v2138_v39 }
 0x608   :  { %5771 = vmatpush3.msra.mxu0 %v2138_v39  ;;  %v2302_v39 = vmul.f32 %v7747_v7, %v8518_v17 }
 0x609   :  { %5772 = vmatprep.subr.mxu0 %v2137_v26 }
 0x60a   :  { %5773 = vmatpush3.msra.mxu0 %v2137_v26  ;;  %v2747_v26 = vld [vmem:[#allocation12 + $0x458] sm:$0xff] }
 0x60b   :  { %5774 = vmatprep.subr.mxu0 %v2136_v15 }
 0x60c   :  { %5775 = vmatpush3.msra.mxu0 %v2136_v15 }
 0x60d   :  { %5776 = vmatprep.subr.mxu0 %v2135_v10 }
 0x60e   :  { %5777 = vmatpush3.msra.mxu0 %v2135_v10  ;;  %v8519_v10 = vld [vmem:[#allocation56_spill] sm:$0xff] }
 0x60f   :  { %5778 = vmatprep.subr.mxu0 %v2134_v9 }
 0x610   :  { %5779 = vmatpush3.msra.mxu0 %v2134_v9  ;;  %v2303_v9 = vmul.f32 %v7747_v7, %v8519_v10 }
 0x611   :  { %5781 = vmatmul.mubr.msk.f32.vlgmr.msra.gmra.mxu0 %vm8503_vm6, %v8459_v48  ;;  %vm8508_vm6 = vcmp.eq.s32.totalorder %v7255_v2, %v7156_v32  ;;  %5860 = vmatprep.subr.mxu0 %v2527_v35 }
 0x612   :  { %5783 = vmatprep.mubr.msk.f32.mxu0 %vm8504_vm7, %v8459_v48  ;;  %vm8509_vm7 = vcmp.eq.s32.totalorder %v7268_v5, %v7156_v32  ;;  %5861 = vmatpush3.msra.mxu0 %v2527_v35 }
 0x613   :  { %5862 = vmatprep.subr.mxu0 %v2526_v50 }
 0x614   :  { %5863 = vmatpush3.msra.mxu0 %v2526_v50  ;;  %v2745_v50 = vld [vmem:[#allocation12 + $0x448] sm:$0xff] }
 0x615   :  { %5784 = vmatmul.mubr.msk.f32.gmra.mxu0 %vm8505_vm8, %v8459_v48  ;;  %vm8510_vm8 = vcmp.eq.s32.totalorder %v7273_v6, %v7156_v32  ;;  %5864 = vmatprep.subr.mxu0 %v2525_v31 }
 0x616   :  { %5786 = vmatprep.mubr.msk.f32.mxu0 %vm8506_vm9, %v8459_v48  ;;  %vm8511_vm9 = vcmp.eq.s32.totalorder %v7286_v59, %v7156_v32  ;;  %5865 = vmatpush3.msra.mxu0 %v2525_v31 }
 0x617   :  { %5866 = vmatprep.subr.mxu0 %v2524_v44 }
 0x618   :  { %5867 = vmatpush3.msra.mxu0 %v2524_v44 }
 0x619   :  { %5787 = vmatmul.mubr.msk.f32.gmra.mxu0 %vm8507_vm10, %v8459_v48  ;;  %vm8512_vm10 = vcmp.eq.s32.totalorder %v7291_v41, %v7156_v32  ;;  %5868 = vmatprep.subr.mxu0 %v2523_v0 }
 0x61a   :  { %5789 = vmatprep.mubr.msk.f32.mxu0 %vm8508_vm6, %v8459_v48  ;;  %vm8513_vm6 = vcmp.eq.s32.totalorder %v7309_v24, %v7156_v32  ;;  %5869 = vmatpush3.msra.mxu0 %v2523_v0  ;;  %v8521_v0 = vld [vmem:[#allocation54_spill] sm:$0xff] }
 0x61b   :  { %5870 = vmatprep.subr.mxu0 %v2522_v14 }
 0x61c   :  { %5871 = vmatpush3.msra.mxu0 %v2522_v14  ;;  %v2305_v14 = vmul.f32 %v7747_v7, %v8521_v0  ;;  %v6473_v0 = vld [vmem:[#allocation9 + $0x38] sm:$0xff] }
 0x61d   :  { %5790 = vmatmul.mubr.msk.f32.gmra.mxu0 %vm8509_vm7, %v8459_v48  ;;  %5872 = vmatprep.subr.mxu0 %v2521_v20 }
 0x61e   :  { %5792 = vmatprep.mubr.msk.f32.mxu0 %vm8510_vm8, %v8459_v48  ;;  %5873 = vmatpush3.msra.mxu0 %v2521_v20  ;;  %v2744_v20 = vld [vmem:[#allocation12 + $0x440] sm:$0xff] }
 0x61f   :  { %5874 = vmatprep.subr.mxu0 %v2520_v37 }
 0x620   :  { %5875 = vmatpush3.msra.mxu0 %v2520_v37  ;;  %v8522_v37 = vld [vmem:[#allocation53_spill] sm:$0xff] }
 0x621   :  { %5793 = vmatmul.mubr.msk.f32.gmra.mxu0 %vm8511_vm9, %v8459_v48  ;;  %5876 = vmatprep.subr.mxu0 %v2519_v19 }
 0x622   :  { %5795 = vmatprep.mubr.msk.f32.mxu0 %vm8512_vm10, %v8459_v48  ;;  %5877 = vmatpush3.msra.mxu0 %v2519_v19  ;;  %v2306_v19 = vmul.f32 %v7747_v7, %v8522_v37  ;;  %v6476_v37 = vld [vmem:[#allocation9 + $0x50] sm:$0xff]  ;;  %vm8579_vm10 = vcmp.eq.s32.totalorder %v7224_v49, %v7156_v32 }
 0x623   :  { %5878 = vmatprep.subr.mxu0 %v2518_v60  ;;  %v3426_v49 = vld [vmem:[#allocation12 + $0x510] sm:$0xff] }
 0x624   :  { %5879 = vmatpush3.msra.mxu0 %v2518_v60 }
 0x625   :  { %5796 = vmatmul.mubr.msk.f32.gmra.mxu0 %vm294_vm13, %v8459_v48  ;;  %5880 = vmatprep.subr.mxu0 %v2517_v22 }
 0x626   :  { %5798 = vmatprep.mubr.msk.f32.mxu0 %vm8513_vm6, %v8459_v48  ;;  %5881 = vmatpush3.msra.mxu0 %v2517_v22  ;;  %vm8580_vm6 = vcmp.eq.s32.totalorder %v7227_v62, %v7156_v32  ;;  %v3425_v62 = vld [vmem:[#allocation12 + $0x508] sm:$0xff] }
 0x627   :  { %5882 = vmatprep.subr.mxu0 %v2516_v55 }
 0x628   :  { %5883 = vmatpush3.msra.mxu0 %v2516_v55  ;;  %v2743_v55 = vld [vmem:[#allocation12 + $0x438] sm:$0xff] }
 0x629   :  { %5799 = vmatmul.mubr.msk.f32.gmra.mxu0 %vm296_vm14, %v8459_v48 }
 0x62a   :  { %5801 = vmatprep.mubr.msk.f32.mxu0 %vm297_vm15, %v8459_v48 }
 0x62d   :  { %5802 = vmatmul.mubr.msk.f32.gmra.mxu0 %vm298_vm11, %v8459_v48 }
 0x6d1   :  { %v5782_v21 = vpop.f32.mrf.mxu0 }
 0x6d2   :  { %v2314_v16 = vadd.f32 %v5782_v21, %v2298_v42  ;;  %v2307_v42 = vmul.f32 %v7747_v7, %v8523_v11 }
 0x6d3   :  { %v2216_v51 = vpop.f32.mrf.mxu0 }
 0x6d4   :  { %v2313_v58 = vadd.f32 %v2297_v30, %v2216_v51  ;;  %v2742_v51 = vld [vmem:[#allocation12 + $0x430] sm:$0xff] }
 0x6d5   :  { %v5785_v18 = vpop.f32.mrf.mxu0 }
 0x6d6   :  { %5836 = vmatprep.mubr.f32.mxu1 %v2313_v58  ;;  %v2316_v23 = vadd.f32 %v5785_v18, %v2300_v63  ;;  %v8524_v58 = vld [vmem:[#allocation51_spill] sm:$0xff]  ;;  %v8525_v63 = vld [vmem:[#allocation50_spill] sm:$0xff] }
 0x6d7   :  { %v2226_v33 = vpop.f32.mrf.mxu0  ;;  %5837 = vmatmul.mubr.f32.vlgmr.msra.gmra.mxu1 %v2314_v16  ;;  %v2308_v16 = vmul.f32 %v7747_v7, %v8524_v58  ;;  %v2513_v58 = vld [vmem:[#allocation12 + $0x388] sm:$0xff] }
 0x6d8   :  { %v2315_v28 = vadd.f32 %v2299_v57, %v2226_v33  ;;  %5917 = vmatpush3.msra.mxu1 %v2751_v4  ;;  %v2741_v57 = vld [vmem:[#allocation12 + $0x428] sm:$0xff]  ;;  %v2309_v33 = vmul.f32 %v7747_v7, %v8525_v63 }
 0x6d9   :  { %v5788_v61 = vpop.f32.mrf.mxu0  ;;  %5918 = vmatprep.subr.mxu1 %v2750_v52 }
 0x6da   :  { %5839 = vmatprep.mubr.f32.mxu1 %v2315_v28  ;;  %5919 = vmatpush3.msra.mxu1 %v2750_v52  ;;  %v2318_v29 = vadd.f32 %v5788_v61, %v2302_v39  ;;  %v2740_v28 = vld [vmem:[#allocation12 + $0x420] sm:$0xff] }
 0x6db   :  { %v2236_v43 = vpop.f32.mrf.mxu0  ;;  %5840 = vmatmul.mubr.f32.gmra.mxu1 %v2316_v23  ;;  %5920 = vmatprep.subr.mxu1 %v2749_v46  ;;  %v8527_v39 = vld [vmem:[#allocation48_spill] sm:$0xff] }
 0x6dc   :  { %v2317_v8 = vadd.f32 %v2301_v54, %v2236_v43  ;;  %5921 = vmatpush3.msra.mxu1 %v2749_v46  ;;  %v8526_v46 = vld [vmem:[#allocation49_spill] sm:$0xff]  ;;  %v2739_v54 = vld [vmem:[#allocation12 + $0x418] sm:$0xff]  ;;  %v2311_v43 = vmul.f32 %v7747_v7, %v8527_v39 }
 0x6dd   :  { %v5791_v15 = vpop.f32.mrf.mxu0  ;;  %5922 = vmatprep.subr.mxu1 %v2748_v47  ;;  %v2310_v23 = vmul.f32 %v7747_v7, %v8526_v46 }
 0x6de   :  { %5842 = vmatprep.mubr.f32.mxu1 %v2317_v8  ;;  %5923 = vmatpush3.msra.mxu1 %v2748_v47  ;;  %v2320_v31 = vadd.f32 %v5791_v15, %v2304_v13  ;;  %v2738_v8 = vld [vmem:[#allocation12 + $0x410] sm:$0xff]  ;;  %v6466_v13 = vld [vmem:[#allocation9] sm:$0xff] }
 0x6df   :  { %v2246_v4 = vpop.f32.mrf.mxu0  ;;  %5843 = vmatmul.mubr.f32.gmra.mxu1 %v2318_v29  ;;  %5924 = vmatprep.subr.mxu1 %v2747_v26 }
 0x6e0   :  { %v2319_v35 = vadd.f32 %v2303_v9, %v2246_v4  ;;  %5925 = vmatpush3.msra.mxu1 %v2747_v26  ;;  %v8528_v26 = vld [vmem:[#allocation47_spill] sm:$0xff]  ;;  %v2737_v9 = vld [vmem:[#allocation12 + $0x408] sm:$0xff] }
 0x6e1   :  { %v5794_v44 = vpop.f32.mrf.mxu0  ;;  %5926 = vmatprep.subr.mxu1 %v2746_v12  ;;  %v2312_v29 = vmul.f32 %v7747_v7, %v8528_v26  ;;  %v6467_v4 = vld [vmem:[#allocation9 + $0x8] sm:$0xff]  ;;  %v6468_v7 = vld [vmem:[#allocation9 + $0x10] sm:$0xff] }
 0x6e2   :  { %5845 = vmatprep.mubr.f32.mxu1 %v2319_v35  ;;  %5927 = vmatpush3.msra.mxu1 %v2746_v12  ;;  %v2322_v21 = vadd.f32 %v5794_v44, %v2306_v19  ;;  %v6469_v35 = vld [vmem:[#allocation9 + $0x18] sm:$0xff]  ;;  %v6472_v44 = vld [vmem:[#allocation9 + $0x30] sm:$0xff] }
 0x6e3   :  { %v2256_v60 = vpop.f32.mrf.mxu0  ;;  %5846 = vmatmul.mubr.f32.gmra.mxu1 %v2320_v31  ;;  %5928 = vmatprep.subr.mxu1 %v2745_v50  ;;  %v6471_v31 = vld [vmem:[#allocation9 + $0x28] sm:$0xff]  ;;  %v6477_v19 = vld [vmem:[#allocation9 + $0x58] sm:$0xff] }
 0x6e4   :  { %v2321_v22 = vadd.f32 %v2305_v14, %v2256_v60  ;;  %5929 = vmatpush3.msra.mxu1 %v2745_v50  ;;  %v6470_v50 = vld [vmem:[#allocation9 + $0x20] sm:$0xff] }
 0x6e5   :  { %v5797_v30 = vpop.f32.mrf.mxu0  ;;  %5930 = vmatprep.subr.mxu1 %v2744_v20  ;;  %v6474_v14 = vld [vmem:[#allocation9 + $0x40] sm:$0xff] }
 0x6e6   :  { %5848 = vmatprep.mubr.f32.mxu1 %v2321_v22  ;;  %5931 = vmatpush3.msra.mxu1 %v2744_v20  ;;  %v2324_v52 = vadd.f32 %v5797_v30, %v2308_v16  ;;  %v6475_v20 = vld [vmem:[#allocation9 + $0x48] sm:$0xff]  ;;  %v6478_v60 = vld [vmem:[#allocation9 + $0x60] sm:$0xff] }
 0x6e7   :  { %v2266_v18 = vpop.f32.mrf.mxu0  ;;  %5849 = vmatmul.mubr.f32.gmra.mxu1 %v2322_v21  ;;  %5932 = vmatprep.subr.mxu1 %v2743_v55  ;;  %v6479_v22 = vld [vmem:[#allocation9 + $0x68] sm:$0xff]  ;;  %v6481_v21 = vld [vmem:[#allocation9 + $0x78] sm:$0xff]  ;;  %v8529_v30 = vld [vmem:[#allocation23_spill] sm:$0xff] }
 0x6e8   :  { %v2323_v34 = vadd.f32 %v2307_v42, %v2266_v18  ;;  %5933 = vmatpush3.msra.mxu1 %v2743_v55  ;;  %v6480_v55 = vld [vmem:[#allocation9 + $0x70] sm:$0xff]  ;;  %v2515_v42 = vld [vmem:[#allocation12 + $0x398] sm:$0xff]  ;;  %v2512_v16 = vld [vmem:[#allocation12 + $0x380] sm:$0xff] }
 0x6e9   :  { %v5800_v3 = vpop.f32.mrf.mxu0  ;;  %5934 = vmatprep.subr.mxu1 %v2742_v51  ;;  %5884 = vmatprep.subr.mxu0 %v2515_v42  ;;  %v7785_v18 = vld [vmem:[#allocation13 + $0x8] sm:$0xff] }
 0x6ea   :  { %5851 = vmatprep.mubr.f32.mxu1 %v2323_v34  ;;  %5935 = vmatpush3.msra.mxu1 %v2742_v51  ;;  %v2326_v47 = vadd.f32 %v5800_v3, %v2310_v23  ;;  %v2514_v51 = vld [vmem:[#allocation12 + $0x390] sm:$0xff]  ;;  %v8531_v34 = vld [vmem:[#allocation43_spill] sm:$0xff] }
 0x6eb   :  { %v2276_v61 = vpop.f32.mrf.mxu0  ;;  %5852 = vmatmul.mubr.f32.gmra.mxu1 %v2324_v52  ;;  %5936 = vmatprep.subr.mxu1 %v2741_v57 }
 0x6ec   :  { %v2325_v40 = vadd.f32 %v2309_v33, %v2276_v61  ;;  %5937 = vmatpush3.msra.mxu1 %v2741_v57  ;;  %5885 = vmatpush3.msra.mxu0 %v2515_v42  ;;  %v2349_v57 = vrot.slane %v7785_v18, %v8531_v34 }
 0x6ed   :  { %v5803_v17 = vpop.f32.mrf.mxu0  ;;  %5938 = vmatprep.subr.mxu1 %v2740_v28  ;;  %5886 = vmatprep.subr.mxu0 %v2514_v51 }
 0x6ee   :  { %5854 = vmatprep.mubr.f32.mxu1 %v2325_v40  ;;  %5939 = vmatpush3.msra.mxu1 %v2740_v28  ;;  %v2328_v12 = vadd.f32 %v5803_v17, %v2312_v29 }
 0x6ef   :  { %v2286_v15 = vpop.f32.mrf.mxu0  ;;  %5855 = vmatmul.mubr.f32.gmra.mxu1 %v2326_v47  ;;  %5940 = vmatprep.subr.mxu1 %v2739_v54 }
 0x6f0   :  { %v2327_v10 = vadd.f32 %v2311_v43, %v2286_v15  ;;  %5941 = vmatpush3.msra.mxu1 %v2739_v54  ;;  %5887 = vmatpush3.msra.mxu0 %v2514_v51 }
 0x6f1   :  { %5942 = vmatprep.subr.mxu1 %v2738_v8  ;;  %5888 = vmatprep.subr.mxu0 %v2513_v58 }
 0x6f2   :  { %5857 = vmatprep.mubr.f32.mxu1 %v2327_v10  ;;  %5943 = vmatpush3.msra.mxu1 %v2738_v8 }
 0x6f3   :  { %5858 = vmatmul.mubr.f32.gmra.mxu1 %v2328_v12  ;;  %5944 = vmatprep.subr.mxu1 %v2737_v9 }
 0x6f4   :  { %5945 = vmatpush3.msra.mxu1 %v2737_v9  ;;  %5948 = vmatprep.mubr.f32.mxu1 %v6466_v13 }
 0x6f5   :  { %5946 = vmatprep.subr.mxu1 %v2736_v56  ;;  %5889 = vmatpush3.msra.mxu0 %v2513_v58 }
 0x6f6   :  { %5947 = vmatpush3.msra.mxu1 %v2736_v56  ;;  %5890 = vmatprep.subr.mxu0 %v2512_v16 }
 0x6f7   :  { %5949 = vmatmul.mubr.f32.vlgmr.msra.gmra.mxu1 %v6467_v4  ;;  %5891 = vmatpush3.msra.mxu0 %v2512_v16 }
 0x6f8   :  { %5951 = vmatprep.mubr.f32.mxu1 %v6468_v7 }
 0x6fb   :  { %5952 = vmatmul.mubr.f32.gmra.mxu1 %v6469_v35 }
 0x6fc   :  { %5954 = vmatprep.mubr.f32.mxu1 %v6470_v50 }
 0x6ff   :  { %5955 = vmatmul.mubr.f32.gmra.mxu1 %v6471_v31 }
 0x700   :  { %5957 = vmatprep.mubr.f32.mxu1 %v6472_v44 }
 0x703   :  { %5958 = vmatmul.mubr.f32.gmra.mxu1 %v6473_v0 }
 0x704   :  { %5960 = vmatprep.mubr.f32.mxu1 %v6474_v14 }
 0x707   :  { %5961 = vmatmul.mubr.f32.gmra.mxu1 %v6475_v20 }
 0x708   :  { %5963 = vmatprep.mubr.f32.mxu1 %v6476_v37 }
 0x70b   :  { %5964 = vmatmul.mubr.f32.gmra.mxu1 %v6477_v19 }
 0x70c   :  { %5966 = vmatprep.mubr.f32.mxu1 %v6478_v60 }
 0x70f   :  { %5967 = vmatmul.mubr.f32.gmra.mxu1 %v6479_v22 }
 0x710   :  { %5969 = vmatprep.mubr.f32.mxu1 %v6480_v55 }
 0x713   :  { %5970 = vmatmul.mubr.f32.gmra.mxu1 %v6481_v21 }
 0x714   :  { %6060 = vmatprep.mubr.msk.f32.mxu1 %vm213_vm0, %v8459_v48 }
 0x797   :  { %v5838_v52 = vpop.f32.mrf.mxu1 }
 0x798   :  { %v2422_v3 = vadd.f32 %v5838_v52, %v2349_v57 }
 0x799   :  { %v2416_v63 = vpop.f32.mrf.mxu1 }
 0x79a   :  { %v2417_v33 = vadd.f32 %v2416_v63, %v2349_v57  ;;  %v2496_v23 = vmax.f32 %v2422_v3, 0.0 }
 0x79b   :  { %v5841_v28 = vpop.f32.mrf.mxu1 }
 0x79c   :  { %v2495_v46 = vmax.f32 %v2417_v33, 0.0  ;;  %v2432_v61 = vadd.f32 %v5841_v28, %v2349_v57 }
 0x79d   :  { %v2426_v40 = vpop.f32.mrf.mxu1 }
 0x79e   :  { %v2427_v54 = vadd.f32 %v2426_v40, %v2349_v57  ;;  %5892 = vmatprep.mubr.f32.mxu0 %v2495_v46  ;;  %v2498_v39 = vmax.f32 %v2432_v61, 0.0  ;;  %v2933_v46 = vld [vmem:[#allocation12 + $0x4f8] sm:$0xff]  ;;  %v2931_v61 = vld [vmem:[#allocation12 + $0x4e8] sm:$0xff]  ;;  %v2930_v40 = vld [vmem:[#allocation12 + $0x4e0] sm:$0xff] }
 0x79f   :  { %v5844_v47 = vpop.f32.mrf.mxu1  ;;  %5893 = vmatmul.mubr.f32.vlgmr.msra.gmra.mxu0 %v2496_v23  ;;  %5972 = vmatprep.subr.mxu0 %v2933_v46  ;;  %v2932_v23 = vld [vmem:[#allocation12 + $0x4f0] sm:$0xff] }
 0x7a0   :  { %v2497_v17 = vmax.f32 %v2427_v54, 0.0  ;;  %v2442_v43 = vadd.f32 %v5844_v47, %v2349_v57  ;;  %5973 = vmatpush3.msra.mxu0 %v2933_v46  ;;  %v2929_v54 = vld [vmem:[#allocation12 + $0x4d8] sm:$0xff]  ;;  %v2927_v47 = vld [vmem:[#allocation12 + $0x4c8] sm:$0xff] }
 0x7a1   :  { %v2436_v8 = vpop.f32.mrf.mxu1  ;;  %5974 = vmatprep.subr.mxu0 %v2932_v23 }
 0x7a2   :  { %v2437_v26 = vadd.f32 %v2436_v8, %v2349_v57  ;;  %5895 = vmatprep.mubr.f32.mxu0 %v2497_v17  ;;  %v2500_v10 = vmax.f32 %v2442_v43, 0.0  ;;  %5975 = vmatpush3.msra.mxu0 %v2932_v23  ;;  %v2926_v17 = vld [vmem:[#allocation12 + $0x4c0] sm:$0xff]  ;;  %v2924_v43 = vld [vmem:[#allocation12 + $0x4b0] sm:$0xff]  ;;  %v2923_v8 = vld [vmem:[#allocation12 + $0x4a8] sm:$0xff] }
 0x7a3   :  { %v5847_v29 = vpop.f32.mrf.mxu1  ;;  %5896 = vmatmul.mubr.f32.gmra.mxu0 %v2498_v39  ;;  %5976 = vmatprep.subr.mxu0 %v2931_v61  ;;  %v2925_v39 = vld [vmem:[#allocation12 + $0x4b8] sm:$0xff] }
 0x7a4   :  { %v2499_v15 = vmax.f32 %v2437_v26, 0.0  ;;  %v2452_v9 = vadd.f32 %v5847_v29, %v2349_v57  ;;  %5977 = vmatpush3.msra.mxu0 %v2931_v61  ;;  %v2922_v26 = vld [vmem:[#allocation12 + $0x4a0] sm:$0xff]  ;;  %v7789_v29 = vld [vmem:[#allocation13 + $0x10] sm:$0xff] }
 0x7a5   :  { %v2446_v12 = vpop.f32.mrf.mxu1  ;;  %5978 = vmatprep.subr.mxu0 %v2930_v40  ;;  %8532 = vst [vmem:[#allocation61_spill] sm:$0xff] %v7789_v29 }
 0x7a6   :  { %v2447_v56 = vadd.f32 %v2446_v12, %v2349_v57  ;;  %5898 = vmatprep.mubr.f32.mxu0 %v2499_v15  ;;  %v2502_v7 = vmax.f32 %v2452_v9, 0.0  ;;  %5979 = vmatpush3.msra.mxu0 %v2930_v40  ;;  %v8533_v9 = vld [vmem:[#allocation26_spill] sm:$0xff] }
 0x7a7   :  { %v5850_v13 = vpop.f32.mrf.mxu1  ;;  %5899 = vmatmul.mubr.f32.gmra.mxu0 %v2500_v10  ;;  %5980 = vmatprep.subr.mxu0 %v2929_v54  ;;  %v2921_v10 = vld [vmem:[#allocation12 + $0x498] sm:$0xff]  ;;  %v7793_v12 = vrot.slane %v7789_v29, %v8533_v9 }
 0x7a8   :  { %v2501_v4 = vmax.f32 %v2447_v56, 0.0  ;;  %v2462_v35 = vadd.f32 %v5850_v13, %v2349_v57  ;;  %5981 = vmatpush3.msra.mxu0 %v2929_v54  ;;  %v2920_v13 = vld [vmem:[#allocation12 + $0x490] sm:$0xff] }
 0x7a9   :  { %v2456_v50 = vpop.f32.mrf.mxu1 }
 0x7aa   :  { %v2457_v31 = vadd.f32 %v2456_v50, %v2349_v57  ;;  %5901 = vmatprep.mubr.f32.mxu0 %v2501_v4  ;;  %v2504_v14 = vmax.f32 %v2462_v35, 0.0  ;;  %v2919_v50 = vld [vmem:[#allocation12 + $0x488] sm:$0xff] }
 0x7ab   :  { %v5853_v44 = vpop.f32.mrf.mxu1  ;;  %5902 = vmatmul.mubr.f32.gmra.mxu0 %v2502_v7 }
 0x7ac   :  { %v2503_v0 = vmax.f32 %v2457_v31, 0.0  ;;  %v2472_v20 = vadd.f32 %v5853_v44, %v2349_v57 }
 0x7ad   :  { %v2466_v37 = vpop.f32.mrf.mxu1 }
 0x7ae   :  { %v2467_v19 = vadd.f32 %v2466_v37, %v2349_v57  ;;  %5904 = vmatprep.mubr.f32.mxu0 %v2503_v0  ;;  %v2506_v55 = vmax.f32 %v2472_v20, 0.0  ;;  %v2918_v20 = vld [vmem:[#allocation12 + $0x480] sm:$0xff] }
 0x7af   :  { %v5856_v60 = vpop.f32.mrf.mxu1  ;;  %5905 = vmatmul.mubr.f32.gmra.mxu0 %v2504_v14 }
 0x7b0   :  { %v2505_v22 = vmax.f32 %v2467_v19, 0.0  ;;  %v2482_v21 = vadd.f32 %v5856_v60, %v2349_v57 }
 0x7b1   :  { %v2476_v11 = vpop.f32.mrf.mxu1 }
 0x7b2   :  { %v2477_v42 = vadd.f32 %v2476_v11, %v2349_v57  ;;  %5907 = vmatprep.mubr.f32.mxu0 %v2505_v22  ;;  %v2508_v16 = vmax.f32 %v2482_v21, 0.0 }
 0x7b3   :  { %v5859_v51 = vpop.f32.mrf.mxu1  ;;  %5908 = vmatmul.mubr.f32.gmra.mxu0 %v2506_v55 }
 0x7b4   :  { %v2507_v58 = vmax.f32 %v2477_v42, 0.0  ;;  %v2492_v52 = vadd.f32 %v5859_v51, %v2349_v57 }
 0x7b5   :  { %v2486_v3 = vpop.f32.mrf.mxu1 }
 0x7b6   :  { %v2487_v63 = vadd.f32 %v2486_v3, %v2349_v57  ;;  %5910 = vmatprep.mubr.f32.mxu0 %v2507_v58  ;;  %v2510_v28 = vmax.f32 %v2492_v52, 0.0  ;;  %v2928_v57 = vld [vmem:[#allocation12 + $0x4d0] sm:$0xff] }
 0x7b7   :  { %5911 = vmatmul.mubr.f32.gmra.mxu0 %v2508_v16  ;;  %5982 = vmatprep.subr.mxu0 %v2928_v57  ;;  %v5950_v15 = vpop.f32.mrf.mxu1 }
 0x7b8   :  { %v2509_v33 = vmax.f32 %v2487_v63, 0.0  ;;  %5983 = vmatpush3.msra.mxu0 %v2928_v57  ;;  %v2828_v4 = vadd.f32 %v5950_v15, %v7793_v12 }
 0x7b9   :  { %5984 = vmatprep.subr.mxu0 %v2927_v47  ;;  %v2822_v56 = vpop.f32.mrf.mxu1 }
 0x7ba   :  { %5913 = vmatprep.mubr.f32.mxu0 %v2509_v33  ;;  %5985 = vmatpush3.msra.mxu0 %v2927_v47  ;;  %v2823_v7 = vadd.f32 %v2822_v56, %v7793_v12  ;;  %v2902_v44 = vmax.f32 %v2828_v4, 0.0 }
 0x7bb   :  { %5914 = vmatmul.mubr.f32.gmra.mxu0 %v2510_v28  ;;  %5986 = vmatprep.subr.mxu0 %v2926_v17  ;;  %v5953_v35 = vpop.f32.mrf.mxu1 }
 0x7bc   :  { %5987 = vmatpush3.msra.mxu0 %v2926_v17  ;;  %v2901_v31 = vmax.f32 %v2823_v7, 0.0  ;;  %v2838_v0 = vadd.f32 %v5953_v35, %v7793_v12 }
 0x7bd   :  { %5988 = vmatprep.subr.mxu0 %v2925_v39  ;;  %v2832_v14 = vpop.f32.mrf.mxu1 }
 0x7be   :  { %5989 = vmatpush3.msra.mxu0 %v2925_v39  ;;  %v2833_v37 = vadd.f32 %v2832_v14, %v7793_v12  ;;  %6004 = vmatprep.mubr.f32.mxu0 %v2901_v31  ;;  %v2904_v22 = vmax.f32 %v2838_v0, 0.0 }
 0x7bf   :  { %5990 = vmatprep.subr.mxu0 %v2924_v43  ;;  %v5956_v19 = vpop.f32.mrf.mxu1 }
 0x7c0   :  { %5991 = vmatpush3.msra.mxu0 %v2924_v43  ;;  %v2903_v60 = vmax.f32 %v2833_v37, 0.0  ;;  %v2848_v55 = vadd.f32 %v5956_v19, %v7793_v12 }
 0x7c1   :  { %5992 = vmatprep.subr.mxu0 %v2923_v8  ;;  %v2842_v21 = vpop.f32.mrf.mxu1 }
 0x7c2   :  { %5993 = vmatpush3.msra.mxu0 %v2923_v8  ;;  %v2843_v11 = vadd.f32 %v2842_v21, %v7793_v12  ;;  %v2906_v58 = vmax.f32 %v2848_v55, 0.0 }
 0x7c3   :  { %5994 = vmatprep.subr.mxu0 %v2922_v26  ;;  %v5959_v42 = vpop.f32.mrf.mxu1 }
 0x7c4   :  { %5995 = vmatpush3.msra.mxu0 %v2922_v26  ;;  %v2905_v51 = vmax.f32 %v2843_v11, 0.0  ;;  %v2858_v16 = vadd.f32 %v5959_v42, %v7793_v12 }
 0x7c5   :  { %5996 = vmatprep.subr.mxu0 %v2921_v10  ;;  %v2852_v52 = vpop.f32.mrf.mxu1 }
 0x7c6   :  { %5997 = vmatpush3.msra.mxu0 %v2921_v10  ;;  %v2853_v3 = vadd.f32 %v2852_v52, %v7793_v12  ;;  %v2908_v28 = vmax.f32 %v2858_v16, 0.0  ;;  %v8535_v52 = vld [vmem:[#allocation44_spill] sm:$0xff] }
 0x7c7   :  { %5998 = vmatprep.subr.mxu0 %v2920_v13  ;;  %v5962_v63 = vpop.f32.mrf.mxu1 }
 0x7c8   :  { %5999 = vmatpush3.msra.mxu0 %v2920_v13  ;;  %v2907_v33 = vmax.f32 %v2853_v3, 0.0  ;;  %v2868_v46 = vadd.f32 %v5962_v63, %v7793_v12  ;;  %v7825_v3 = vrot.slane %v7785_v18, %v8535_v52  ;;  %v8578_v52 = vld [vmem:[#allocation42_spill] sm:$0xff] }
 0x7c9   :  { %6000 = vmatprep.subr.mxu0 %v2919_v50  ;;  %v2862_v23 = vpop.f32.mrf.mxu1  ;;  %v8035_v34 = vrot.slane %v7789_v29, %v8578_v52 }
 0x7ca   :  { %6001 = vmatpush3.msra.mxu0 %v2919_v50  ;;  %v2863_v61 = vadd.f32 %v2862_v23, %v7793_v12  ;;  %v2910_v57 = vmax.f32 %v2868_v46, 0.0  ;;  %v8536_v46 = vld [vmem:[#allocation45_spill] sm:$0xff] }
 0x7cb   :  { %6002 = vmatprep.subr.mxu0 %v2918_v20  ;;  %v5965_v40 = vpop.f32.mrf.mxu1  ;;  %v7830_v23 = vrot.slane %v7785_v18, %v8536_v46 }
 0x7cc   :  { %6003 = vmatpush3.msra.mxu0 %v2918_v20  ;;  %v2909_v54 = vmax.f32 %v2863_v61, 0.0  ;;  %v2878_v47 = vadd.f32 %v5965_v40, %v7793_v12 }
 0x7cd   :  { %6005 = vmatmul.mubr.f32.vlgmr.msra.gmra.mxu0 %v2902_v44  ;;  %v2872_v17 = vpop.f32.mrf.mxu1 }
 0x7ce   :  { %6007 = vmatprep.mubr.f32.mxu0 %v2903_v60  ;;  %v2873_v39 = vadd.f32 %v2872_v17, %v7793_v12  ;;  %v2912_v26 = vmax.f32 %v2878_v47, 0.0 }
 0x7cf   :  { %v5968_v43 = vpop.f32.mrf.mxu1 }
 0x7d0   :  { %v2911_v8 = vmax.f32 %v2873_v39, 0.0  ;;  %v2888_v15 = vadd.f32 %v5968_v43, %v7793_v12 }
 0x7d1   :  { %6008 = vmatmul.mubr.f32.gmra.mxu0 %v2904_v22  ;;  %v2882_v10 = vpop.f32.mrf.mxu1 }
 0x7d2   :  { %6010 = vmatprep.mubr.f32.mxu0 %v2905_v51  ;;  %v2883_v56 = vadd.f32 %v2882_v10, %v7793_v12  ;;  %v2914_v7 = vmax.f32 %v2888_v15, 0.0 }
 0x7d3   :  { %v5971_v13 = vpop.f32.mrf.mxu1 }
 0x7d4   :  { %v2913_v4 = vmax.f32 %v2883_v56, 0.0  ;;  %v2898_v35 = vadd.f32 %v5971_v13, %v7793_v12 }
 0x7d5   :  { %6011 = vmatmul.mubr.f32.gmra.mxu0 %v2906_v58  ;;  %v2892_v50 = vpop.f32.mrf.mxu1 }
 0x7d6   :  { %6013 = vmatprep.mubr.f32.mxu0 %v2907_v33  ;;  %v2893_v31 = vadd.f32 %v2892_v50, %v7793_v12  ;;  %v2916_v0 = vmax.f32 %v2898_v35, 0.0 }
 0x7d8   :  { %v2915_v44 = vmax.f32 %v2893_v31, 0.0 }
 0x7d9   :  { %6014 = vmatmul.mubr.f32.gmra.mxu0 %v2908_v28 }
 0x7da   :  { %6016 = vmatprep.mubr.f32.mxu0 %v2909_v54 }
 0x7dd   :  { %6017 = vmatmul.mubr.f32.gmra.mxu0 %v2910_v57  ;;  %v8537_v57 = vld [vmem:[#allocation46_spill] sm:$0xff] }
 0x7de   :  { %6019 = vmatprep.mubr.f32.mxu0 %v2911_v8  ;;  %v7836_v47 = vrot.slane %v7785_v18, %v8537_v57 }
 0x7e1   :  { %6020 = vmatmul.mubr.f32.gmra.mxu0 %v2912_v26 }
 0x7e2   :  { %6022 = vmatprep.mubr.f32.mxu0 %v2913_v4 }
 0x7e5   :  { %6023 = vmatmul.mubr.f32.gmra.mxu0 %v2914_v7 }
 0x7e6   :  { %6025 = vmatprep.mubr.f32.mxu0 %v2915_v44 }
 0x7e9   :  { %6026 = vmatmul.mubr.f32.gmra.mxu0 %v2916_v0 }
 0x7ea   :  { %6116 = vmatprep.mubr.msk.f32.mxu0 %vm283_vm12, %v8459_v48 }
 0x85f   :  { %v7815_v20 = vpop.f32.mrf.mxu0 }
 0x861   :  { %v7817_v37 = vpop.f32.mrf.mxu0 }
 0x863   :  { %v7819_v19 = vpop.f32.mrf.mxu0 }
 0x865   :  { %v7821_v60 = vpop.f32.mrf.mxu0 }
 0x867   :  { %v5900_v12 = vpop.f32.mrf.mxu0 }
 0x869   :  { %v2618_v22 = vpop.f32.mrf.mxu0 }
 0x86b   :  { %v5903_v55 = vpop.f32.mrf.mxu0 }
 0x86c   :  { %v2634_v14 = vadd.f32 %v5903_v55, %v7825_v3 }
 0x86d   :  { %v2628_v21 = vpop.f32.mrf.mxu0 }
 0x86f   :  { %v5906_v11 = vpop.f32.mrf.mxu0 }
 0x870   :  { %v2644_v13 = vadd.f32 %v5906_v11, %v7825_v3 }
 0x871   :  { %v2638_v42 = vpop.f32.mrf.mxu0 }
 0x872   :  { %v2639_v50 = vadd.f32 %v2638_v42, %v7825_v3  ;;  %v2690_v11 = vmul.f32 %v7830_v23, %v2644_v13 }
 0x873   :  { %v5909_v51 = vpop.f32.mrf.mxu0 }
 0x874   :  { %v2654_v17 = vadd.f32 %v5909_v51, %v7825_v3 }
 0x875   :  { %v2648_v58 = vpop.f32.mrf.mxu0 }
 0x876   :  { %v2649_v26 = vadd.f32 %v2648_v58, %v7825_v3  ;;  %v2692_v18 = vmul.f32 %v7830_v23, %v2654_v17  ;;  %v2629_v58 = vadd.f32 %v2628_v21, %v7825_v3  ;;  %v2710_v21 = vadd.f32 %v7836_v47, %v2690_v11 }
 0x877   :  { %v5912_v16 = vpop.f32.mrf.mxu0 }
 0x878   :  { %v2664_v33 = vadd.f32 %v5912_v16, %v7825_v3  ;;  %v2691_v31 = vmul.f32 %v7830_v23, %v2649_v26  ;;  %v2712_v42 = vadd.f32 %v7836_v47, %v2692_v18  ;;  %v2689_v16 = vmul.f32 %v7830_v23, %v2639_v50 }
 0x879   :  { %v2658_v63 = vpop.f32.mrf.mxu0  ;;  %v2609_v26 = vadd.f32 %v7821_v60, %v7825_v3 }
 0x87a   :  { %v2659_v61 = vadd.f32 %v2658_v63, %v7825_v3  ;;  %v2694_v39 = vmul.f32 %v7830_v23, %v2664_v33  ;;  %v2711_v55 = vadd.f32 %v7836_v47, %v2691_v31  ;;  %v2624_v33 = vadd.f32 %v5900_v12, %v7825_v3 }
 0x87b   :  { %v5915_v28 = vpop.f32.mrf.mxu0  ;;  %v2709_v12 = vadd.f32 %v7836_v47, %v2689_v16 }
 0x87c   :  { %v2674_v40 = vadd.f32 %v5915_v28, %v7825_v3  ;;  %v2693_v15 = vmul.f32 %v7830_v23, %v2659_v61  ;;  %v2714_v35 = vadd.f32 %v7836_v47, %v2694_v39  ;;  %v2688_v28 = vmul.f32 %v7830_v23, %v2634_v14 }
 0x87d   :  { %v2668_v54 = vpop.f32.mrf.mxu0  ;;  %v7876_v61 = vmax.f32 %v2712_v42, 0.0  ;;  %v7883_v17 = vmax.f32 %v2711_v55, 0.0  ;;  %v2614_v39 = vadd.f32 %v7819_v19, %v7825_v3 }
 0x87e   :  { %v2696_v43 = vmul.f32 %v7830_v23, %v2674_v40  ;;  %v2669_v8 = vadd.f32 %v2668_v54, %v7825_v3  ;;  %v2713_v0 = vadd.f32 %v7836_v47, %v2693_v15  ;;  %v7862_v51 = vmax.f32 %v2714_v35, 0.0 }
 0x87f   :  { %8542 = vst [vmem:[#allocation56_spill] sm:$0xff] %v7876_v61  ;;  %v2619_v40 = vadd.f32 %v2618_v22, %v7825_v3  ;;  %v2687_v54 = vmul.f32 %v7830_v23, %v2629_v58  ;;  %8543 = vst [vmem:[#allocation55_spill] sm:$0xff] %v7883_v17  ;;  %v2708_v22 = vadd.f32 %v7836_v47, %v2688_v28 }
 0x880   :  { %v2695_v10 = vmul.f32 %v7830_v23, %v2669_v8  ;;  %v2716_v56 = vadd.f32 %v7836_v47, %v2696_v43  ;;  %8540 = vst [vmem:[#allocation58_spill] sm:$0xff] %v7862_v51  ;;  %v7869_v63 = vmax.f32 %v2713_v0, 0.0  ;;  %v2686_v43 = vmul.f32 %v7830_v23, %v2624_v33 }
 0x881   :  { %v7891_v8 = vmax.f32 %v2710_v21, 0.0  ;;  %v2685_v15 = vmul.f32 %v7830_v23, %v2619_v40  ;;  %v2707_v19 = vadd.f32 %v7836_v47, %v2687_v54  ;;  %v2684_v13 = vmul.f32 %v7830_v23, %v2614_v39  ;;  %v8560_v39 = vld [vmem:[#allocation33_spill] sm:$0xff]  ;;  %v3431_v21 = vld [vmem:[#allocation12 + $0x538] sm:$0xff] }
 0x882   :  { %v7848_v4 = vmax.f32 %v2716_v56, 0.0  ;;  %v2715_v7 = vadd.f32 %v7836_v47, %v2695_v10  ;;  %8541 = vst [vmem:[#allocation57_spill] sm:$0xff] %v7869_v63  ;;  %v7899_v10 = vmax.f32 %v2709_v12, 0.0  ;;  %v2604_v56 = vadd.f32 %v7815_v20, %v7825_v3  ;;  %v8558_v12 = vld [vmem:[#allocation32_spill] sm:$0xff]  ;;  %v3430_v40 = vld [vmem:[#allocation12 + $0x530] sm:$0xff] }
 0x883   :  { %8544 = vst [vmem:[#allocation54_spill] sm:$0xff] %v7891_v8  ;;  %v7907_v18 = vmax.f32 %v2708_v22, 0.0  ;;  %v2706_v60 = vadd.f32 %v7836_v47, %v2686_v43  ;;  %v2683_v35 = vmul.f32 %v7830_v23, %v2609_v26  ;;  %v7915_v50 = vmax.f32 %v2707_v19, 0.0  ;;  %v8562_v43 = vld [vmem:[#allocation34_spill] sm:$0xff]  ;;  %v8564_v22 = vld [vmem:[#allocation35_spill] sm:$0xff]  ;;  %v8566_v26 = vld [vmem:[#allocation36_spill] sm:$0xff] }
 0x884   :  { %8538 = vst [vmem:[#allocation60_spill] sm:$0xff] %v7848_v4  ;;  %6028 = vmatprep.subr.mxu1 %v7848_v4  ;;  %v7855_v44 = vmax.f32 %v2715_v7, 0.0  ;;  %8545 = vst [vmem:[#allocation53_spill] sm:$0xff] %v7899_v10  ;;  %v2599_v7 = vadd.f32 %v7817_v37, %v7825_v3  ;;  %v2705_v20 = vadd.f32 %v7836_v47, %v2685_v15  ;;  %v8568_v15 = vld [vmem:[#allocation37_spill] sm:$0xff]  ;;  %v8570_v19 = vld [vmem:[#allocation38_spill] sm:$0xff] }
 0x885   :  { %6029 = vmatpush3.msra.mxu1 %v7848_v4  ;;  %8546 = vst [vmem:[#allocation52_spill] sm:$0xff] %v7907_v18  ;;  %8547 = vst [vmem:[#allocation51_spill] sm:$0xff] %v7915_v50  ;;  %v2682_v31 = vmul.f32 %v7830_v23, %v2604_v56  ;;  %v7921_v0 = vmax.f32 %v2706_v60, 0.0  ;;  %v2704_v14 = vadd.f32 %v7836_v47, %v2684_v13  ;;  %v8572_v56 = vld [vmem:[#allocation39_spill] sm:$0xff]  ;;  %v8574_v13 = vld [vmem:[#allocation40_spill] sm:$0xff] }
 0x886   :  { %8539 = vst [vmem:[#allocation59_spill] sm:$0xff] %v7855_v44  ;;  %6030 = vmatprep.subr.mxu1 %v7855_v44  ;;  %v2681_v37 = vmul.f32 %v7830_v23, %v2599_v7  ;;  %v7927_v3 = vmax.f32 %v2705_v20, 0.0  ;;  %v2703_v11 = vadd.f32 %v7836_v47, %v2683_v35  ;;  %vm8559_vm0 = vcmp.eq.s32.totalorder %v8529_v30, %v8558_v12  ;;  %v8576_v60 = vld [vmem:[#allocation41_spill] sm:$0xff]  ;;  %v3439_v7 = vld [vmem:[#allocation12 + $0x578] sm:$0xff] }
 0x887   :  { %6031 = vmatpush3.msra.mxu1 %v7855_v44  ;;  %8548 = vst [vmem:[#allocation50_spill] sm:$0xff] %v7921_v0  ;;  %v7932_v42 = vmax.f32 %v2704_v14, 0.0  ;;  %v2702_v58 = vadd.f32 %v7836_v47, %v2682_v31  ;;  %vm8571_vm12 = vcmp.eq.s32.totalorder %v8529_v30, %v8570_v19  ;;  %vm8573_vm7 = vcmp.eq.s32.totalorder %v8529_v30, %v8572_v56  ;;  %v3438_v35 = vld [vmem:[#allocation12 + $0x570] sm:$0xff]  ;;  %v3437_v31 = vld [vmem:[#allocation12 + $0x568] sm:$0xff]  ;;  %v3436_v14 = vld [vmem:[#allocation12 + $0x560] sm:$0xff] }
 0x888   :  { %6032 = vmatprep.subr.mxu1 %v7862_v51  ;;  %8549 = vst [vmem:[#allocation49_spill] sm:$0xff] %v7927_v3  ;;  %v7937_v16 = vmax.f32 %v2703_v11, 0.0  ;;  %v2701_v23 = vadd.f32 %v7836_v47, %v2681_v37  ;;  %vm8575_vm8 = vcmp.eq.s32.totalorder %v8529_v30, %v8574_v13  ;;  %vm8577_vm9 = vcmp.eq.s32.totalorder %v8529_v30, %v8576_v60  ;;  %v3435_v11 = vld [vmem:[#allocation12 + $0x558] sm:$0xff]  ;;  %v3432_v47 = vld [vmem:[#allocation12 + $0x540] sm:$0xff]  ;;  %v3429_v12 = vld [vmem:[#allocation12 + $0x528] sm:$0xff] }
 0x889   :  { %6033 = vmatpush3.msra.mxu1 %v7862_v51  ;;  %8550 = vst [vmem:[#allocation48_spill] sm:$0xff] %v7932_v42  ;;  %v7942_v55 = vmax.f32 %v2702_v58, 0.0  ;;  %v3434_v58 = vld [vmem:[#allocation12 + $0x550] sm:$0xff] }
 0x88a   :  { %6034 = vmatprep.subr.mxu1 %v7869_v63  ;;  %8551 = vst [vmem:[#allocation47_spill] sm:$0xff] %v7937_v16  ;;  %v7946_v33 = vmax.f32 %v2701_v23, 0.0  ;;  %v3433_v23 = vld [vmem:[#allocation12 + $0x548] sm:$0xff] }
 0x88b   :  { %6035 = vmatpush3.msra.mxu1 %v7869_v63  ;;  %8552 = vst [vmem:[#allocation23_spill] sm:$0xff] %v7942_v55 }
 0x88c   :  { %6036 = vmatprep.subr.mxu1 %v7876_v61 }
 0x88d   :  { %6037 = vmatpush3.msra.mxu1 %v7876_v61  ;;  %v8011_v20 = vpop.f32.mrf.mxu0 }
 0x88e   :  { %6038 = vmatprep.subr.mxu1 %v7883_v17 }
 0x88f   :  { %6039 = vmatpush3.msra.mxu1 %v7883_v17  ;;  %v8013_v37 = vpop.f32.mrf.mxu0 }
 0x890   :  { %6040 = vmatprep.subr.mxu1 %v7891_v8 }
 0x891   :  { %6041 = vmatpush3.msra.mxu1 %v7891_v8 }
 0x892   :  { %6042 = vmatprep.subr.mxu1 %v7899_v10 }
 0x893   :  { %6043 = vmatpush3.msra.mxu1 %v7899_v10 }
 0x894   :  { %6044 = vmatprep.subr.mxu1 %v7907_v18 }
 0x895   :  { %6045 = vmatpush3.msra.mxu1 %v7907_v18 }
 0x896   :  { %6046 = vmatprep.subr.mxu1 %v7915_v50 }
 0x897   :  { %6047 = vmatpush3.msra.mxu1 %v7915_v50 }
 0x898   :  { %6048 = vmatprep.subr.mxu1 %v7921_v0 }
 0x899   :  { %6049 = vmatpush3.msra.mxu1 %v7921_v0 }
 0x89a   :  { %6050 = vmatprep.subr.mxu1 %v7927_v3 }
 0x89b   :  { %6051 = vmatpush3.msra.mxu1 %v7927_v3 }
 0x89c   :  { %6052 = vmatprep.subr.mxu1 %v7932_v42 }
 0x89d   :  { %6053 = vmatpush3.msra.mxu1 %v7932_v42 }
 0x89e   :  { %6054 = vmatprep.subr.mxu1 %v7937_v16 }
 0x89f   :  { %6055 = vmatpush3.msra.mxu1 %v7937_v16 }
 0x8a0   :  { %6056 = vmatprep.subr.mxu1 %v7942_v55 }
 0x8a1   :  { %6057 = vmatpush3.msra.mxu1 %v7942_v55 }
 0x8a2   :  { %6058 = vmatprep.subr.mxu1 %v7946_v33 }
 0x8a3   :  { %6059 = vmatpush3.msra.mxu1 %v7946_v33 }
 0x8a4   :  { %6061 = vmatmul.mubr.msk.f32.vlgmr.msra.gmra.mxu1 %vm214_vm2, %v8459_v48  ;;  %vm8563_vm2 = vcmp.eq.s32.totalorder %v8529_v30, %v8562_v43  ;;  %6140 = vmatprep.subr.mxu1 %v3439_v7 }
 0x8a5   :  { %6063 = vmatprep.mubr.msk.f32.mxu1 %vm215_vm1, %v8459_v48  ;;  %vm8561_vm1 = vcmp.eq.s32.totalorder %v8529_v30, %v8560_v39  ;;  %6141 = vmatpush3.msra.mxu1 %v3439_v7  ;;  %v3428_v39 = vld [vmem:[#allocation12 + $0x520] sm:$0xff] }
 0x8a6   :  { %6142 = vmatprep.subr.mxu1 %v3438_v35 }
 0x8a7   :  { %6143 = vmatpush3.msra.mxu1 %v3438_v35 }
 0x8a8   :  { %6064 = vmatmul.mubr.msk.f32.gmra.mxu1 %vm216_vm3, %v8459_v48  ;;  %vm8565_vm3 = vcmp.eq.s32.totalorder %v8529_v30, %v8564_v22  ;;  %6144 = vmatprep.subr.mxu1 %v3437_v31  ;;  %v3427_v22 = vld [vmem:[#allocation12 + $0x518] sm:$0xff] }
 0x8a9   :  { %6066 = vmatprep.mubr.msk.f32.mxu1 %vm217_vm4, %v8459_v48  ;;  %vm8567_vm4 = vcmp.eq.s32.totalorder %v8529_v30, %v8566_v26  ;;  %6145 = vmatpush3.msra.mxu1 %v3437_v31 }
 0x8aa   :  { %6146 = vmatprep.subr.mxu1 %v3436_v14 }
 0x8ab   :  { %6147 = vmatpush3.msra.mxu1 %v3436_v14 }
 0x8ac   :  { %6067 = vmatmul.mubr.msk.f32.gmra.mxu1 %vm218_vm5, %v8459_v48  ;;  %vm8569_vm5 = vcmp.eq.s32.totalorder %v8529_v30, %v8568_v15  ;;  %v8015_v30 = vpop.f32.mrf.mxu0  ;;  %6148 = vmatprep.subr.mxu1 %v3435_v11 }
 0x8ad   :  { %6069 = vmatprep.mubr.msk.f32.mxu1 %vm8559_vm0, %v8459_v48  ;;  %6149 = vmatpush3.msra.mxu1 %v3435_v11  ;;  %vm8581_vm0 = vcmp.eq.s32.totalorder %v7232_v53, %v7156_v32  ;;  %v3424_v53 = vld [vmem:[#allocation12 + $0x500] sm:$0xff] }
 0x8ae   :  { %6150 = vmatprep.subr.mxu1 %v3434_v58  ;;  %v8017_v28 = vpop.f32.mrf.mxu0 }
 0x8af   :  { %6151 = vmatpush3.msra.mxu1 %v3434_v58 }
 0x8b0   :  { %6070 = vmatmul.mubr.msk.f32.gmra.mxu1 %vm8561_vm1, %v8459_v48  ;;  %6152 = vmatprep.subr.mxu1 %v3433_v23  ;;  %v8019_v54 = vpop.f32.mrf.mxu0  ;;  %vm8582_vm1 = vcmp.eq.s32.totalorder %v7237_v45, %v7156_v32  ;;  %v3621_v45 = vld [vmem:[#allocation12 + $0x5f8] sm:$0xff] }
 0x8b1   :  { %6072 = vmatprep.mubr.msk.f32.mxu1 %vm8563_vm2, %v8459_v48  ;;  %6153 = vmatpush3.msra.mxu1 %v3433_v23  ;;  %vm8583_vm2 = vcmp.eq.s32.totalorder %v7250_v1, %v7156_v32  ;;  %v3620_v1 = vld [vmem:[#allocation12 + $0x5f0] sm:$0xff] }
 0x8b2   :  { %6154 = vmatprep.subr.mxu1 %v3432_v47  ;;  %v8021_v43 = vpop.f32.mrf.mxu0 }
 0x8b3   :  { %6155 = vmatpush3.msra.mxu1 %v3432_v47 }
 0x8b4   :  { %6073 = vmatmul.mubr.msk.f32.gmra.mxu1 %vm8565_vm3, %v8459_v48  ;;  %6156 = vmatprep.subr.mxu1 %v3431_v21  ;;  %v6015_v26 = vpop.f32.mrf.mxu0  ;;  %vm8584_vm3 = vcmp.eq.s32.totalorder %v7255_v2, %v7156_v32  ;;  %v3619_v2 = vld [vmem:[#allocation12 + $0x5e8] sm:$0xff] }
 0x8b5   :  { %6075 = vmatprep.mubr.msk.f32.mxu1 %vm8567_vm4, %v8459_v48  ;;  %6157 = vmatpush3.msra.mxu1 %v3431_v21  ;;  %vm8585_vm4 = vcmp.eq.s32.totalorder %v7268_v5, %v7156_v32  ;;  %v3618_v5 = vld [vmem:[#allocation12 + $0x5e0] sm:$0xff] }
 0x8b6   :  { %6158 = vmatprep.subr.mxu1 %v3430_v40  ;;  %v3034_v15 = vpop.f32.mrf.mxu0 }
 0x8b7   :  { %6159 = vmatpush3.msra.mxu1 %v3430_v40 }
 0x8b8   :  { %6076 = vmatmul.mubr.msk.f32.gmra.mxu1 %vm8569_vm5, %v8459_v48  ;;  %6160 = vmatprep.subr.mxu1 %v3429_v12  ;;  %v6018_v19 = vpop.f32.mrf.mxu0  ;;  %vm8586_vm5 = vcmp.eq.s32.totalorder %v7273_v6, %v7156_v32  ;;  %v3615_v6 = vld [vmem:[#allocation12 + $0x5c8] sm:$0xff] }
 0x8b9   :  { %6078 = vmatprep.mubr.msk.f32.mxu1 %vm8571_vm12, %v8459_v48  ;;  %6161 = vmatpush3.msra.mxu1 %v3429_v12  ;;  %vm8587_vm12 = vcmp.eq.s32.totalorder %v7286_v59, %v7156_v32  ;;  %v3614_v59 = vld [vmem:[#allocation12 + $0x5c0] sm:$0xff] }
 0x8ba   :  { %6162 = vmatprep.subr.mxu1 %v3428_v39  ;;  %v3044_v60 = vpop.f32.mrf.mxu0 }
 0x8bb   :  { %6163 = vmatpush3.msra.mxu1 %v3428_v39 }
 0x8bc   :  { %6079 = vmatmul.mubr.msk.f32.gmra.mxu1 %vm8573_vm7, %v8459_v48  ;;  %6164 = vmatprep.subr.mxu1 %v3427_v22  ;;  %v6021_v31 = vpop.f32.mrf.mxu0  ;;  %vm8588_vm7 = vcmp.eq.s32.totalorder %v7291_v41, %v7156_v32  ;;  %v3613_v41 = vld [vmem:[#allocation12 + $0x5b8] sm:$0xff] }
 0x8bd   :  { %6081 = vmatprep.mubr.msk.f32.mxu1 %vm8575_vm8, %v8459_v48  ;;  %6165 = vmatpush3.msra.mxu1 %v3427_v22  ;;  %v3060_v42 = vadd.f32 %v6021_v31, %v8035_v34  ;;  %vm8589_vm8 = vcmp.eq.s32.totalorder %v7309_v24, %v7156_v32  ;;  %v3617_v32 = vld [vmem:[#allocation12 + $0x5d8] sm:$0xff]  ;;  %v3611_v24 = vld [vmem:[#allocation12 + $0x5a8] sm:$0xff] }
 0x8be   :  { %v3054_v58 = vpop.f32.mrf.mxu0  ;;  %6166 = vmatprep.subr.mxu1 %v3426_v49 }
 0x8bf   :  { %6167 = vmatpush3.msra.mxu1 %v3426_v49  ;;  %v8601_v49 = vld [vmem:[#allocation57_spill] sm:$0xff] }
 0x8c0   :  { %6082 = vmatmul.mubr.msk.f32.gmra.mxu1 %vm8577_vm9, %v8459_v48  ;;  %v6024_v21 = vpop.f32.mrf.mxu0  ;;  %6168 = vmatprep.subr.mxu1 %v3425_v62 }
 0x8c1   :  { %v3070_v61 = vadd.f32 %v6024_v21, %v8035_v34  ;;  %6169 = vmatpush3.msra.mxu1 %v3425_v62  ;;  %v3403_v62 = vmul.f32 %v3390_v27, %v8601_v49 }
 0x8c2   :  { %v3064_v39 = vpop.f32.mrf.mxu0  ;;  %6170 = vmatprep.subr.mxu1 %v3424_v53 }
 0x8c3   :  { %v3065_v18 = vadd.f32 %v3064_v39, %v8035_v34  ;;  %6171 = vmatpush3.msra.mxu1 %v3424_v53  ;;  %v8592_v39 = vld [vmem:[#allocation48_spill] sm:$0xff]  ;;  %v8602_v53 = vld [vmem:[#allocation58_spill] sm:$0xff] }
 0x8c4   :  { %v6027_v9 = vpop.f32.mrf.mxu0 }
 0x8c5   :  { %v3080_v51 = vadd.f32 %v6027_v9, %v8035_v34  ;;  %v3055_v9 = vadd.f32 %v3054_v58, %v8035_v34 }
 0x8c6   :  { %v3074_v4 = vpop.f32.mrf.mxu0 }
 0x8c7   :  { %v3075_v17 = vadd.f32 %v3074_v4, %v8035_v34  ;;  %v3050_v4 = vadd.f32 %v6018_v19, %v8035_v34 }
 0x964   :  { %v8023_v56 = vpop.f32.mrf.mxu1 }
 0x966   :  { %v8025_v13 = vpop.f32.mrf.mxu1 }
 0x968   :  { %v8027_v7 = vpop.f32.mrf.mxu1 }
 0x96a   :  { %v8029_v35 = vpop.f32.mrf.mxu1 }
 0x96c   :  { %v6068_v14 = vpop.f32.mrf.mxu1 }
 0x96e   :  { %v8031_v11 = vpop.f32.mrf.mxu1 }
 0x970   :  { %v6071_v23 = vpop.f32.mrf.mxu1 }
 0x972   :  { %v3179_v47 = vpop.f32.mrf.mxu1 }
 0x974   :  { %v6074_v40 = vpop.f32.mrf.mxu1 }
 0x976   :  { %v3189_v12 = vpop.f32.mrf.mxu1 }
 0x978   :  { %v6077_v22 = vpop.f32.mrf.mxu1 }
 0x979   :  { %v3205_v16 = vadd.f32 %v6077_v22, %v3060_v42  ;;  %v3394_v22 = vmul.f32 %v3390_v27, %v8592_v39 }
 0x97a   :  { %v3199_v57 = vpop.f32.mrf.mxu1 }
 0x97c   :  { %v6080_v46 = vpop.f32.mrf.mxu1 }
 0x97d   :  { %v3215_v50 = vadd.f32 %v6080_v46, %v3070_v61  ;;  %v3045_v46 = vadd.f32 %v3044_v60, %v8035_v34  ;;  %v3195_v61 = vadd.f32 %v6074_v40, %v3050_v4  ;;  %v8591_v40 = vld [vmem:[#allocation47_spill] sm:$0xff] }
 0x97e   :  { %v3209_v44 = vpop.f32.mrf.mxu1 }
 0x97f   :  { %v3210_v52 = vadd.f32 %v3209_v44, %v3065_v18  ;;  %v3241_v55 = vmax.f32 %v3215_v50, 0.0  ;;  %v3040_v44 = vadd.f32 %v6015_v26, %v8035_v34  ;;  %v3237_v50 = vmax.f32 %v3195_v61, 0.0 }
 0x980   :  { %v6083_v63 = vpop.f32.mrf.mxu1 }
 0x981   :  { %v3225_v8 = vadd.f32 %v6083_v63, %v3080_v51  ;;  %v3200_v51 = vadd.f32 %v3199_v57, %v3055_v9  ;;  %v3240_v63 = vmax.f32 %v3210_v52, 0.0  ;;  %v3185_v18 = vadd.f32 %v6071_v23, %v3040_v44 }
 0x982   :  { %v3219_v10 = vpop.f32.mrf.mxu1  ;;  %v3030_v52 = vadd.f32 %v8019_v54, %v8035_v34  ;;  %v3015_v54 = vadd.f32 %v8017_v28, %v8035_v34 }
 0x983   :  { %v3243_v0 = vmax.f32 %v3225_v8, 0.0  ;;  %v3220_v3 = vadd.f32 %v3219_v10, %v3075_v17  ;;  %v3239_v17 = vmax.f32 %v3205_v16, 0.0  ;;  %v3190_v8 = vadd.f32 %v3189_v12, %v3045_v46  ;;  %v8593_v46 = vld [vmem:[#allocation49_spill] sm:$0xff] }
 0x984   :  { %v3238_v10 = vmax.f32 %v3200_v51, 0.0  ;;  %v3175_v42 = vadd.f32 %v6068_v14, %v3030_v52  ;;  %v3235_v16 = vmax.f32 %v3185_v18, 0.0  ;;  %v3160_v31 = vadd.f32 %v8029_v35, %v3015_v54  ;;  %v8595_v18 = vld [vmem:[#allocation51_spill] sm:$0xff]  ;;  %v8596_v52 = vld [vmem:[#allocation52_spill] sm:$0xff] }
 0x985   :  { %v3242_v29 = vmax.f32 %v3220_v3, 0.0  ;;  %6084 = vmatprep.subr.mxu0 %v3243_v0  ;;  %v3025_v3 = vadd.f32 %v8021_v43, %v8035_v34  ;;  %v3010_v43 = vadd.f32 %v8011_v20, %v8035_v34  ;;  %v3393_v12 = vmul.f32 %v3390_v27, %v8591_v40 }
 0x986   :  { %6085 = vmatpush3.msra.mxu0 %v3243_v0  ;;  %v3236_v0 = vmax.f32 %v3190_v8, 0.0  ;;  %v3233_v60 = vmax.f32 %v3175_v42, 0.0  ;;  %v3395_v61 = vmul.f32 %v3390_v27, %v8593_v46 }
 0x987   :  { %6086 = vmatprep.subr.mxu0 %v3242_v29  ;;  %v3170_v26 = vadd.f32 %v8031_v11, %v3025_v3  ;;  %v3155_v11 = vadd.f32 %v8023_v56, %v3010_v43 }
 0x988   :  { %6087 = vmatpush3.msra.mxu0 %v3242_v29  ;;  %v3035_v29 = vadd.f32 %v3034_v15, %v8035_v34 }
 0x989   :  { %6088 = vmatprep.subr.mxu0 %v3241_v55  ;;  %v3232_v14 = vmax.f32 %v3170_v26, 0.0  ;;  %v3229_v23 = vmax.f32 %v3155_v11, 0.0  ;;  %v8600_v11 = vld [vmem:[#allocation56_spill] sm:$0xff] }
 0x98a   :  { %6089 = vmatpush3.msra.mxu0 %v3241_v55  ;;  %v3180_v57 = vadd.f32 %v3179_v47, %v3035_v29  ;;  %v3020_v55 = vadd.f32 %v8015_v30, %v8035_v34  ;;  %v3005_v30 = vadd.f32 %v8013_v37, %v8035_v34  ;;  %v3391_v34 = vmul.f32 %v3390_v27, %v7946_v33  ;;  %v8590_v37 = vld [vmem:[#allocation23_spill] sm:$0xff]  ;;  %v8594_v33 = vld [vmem:[#allocation50_spill] sm:$0xff] }
 0x98b   :  { %6090 = vmatprep.subr.mxu0 %v3240_v63  ;;  %v3392_v56 = vmul.f32 %v3390_v27, %v8590_v37  ;;  %v3607_v37 = vld [vmem:[#allocation12 + $0x588] sm:$0xff] }
 0x98c   :  { %6091 = vmatpush3.msra.mxu0 %v3240_v63  ;;  %v3234_v15 = vmax.f32 %v3180_v57, 0.0  ;;  %v3165_v19 = vadd.f32 %v8027_v7, %v3020_v55  ;;  %v3150_v28 = vadd.f32 %v8025_v13, %v3005_v30  ;;  %v3230_v7 = vmax.f32 %v3160_v31, 0.0  ;;  %v8597_v55 = vld [vmem:[#allocation53_spill] sm:$0xff] }
 0x98d   :  { %6092 = vmatprep.subr.mxu0 %v3239_v17  ;;  %v3398_v57 = vmul.f32 %v3390_v27, %v8596_v52  ;;  %v3399_v26 = vmul.f32 %v3390_v27, %v8597_v55 }
 0x98e   :  { %6093 = vmatpush3.msra.mxu0 %v3239_v17  ;;  %v3231_v58 = vmax.f32 %v3165_v19, 0.0  ;;  %v3228_v20 = vmax.f32 %v3150_v28, 0.0  ;;  %v3396_v17 = vmul.f32 %v3390_v27, %v8594_v33 }
 0x98f   :  { %6094 = vmatprep.subr.mxu0 %v3238_v10 }
 0x990   :  { %6095 = vmatpush3.msra.mxu0 %v3238_v10 }
 0x991   :  { %6096 = vmatprep.subr.mxu0 %v3237_v50 }
 0x992   :  { %6097 = vmatpush3.msra.mxu0 %v3237_v50  ;;  %v3397_v50 = vmul.f32 %v3390_v27, %v8595_v18 }
 0x993   :  { %6098 = vmatprep.subr.mxu0 %v3236_v0 }
 0x994   :  { %6099 = vmatpush3.msra.mxu0 %v3236_v0 }
 0x995   :  { %6100 = vmatprep.subr.mxu0 %v3235_v16 }
 0x996   :  { %6101 = vmatpush3.msra.mxu0 %v3235_v16 }
 0x997   :  { %6102 = vmatprep.subr.mxu0 %v3234_v15 }
 0x998   :  { %6103 = vmatpush3.msra.mxu0 %v3234_v15  ;;  %v8598_v15 = vld [vmem:[#allocation54_spill] sm:$0xff] }
 0x999   :  { %6104 = vmatprep.subr.mxu0 %v3233_v60  ;;  %v3400_v54 = vmul.f32 %v3390_v27, %v8598_v15 }
 0x99a   :  { %6105 = vmatpush3.msra.mxu0 %v3233_v60 }
 0x99b   :  { %6106 = vmatprep.subr.mxu0 %v3232_v14 }
 0x99c   :  { %6107 = vmatpush3.msra.mxu0 %v3232_v14  ;;  %v8599_v14 = vld [vmem:[#allocation55_spill] sm:$0xff] }
 0x99d   :  { %6108 = vmatprep.subr.mxu0 %v3231_v58  ;;  %v3401_v30 = vmul.f32 %v3390_v27, %v8599_v14 }
 0x99e   :  { %6109 = vmatpush3.msra.mxu0 %v3231_v58  ;;  %v3402_v58 = vmul.f32 %v3390_v27, %v8600_v11 }
 0x99f   :  { %6110 = vmatprep.subr.mxu0 %v3230_v7 }
 0x9a0   :  { %6111 = vmatpush3.msra.mxu0 %v3230_v7 }
 0x9a1   :  { %6112 = vmatprep.subr.mxu0 %v3229_v23 }
 0x9a2   :  { %6113 = vmatpush3.msra.mxu0 %v3229_v23 }
 0x9a3   :  { %6114 = vmatprep.subr.mxu0 %v3228_v20 }
 0x9a4   :  { %6115 = vmatpush3.msra.mxu0 %v3228_v20 }
 0x9a5   :  { %6117 = vmatmul.mubr.msk.f32.vlgmr.msra.gmra.mxu0 %vm8579_vm10, %v8459_v48  ;;  %6196 = vmatprep.subr.mxu0 %v3621_v45 }
 0x9a6   :  { %6119 = vmatprep.mubr.msk.f32.mxu0 %vm8580_vm6, %v8459_v48  ;;  %6197 = vmatpush3.msra.mxu0 %v3621_v45  ;;  %v3404_v45 = vmul.f32 %v3390_v27, %v8602_v53 }
 0x9a7   :  { %6198 = vmatprep.subr.mxu0 %v3620_v1 }
 0x9a8   :  { %6199 = vmatpush3.msra.mxu0 %v3620_v1 }
 0x9a9   :  { %6120 = vmatmul.mubr.msk.f32.gmra.mxu0 %vm8581_vm0, %v8459_v48  ;;  %6200 = vmatprep.subr.mxu0 %v3619_v2 }
 0x9aa   :  { %6122 = vmatprep.mubr.msk.f32.mxu0 %vm8582_vm1, %v8459_v48  ;;  %6201 = vmatpush3.msra.mxu0 %v3619_v2 }
 0x9ab   :  { %6202 = vmatprep.subr.mxu0 %v3618_v5 }
 0x9ac   :  { %6203 = vmatpush3.msra.mxu0 %v3618_v5 }
 0x9ad   :  { %6123 = vmatmul.mubr.msk.f32.gmra.mxu0 %vm8583_vm2, %v8459_v48  ;;  %6204 = vmatprep.subr.mxu0 %v3617_v32 }
 0x9ae   :  { %6125 = vmatprep.mubr.msk.f32.mxu0 %vm8584_vm3, %v8459_v48  ;;  %6205 = vmatpush3.msra.mxu0 %v3617_v32 }
 0x9b1   :  { %6126 = vmatmul.mubr.msk.f32.gmra.mxu0 %vm8585_vm4, %v8459_v48 }
 0x9b2   :  { %6128 = vmatprep.mubr.msk.f32.mxu0 %vm8586_vm5, %v8459_v48 }
 0x9b5   :  { %6129 = vmatmul.mubr.msk.f32.gmra.mxu0 %vm8587_vm12, %v8459_v48 }
 0x9b6   :  { %6131 = vmatprep.mubr.msk.f32.mxu0 %vm8588_vm7, %v8459_v48 }
 0x9b9   :  { %6132 = vmatmul.mubr.msk.f32.gmra.mxu0 %vm294_vm13, %v8459_v48  ;;  %vm4175_vm13 = vcmask 64512  }
 0x9ba   :  { %6134 = vmatprep.mubr.msk.f32.mxu0 %vm8589_vm8, %v8459_v48 }
 0x9bd   :  { %6135 = vmatmul.mubr.msk.f32.gmra.mxu0 %vm296_vm14, %v8459_v48 }
 0x9be   :  { %6137 = vmatprep.mubr.msk.f32.mxu0 %vm297_vm15, %v8459_v48 }
 0x9c1   :  { %6138 = vmatmul.mubr.msk.f32.gmra.mxu0 %vm298_vm11, %v8459_v48  ;;  %v3616_v48 = vld [vmem:[#allocation12 + $0x5d0] sm:$0xff]  ;;  %vm6677_vm11 = vmmov 0  }
 0x9c2   :  { %6206 = vmatprep.subr.mxu0 %v3616_v48 }
 0x9c3   :  { %6207 = vmatpush3.msra.mxu0 %v3616_v48  ;;  %v8603_v48 = vld [vmem:[#allocation59_spill] sm:$0xff] }
 0x9c4   :  { %6208 = vmatprep.subr.mxu0 %v3615_v6 }
 0x9c5   :  { %6209 = vmatpush3.msra.mxu0 %v3615_v6  ;;  %v3405_v6 = vmul.f32 %v3390_v27, %v8603_v48  ;;  %v3913_v48 = vld [vmem:[#allocation15 + $0x70] sm:$0xff] }
 0x9c6   :  { %6210 = vmatprep.subr.mxu0 %v3614_v59 }
 0x9c7   :  { %6211 = vmatpush3.msra.mxu0 %v3614_v59  ;;  %v8604_v59 = vld [vmem:[#allocation60_spill] sm:$0xff] }
 0x9c8   :  { %6212 = vmatprep.subr.mxu0 %v3613_v41 }
 0x9c9   :  { %6213 = vmatpush3.msra.mxu0 %v3613_v41  ;;  %v3406_v41 = vmul.f32 %v3390_v27, %v8604_v59  ;;  %v8606_v27 = vld [vmem:[#allocation61_spill] sm:$0xff]  ;;  %v3911_v59 = vld [vmem:[#allocation15 + $0x60] sm:$0xff] }
 0x9ca   :  { %6214 = vmatprep.subr.mxu0 %v3612_v36 }
 0x9cb   :  { %6215 = vmatpush3.msra.mxu0 %v3612_v36 }
 0x9cc   :  { %6216 = vmatprep.subr.mxu0 %v3611_v24 }
 0x9cd   :  { %6217 = vmatpush3.msra.mxu0 %v3611_v24 }
 0x9ce   :  { %6218 = vmatprep.subr.mxu0 %v3610_v25 }
 0x9cf   :  { %6219 = vmatpush3.msra.mxu0 %v3610_v25 }
 0xa65   :  { %v6118_v38 = vpop.f32.mrf.mxu0 }
 0xa66   :  { %v3408_v47 = vadd.f32 %v6118_v38, %v3392_v56  ;;  %v3609_v38 = vld [vmem:[#allocation12 + $0x598] sm:$0xff]  ;;  %v3606_v56 = vld [vmem:[#allocation12 + $0x580] sm:$0xff] }
 0xa67   :  { %v3310_v13 = vpop.f32.mrf.mxu0  ;;  %6220 = vmatprep.subr.mxu0 %v3609_v38 }
 0xa68   :  { %v3407_v35 = vadd.f32 %v3391_v34, %v3310_v13  ;;  %6221 = vmatpush3.msra.mxu0 %v3609_v38  ;;  %v3608_v34 = vld [vmem:[#allocation12 + $0x590] sm:$0xff]  ;;  %v8605_v13 = vld [vmem:[#allocation43_spill] sm:$0xff] }
 0xa69   :  { %v6121_v21 = vpop.f32.mrf.mxu0  ;;  %6222 = vmatprep.subr.mxu0 %v3608_v34  ;;  %v3906_v38 = vld [vmem:[#allocation15 + $0x38] sm:$0xff] }
 0xa6a   :  { %6172 = vmatprep.mubr.f32.mxu1 %v3407_v35  ;;  %v3410_v51 = vadd.f32 %v6121_v21, %v3394_v22  ;;  %6223 = vmatpush3.msra.mxu0 %v3608_v34  ;;  %v3443_v35 = vrot.slane %v8606_v27, %v8605_v13  ;;  %v3905_v34 = vld [vmem:[#allocation15 + $0x30] sm:$0xff]  ;;  %v3902_v27 = vld [vmem:[#allocation15 + $0x18] sm:$0xff] }
 0xa6b   :  { %v3320_v9 = vpop.f32.mrf.mxu0  ;;  %6173 = vmatmul.mubr.f32.vlgmr.msra.gmra.mxu1 %v3408_v47  ;;  %6224 = vmatprep.subr.mxu0 %v3607_v37 }
 0xa6c   :  { %v3409_v4 = vadd.f32 %v3393_v12, %v3320_v9  ;;  %6225 = vmatpush3.msra.mxu0 %v3607_v37  ;;  %v3904_v37 = vld [vmem:[#allocation15 + $0x28] sm:$0xff] }
 0xa6d   :  { %v6124_v63 = vpop.f32.mrf.mxu0  ;;  %6226 = vmatprep.subr.mxu0 %v3606_v56 }
 0xa6e   :  { %6175 = vmatprep.mubr.f32.mxu1 %v3409_v4  ;;  %v3412_v10 = vadd.f32 %v6124_v63, %v3396_v17  ;;  %6227 = vmatpush3.msra.mxu0 %v3606_v56  ;;  %v3903_v56 = vld [vmem:[#allocation15 + $0x20] sm:$0xff] }
 0xa6f   :  { %v3330_v44 = vpop.f32.mrf.mxu0  ;;  %6176 = vmatmul.mubr.f32.gmra.mxu1 %v3410_v51 }
 0xa70   :  { %v3411_v8 = vadd.f32 %v3395_v61, %v3330_v44 }
 0xa71   :  { %v6127_v29 = vpop.f32.mrf.mxu0 }
 0xa72   :  { %6178 = vmatprep.mubr.f32.mxu1 %v3411_v8  ;;  %v3414_v42 = vadd.f32 %v6127_v29, %v3398_v57 }
 0xa73   :  { %v3340_v0 = vpop.f32.mrf.mxu0  ;;  %6179 = vmatmul.mubr.f32.gmra.mxu1 %v3412_v10 }
 0xa74   :  { %v3413_v3 = vadd.f32 %v3397_v50, %v3340_v0 }
 0xa75   :  { %v6130_v16 = vpop.f32.mrf.mxu0 }
 0xa76   :  { %6181 = vmatprep.mubr.f32.mxu1 %v3413_v3  ;;  %v3416_v43 = vadd.f32 %v6130_v16, %v3400_v54 }
 0xa77   :  { %v3350_v19 = vpop.f32.mrf.mxu0  ;;  %6182 = vmatmul.mubr.f32.gmra.mxu1 %v3414_v42 }
 0xa78   :  { %v3415_v60 = vadd.f32 %v3399_v26, %v3350_v19 }
 0xa79   :  { %v6133_v31 = vpop.f32.mrf.mxu0 }
 0xa7a   :  { %6184 = vmatprep.mubr.f32.mxu1 %v3415_v60  ;;  %v3418_v23 = vadd.f32 %v6133_v31, %v3402_v58 }
 0xa7b   :  { %v3360_v28 = vpop.f32.mrf.mxu0  ;;  %6185 = vmatmul.mubr.f32.gmra.mxu1 %v3416_v43 }
 0xa7c   :  { %v3417_v7 = vadd.f32 %v3401_v30, %v3360_v28 }
 0xa7d   :  { %v6136_v20 = vpop.f32.mrf.mxu0 }
 0xa7e   :  { %6187 = vmatprep.mubr.f32.mxu1 %v3417_v7  ;;  %v3420_v5 = vadd.f32 %v6136_v20, %v3404_v45 }
 0xa7f   :  { %v3370_v1 = vpop.f32.mrf.mxu0  ;;  %6188 = vmatmul.mubr.f32.gmra.mxu1 %v3418_v23 }
 0xa80   :  { %v3419_v2 = vadd.f32 %v3403_v62, %v3370_v1 }
 0xa81   :  { %v6139_v32 = vpop.f32.mrf.mxu0 }
 0xa82   :  { %6190 = vmatprep.mubr.f32.mxu1 %v3419_v2  ;;  %v3422_v25 = vadd.f32 %v6139_v32, %v3406_v41  ;;  %v3914_v32 = vld [vmem:[#allocation15 + $0x78] sm:$0xff] }
 0xa83   :  { %v3380_v36 = vpop.f32.mrf.mxu0  ;;  %6191 = vmatmul.mubr.f32.gmra.mxu1 %v3420_v5  ;;  %v6676_v5 = vmov 0.0   ;;  %v3910_v41 = vld [vmem:[#allocation15 + $0x58] sm:$0xff] }
 0xa84   :  { %v3421_v24 = vadd.f32 %v3405_v6, %v3380_v36  ;;  %6252 = vmatprep.subr.mxu1 %v6676_v5  ;;  %6287 = vmatprep.subr.mxu0 %v6676_v5  ;;  %v3912_v6 = vld [vmem:[#allocation15 + $0x68] sm:$0xff]  ;;  %v3909_v36 = vld [vmem:[#allocation15 + $0x50] sm:$0xff] }
 0xa86   :  { %6193 = vmatprep.mubr.f32.mxu1 %v3421_v24  ;;  %v3908_v24 = vld [vmem:[#allocation15 + $0x48] sm:$0xff] }
 0xa87   :  { %6194 = vmatmul.mubr.f32.gmra.mxu1 %v3422_v25  ;;  %v3907_v25 = vld [vmem:[#allocation15 + $0x40] sm:$0xff] }
 0xa88   :  { %6284 = vmatprep.mubr.msk.f32.mxu1 %vm6677_vm11, %v6676_v5 }
 0xb2b   :  { %v6174_v47 = vpop.f32.mrf.mxu1 }
 0xb2c   :  { %v3516_v21 = vadd.f32 %v6174_v47, %v3443_v35  ;;  %v3900_v47 = vld [vmem:[#allocation15 + $0x8] sm:$0xff] }
 0xb2d   :  { %v3510_v40 = vpop.f32.mrf.mxu1 }
 0xb2e   :  { %v3511_v12 = vadd.f32 %v3510_v40, %v3443_v35  ;;  %v3590_v9 = vmax.f32 %v3516_v21, 0.0 }
 0xb2f   :  { %v6177_v39 = vpop.f32.mrf.mxu1 }
 0xb30   :  { %v3589_v22 = vmax.f32 %v3511_v12, 0.0  ;;  %v3526_v4 = vadd.f32 %v6177_v39, %v3443_v35 }
 0xb31   :  { %v3520_v51 = vpop.f32.mrf.mxu1 }
 0xb32   :  { %v3521_v63 = vadd.f32 %v3520_v51, %v3443_v35  ;;  %6228 = vmatprep.mubr.f32.mxu0 %v3589_v22  ;;  %v3592_v33 = vmax.f32 %v3526_v4, 0.0 }
 0xb33   :  { %v6180_v46 = vpop.f32.mrf.mxu1  ;;  %6229 = vmatmul.mubr.f32.vlgmr.msra.gmra.mxu0 %v3590_v9 }
 0xb34   :  { %v3591_v61 = vmax.f32 %v3521_v63, 0.0  ;;  %v3536_v17 = vadd.f32 %v6180_v46, %v3443_v35  ;;  %6288 = vmatpush3.msra.mxu0 %v3914_v32 }
 0xb35   :  { %v3530_v44 = vpop.f32.mrf.mxu1  ;;  %6289 = vmatprep.subr.mxu0 %v6676_v5 }
 0xb36   :  { %v3531_v8 = vadd.f32 %v3530_v44, %v3443_v35  ;;  %6231 = vmatprep.mubr.f32.mxu0 %v3591_v61  ;;  %v3594_v18 = vmax.f32 %v3536_v17, 0.0  ;;  %6290 = vmatpush3.msra.mxu0 %v3913_v48  ;;  %v6483_v44 = vld [vmem:[#allocation13 + $0x10] sm:$0xff] }
 0xb37   :  { %v6183_v10 = vpop.f32.mrf.mxu1  ;;  %6232 = vmatmul.mubr.f32.gmra.mxu0 %v3592_v33  ;;  %6291 = vmatprep.subr.mxu0 %v6676_v5 }
 0xb38   :  { %v3593_v29 = vmax.f32 %v3531_v8, 0.0  ;;  %v3546_v50 = vadd.f32 %v6183_v10, %v3443_v35  ;;  %6292 = vmatpush3.msra.mxu0 %v3912_v6  ;;  %v8607_v8 = vld [vmem:[#allocation44_spill] sm:$0xff] }
 0xb39   :  { %v3540_v52 = vpop.f32.mrf.mxu1  ;;  %6293 = vmatprep.subr.mxu0 %v6676_v5  ;;  %v8172_v10 = vrot.slane %v6483_v44, %v8607_v8 }
 0xb3a   :  { %v3541_v57 = vadd.f32 %v3540_v52, %v3443_v35  ;;  %6234 = vmatprep.mubr.f32.mxu0 %v3593_v29  ;;  %v3596_v42 = vmax.f32 %v3546_v50, 0.0  ;;  %6294 = vmatpush3.msra.mxu0 %v3911_v59  ;;  %v8608_v52 = vld [vmem:[#allocation45_spill] sm:$0xff] }
 0xb3b   :  { %v6186_v0 = vpop.f32.mrf.mxu1  ;;  %6235 = vmatmul.mubr.f32.gmra.mxu0 %v3594_v18  ;;  %6295 = vmatprep.subr.mxu0 %v6676_v5 }
 0xb3c   :  { %v3595_v3 = vmax.f32 %v3541_v57, 0.0  ;;  %v3556_v16 = vadd.f32 %v6186_v0, %v3443_v35  ;;  %6296 = vmatpush3.msra.mxu0 %v3910_v41  ;;  %v8176_v57 = vrot.slane %v6483_v44, %v8608_v52 }
 0xb3d   :  { %v3550_v55 = vpop.f32.mrf.mxu1  ;;  %6297 = vmatprep.subr.mxu0 %v6676_v5 }
 0xb3e   :  { %v3551_v26 = vadd.f32 %v3550_v55, %v3443_v35  ;;  %6237 = vmatprep.mubr.f32.mxu0 %v3595_v3  ;;  %v3598_v19 = vmax.f32 %v3556_v16, 0.0  ;;  %6298 = vmatpush3.msra.mxu0 %v3909_v36 }
 0xb3f   :  { %v6189_v15 = vpop.f32.mrf.mxu1  ;;  %6238 = vmatmul.mubr.f32.gmra.mxu0 %v3596_v42  ;;  %6299 = vmatprep.subr.mxu0 %v6676_v5  ;;  %v8609_v42 = vld [vmem:[#allocation46_spill] sm:$0xff] }
 0xb40   :  { %v3597_v54 = vmax.f32 %v3551_v26, 0.0  ;;  %v3566_v60 = vadd.f32 %v6189_v15, %v3443_v35  ;;  %6300 = vmatpush3.msra.mxu0 %v3908_v24  ;;  %v8181_v16 = vrot.slane %v6483_v44, %v8609_v42 }
 0xb41   :  { %v3560_v43 = vpop.f32.mrf.mxu1  ;;  %6301 = vmatprep.subr.mxu0 %v6676_v5 }
 0xb42   :  { %v3561_v31 = vadd.f32 %v3560_v43, %v3443_v35  ;;  %6240 = vmatprep.mubr.f32.mxu0 %v3597_v54  ;;  %v3600_v11 = vmax.f32 %v3566_v60, 0.0  ;;  %6302 = vmatpush3.msra.mxu0 %v3907_v25 }
 0xb43   :  { %v6192_v14 = vpop.f32.mrf.mxu1  ;;  %6241 = vmatmul.mubr.f32.gmra.mxu0 %v3598_v19  ;;  %6303 = vmatprep.subr.mxu0 %v6676_v5 }
 0xb44   :  { %v3599_v30 = vmax.f32 %v3561_v31, 0.0  ;;  %v3576_v58 = vadd.f32 %v6192_v14, %v3443_v35  ;;  %6304 = vmatpush3.msra.mxu0 %v3906_v38 }
 0xb45   :  { %v3570_v28 = vpop.f32.mrf.mxu1  ;;  %6305 = vmatprep.subr.mxu0 %v6676_v5 }
 0xb46   :  { %v3571_v7 = vadd.f32 %v3570_v28, %v3443_v35  ;;  %6243 = vmatprep.mubr.f32.mxu0 %v3599_v30  ;;  %v3602_v49 = vmax.f32 %v3576_v58, 0.0  ;;  %6306 = vmatpush3.msra.mxu0 %v3905_v34 }
 0xb47   :  { %v6195_v23 = vpop.f32.mrf.mxu1  ;;  %6244 = vmatmul.mubr.f32.gmra.mxu0 %v3600_v11  ;;  %6307 = vmatprep.subr.mxu0 %v6676_v5 }
 0xb48   :  { %v3601_v20 = vmax.f32 %v3571_v7, 0.0  ;;  %v3586_v62 = vadd.f32 %v6195_v23, %v3443_v35  ;;  %6308 = vmatpush3.msra.mxu0 %v3904_v37 }
 0xb49   :  { %v3580_v53 = vpop.f32.mrf.mxu1  ;;  %6309 = vmatprep.subr.mxu0 %v6676_v5 }
 0xb4a   :  { %v3581_v45 = vadd.f32 %v3580_v53, %v3443_v35  ;;  %6246 = vmatprep.mubr.f32.mxu0 %v3601_v20  ;;  %v3604_v2 = vmax.f32 %v3586_v62, 0.0  ;;  %6310 = vmatpush3.msra.mxu0 %v3903_v56  ;;  %v3901_v35 = vld [vmem:[#allocation15 + $0x10] sm:$0xff] }
 0xb4b   :  { %6247 = vmatmul.mubr.f32.gmra.mxu0 %v3602_v49  ;;  %6311 = vmatprep.subr.mxu0 %v6676_v5 }
 0xb4c   :  { %v3603_v1 = vmax.f32 %v3581_v45, 0.0  ;;  %6312 = vmatpush3.msra.mxu0 %v3902_v27 }
 0xb4d   :  { %6313 = vmatprep.subr.mxu0 %v6676_v5 }
 0xb4e   :  { %6249 = vmatprep.mubr.f32.mxu0 %v3603_v1  ;;  %6314 = vmatpush3.msra.mxu0 %v3901_v35 }
 0xb4f   :  { %6250 = vmatmul.mubr.f32.gmra.mxu0 %v3604_v2  ;;  %6315 = vmatprep.subr.mxu0 %v6676_v5 }
 0xb50   :  { %6319 = vmatprep.mubr.msk.f32.mxu0 %vm6677_vm11, %v6676_v5  ;;  %6316 = vmatpush3.msra.mxu0 %v3900_v47 }
 0xb51   :  { %6317 = vmatprep.subr.mxu0 %v6676_v5 }
 0xbf3   :  { %v8163_v21 = vpop.f32.mrf.mxu0 }
 0xbf5   :  { %v8165_v40 = vpop.f32.mrf.mxu0 }
 0xbf7   :  { %v8167_v12 = vpop.f32.mrf.mxu0 }
 0xbf8   :  { %v3708_v27 = vadd.f32 %v8167_v12, %v8172_v10  ;;  %v3698_v12 = vadd.f32 %v8163_v21, %v8172_v10 }
 0xbf9   :  { %v8169_v39 = vpop.f32.mrf.mxu0 }
 0xbfa   :  { %v3776_v21 = vmul.f32 %v8176_v57, %v3698_v12  ;;  %v4084_v12 = vld [vmem:[#allocation15 + $0x108] sm:$0xff] }
 0xbfb   :  { %v6236_v22 = vpop.f32.mrf.mxu0 }
 0xbfc   :  { %v3718_v41 = vadd.f32 %v6236_v22, %v8172_v10 }
 0xbfd   :  { %v3712_v9 = vpop.f32.mrf.mxu0 }
 0xbfe   :  { %v3713_v38 = vadd.f32 %v3712_v9, %v8172_v10  ;;  %v3780_v35 = vmul.f32 %v8176_v57, %v3718_v41  ;;  %v3703_v9 = vadd.f32 %v8169_v39, %v8172_v10  ;;  %v3693_v39 = vadd.f32 %v8165_v40, %v8172_v10  ;;  %v4093_v41 = vld [vmem:[#allocation15 + $0x150] sm:$0xff] }
 0xbff   :  { %v6239_v4 = vpop.f32.mrf.mxu0 }
 0xc00   :  { %v3728_v53 = vadd.f32 %v6239_v4, %v8172_v10  ;;  %v3779_v4 = vmul.f32 %v8176_v57, %v3713_v38  ;;  %v3775_v52 = vmul.f32 %v8176_v57, %v3693_v39  ;;  %v4089_v38 = vld [vmem:[#allocation15 + $0x130] sm:$0xff] }
 0xc01   :  { %v3722_v51 = vpop.f32.mrf.mxu0 }
 0xc02   :  { %v3723_v32 = vadd.f32 %v3722_v51, %v8172_v10  ;;  %v3782_v36 = vmul.f32 %v8176_v57, %v3728_v53  ;;  %v3799_v44 = vadd.f32 %v8181_v16, %v3779_v4  ;;  %v3795_v42 = vadd.f32 %v8181_v16, %v3775_v52  ;;  %v3993_v53 = vld [vmem:[#allocation15 + $0x90] sm:$0xff] }
 0xc03   :  { %v6242_v63 = vpop.f32.mrf.mxu0 }
 0xc04   :  { %v3738_v30 = vadd.f32 %v6242_v63, %v8172_v10  ;;  %v3781_v34 = vmul.f32 %v8176_v57, %v3723_v32  ;;  %v3802_v47 = vadd.f32 %v8181_v16, %v3782_v36  ;;  %v4097_v32 = vld [vmem:[#allocation15 + $0x170] sm:$0xff]  ;;  %v4092_v36 = vld [vmem:[#allocation15 + $0x148] sm:$0xff] }
 0xc05   :  { %v3732_v46 = vpop.f32.mrf.mxu0 }
 0xc06   :  { %v3733_v23 = vadd.f32 %v3732_v46, %v8172_v10  ;;  %v3784_v45 = vmul.f32 %v8176_v57, %v3738_v30  ;;  %v3801_v51 = vadd.f32 %v8181_v16, %v3781_v34  ;;  %v3778_v46 = vmul.f32 %v8176_v57, %v3708_v27  ;;  %v4000_v30 = vld [vmem:[#allocation15 + $0xc8] sm:$0xff] }
 0xc07   :  { %v6245_v61 = vpop.f32.mrf.mxu0  ;;  %v4088_v34 = vld [vmem:[#allocation15 + $0x128] sm:$0xff] }
 0xc08   :  { %v3748_v26 = vadd.f32 %v6245_v61, %v8172_v10  ;;  %v3783_v48 = vmul.f32 %v8176_v57, %v3733_v23  ;;  %v3804_v24 = vadd.f32 %v8181_v16, %v3784_v45  ;;  %v3800_v61 = vadd.f32 %v8181_v16, %v3780_v35  ;;  %v3995_v23 = vld [vmem:[#allocation15 + $0xa0] sm:$0xff]  ;;  %v3992_v45 = vld [vmem:[#allocation15 + $0x88] sm:$0xff] }
 0xc09   :  { %v3742_v33 = vpop.f32.mrf.mxu0  ;;  %v8288_v27 = vld [vmem:[%s8335_s12] sm:$0xff]  ;;  %s6678_s12 = smov [#allocation16]  }
 0xc0a   :  { %v3743_v60 = vadd.f32 %v3742_v33, %v8172_v10  ;;  %v3786_v11 = vmul.f32 %v8176_v57, %v3748_v26  ;;  %v3803_v37 = vadd.f32 %v8181_v16, %v3783_v48  ;;  %v3820_v22 = vmax.f32 %v3804_v24, 0.0  ;;  %v4096_v48 = vld [vmem:[#allocation15 + $0x168] sm:$0xff]  ;;  %v4091_v24 = vld [vmem:[#allocation15 + $0x140] sm:$0xff]  ;;  %s4347_s2 = sshll.u32 %s6678_s12, 4  ;;  %s4348_s2 = int_to_ptr.vmem [resolvable:$true] %s4347_s2 }
 0xc0b   :  { %v6248_v17 = vpop.f32.mrf.mxu0  ;;  %v3818_v33 = vmax.f32 %v3802_v47, 0.0  ;;  %v8610_v35 = vld [vmem:[#allocation26_spill] sm:$0xff]  ;;  %s6632_s23 = scalar_lea.vmem %s4348_s2, 64  ;;  %p6637_p8 = scmp.lt.s32.totalorder %s4348_s2, %s4348_s2 }
 0xc0c   :  { %v3758_v18 = vadd.f32 %v6248_v17, %v8172_v10  ;;  %v3785_v20 = vmul.f32 %v8176_v57, %v3743_v60  ;;  %v3806_v1 = vadd.f32 %v8181_v16, %v3786_v11  ;;  %v3819_v63 = vmax.f32 %v3803_v37, 0.0  ;;  %v4004_v60 = vld [vmem:[#allocation15 + $0xe8] sm:$0xff]  ;;  %v3999_v11 = vld [vmem:[#allocation15 + $0xc0] sm:$0xff]  ;;  %p6633_p7 = scmp.ne.s32.totalorder %s4348_s2, %s6632_s23  ;;  %p6638_p9 = scmp.lt.s32.totalorder %s6632_s23, %s6632_s23 }
 0xc0d   :  { %v3752_v29 = vpop.f32.mrf.mxu0  ;;  %v3777_v17 = vmul.f32 %v8176_v57, %v3703_v9  ;;  %v4087_v37 = vld [vmem:[#allocation15 + $0x120] sm:$0xff]  ;;  %v3918_v47 = vrot.slane %v8288_v27, %v8610_v35 }
 0xc0e   :  { %v3753_v0 = vadd.f32 %v3752_v29, %v8172_v10  ;;  %v3788_v15 = vmul.f32 %v8176_v57, %v3758_v18  ;;  %v3805_v6 = vadd.f32 %v8181_v16, %v3785_v20  ;;  %v3822_v25 = vmax.f32 %v3806_v1, 0.0  ;;  %v3994_v20 = vld [vmem:[#allocation15 + $0x98] sm:$0xff]  ;;  %v3991_v1 = vld [vmem:[#allocation15 + $0x80] sm:$0xff]  ;;  %p6639_p10 = por %p6638_p9, %p6637_p8 }
 0xc0f   :  { %v6251_v50 = vpop.f32.mrf.mxu0  ;;  %v3817_v29 = vmax.f32 %v3801_v51, 0.0  ;;  %v3798_v18 = vadd.f32 %v8181_v16, %v3778_v46  ;;  %v3797_v40 = vadd.f32 %v8181_v16, %v3777_v17  ;;  %v4083_v46 = vld [vmem:[#allocation15 + $0x100] sm:$0xff] }
 0xc10   :  { %v3768_v3 = vadd.f32 %v6251_v50, %v8172_v10  ;;  %v3787_v43 = vmul.f32 %v8176_v57, %v3753_v0  ;;  %v3808_v58 = vadd.f32 %v8181_v16, %v3788_v15  ;;  %v3821_v56 = vmax.f32 %v3805_v6, 0.0  ;;  %v3828_v15 = vld [vmem:[%s8330_s7] sm:$0xff]  ;;  %p6640_p11 = pnand %p6639_p10, %p6633_p7 }
 0xc11   :  { %v3762_v55 = vpop.f32.mrf.mxu0  ;;  %v3816_v50 = vmax.f32 %v3800_v61, 0.0  ;;  %v3796_v0 = vadd.f32 %v8181_v16, %v3776_v21  ;;  %v4095_v6 = vld [vmem:[#allocation15 + $0x160] sm:$0xff]  ;;  %v4102_v21 = vrot.slane %v8288_v27, %v8605_v13 }
 0xc12   :  { %v3790_v54 = vmul.f32 %v8176_v57, %v3768_v3  ;;  %v3763_v19 = vadd.f32 %v3762_v55, %v8172_v10  ;;  %v3807_v49 = vadd.f32 %v8181_v16, %v3787_v43  ;;  %v3824_v2 = vmax.f32 %v3808_v58, 0.0  ;;  %v4003_v43 = vld [vmem:[#allocation15 + $0xe0] sm:$0xff]  ;;  %v3998_v58 = vld [vmem:[#allocation15 + $0xb8] sm:$0xff] }
 0xc13   :  { %v3815_v10 = vmax.f32 %v3799_v44, 0.0  ;;  %v3814_v3 = vmax.f32 %v3798_v18, 0.0  ;;  %v3813_v55 = vmax.f32 %v3797_v40, 0.0  ;;  %v3812_v26 = vmax.f32 %v3796_v0, 0.0  ;;  %v8611_v61 = vld [vmem:[#allocation42_spill] sm:$0xff] }
 0xc14   :  { %v3810_v31 = vadd.f32 %v8181_v16, %v3790_v54  ;;  %v3789_v14 = vmul.f32 %v8176_v57, %v3763_v19  ;;  %v3823_v59 = vmax.f32 %v3807_v49, 0.0  ;;  %v3811_v57 = vmax.f32 %v3795_v42, 0.0  ;;  %v4006_v54 = vld [vmem:[#allocation15 + $0xf8] sm:$0xff]  ;;  %v4005_v19 = vld [vmem:[#allocation15 + $0xf0] sm:$0xff]  ;;  %v4263_v42 = vld [vmem:[#allocation15 + $0x1e8] sm:$0xff] }
 0xc15   :  { %v4265_v0 = vld [vmem:[#allocation15 + $0x1f8] sm:$0xff]  ;;  %v4262_v13 = vld [vmem:[#allocation15 + $0x1e0] sm:$0xff] }
 0xc16   :  { %v3826_v28 = vmax.f32 %v3810_v31, 0.0  ;;  %v3809_v7 = vadd.f32 %v8181_v16, %v3789_v14  ;;  %v3899_v16 = vld [vmem:[#allocation15] sm:$0xff]  ;;  %v4002_v31 = vld [vmem:[#allocation15 + $0xd8] sm:$0xff]  ;;  %v4001_v14 = vld [vmem:[#allocation15 + $0xd0] sm:$0xff] }
 0xc17   :  { %6318 = vmatpush3.msra.mxu0 %v3899_v16  ;;  %v4257_v16 = vld [vmem:[#allocation15 + $0x1b8] sm:$0xff] }
 0xc18   :  { %v3825_v62 = vmax.f32 %v3809_v7, 0.0  ;;  %6253 = vmatpush3.msra.mxu1 %v3826_v28  ;;  %6357 = vmatprep.subr.mxu0 %v6676_v5  ;;  %v3997_v28 = vld [vmem:[#allocation15 + $0xb0] sm:$0xff]  ;;  %v3996_v7 = vld [vmem:[#allocation15 + $0xa8] sm:$0xff] }
 0xc19   :  { %6254 = vmatprep.subr.mxu1 %v6676_v5 }
 0xc1a   :  { %6255 = vmatpush3.msra.mxu1 %v3825_v62 }
 0xc1b   :  { %6256 = vmatprep.subr.mxu1 %v6676_v5 }
 0xc1c   :  { %6257 = vmatpush3.msra.mxu1 %v3824_v2  ;;  %v4098_v2 = vld [vmem:[#allocation15 + $0x178] sm:$0xff] }
 0xc1d   :  { %6258 = vmatprep.subr.mxu1 %v6676_v5 }
 0xc1e   :  { %6259 = vmatpush3.msra.mxu1 %v3823_v59  ;;  %v4094_v59 = vld [vmem:[#allocation15 + $0x158] sm:$0xff] }
 0xc1f   :  { %6260 = vmatprep.subr.mxu1 %v6676_v5 }
 0xc20   :  { %6261 = vmatpush3.msra.mxu1 %v3822_v25  ;;  %v4090_v25 = vld [vmem:[#allocation15 + $0x138] sm:$0xff] }
 0xc21   :  { %6262 = vmatprep.subr.mxu1 %v6676_v5 }
 0xc22   :  { %6263 = vmatpush3.msra.mxu1 %v3821_v56  ;;  %v4086_v56 = vld [vmem:[#allocation15 + $0x118] sm:$0xff] }
 0xc23   :  { %6264 = vmatprep.subr.mxu1 %v6676_v5 }
 0xc24   :  { %6265 = vmatpush3.msra.mxu1 %v3820_v22 }
 0xc25   :  { %6266 = vmatprep.subr.mxu1 %v6676_v5 }
 0xc26   :  { %6267 = vmatpush3.msra.mxu1 %v3819_v63  ;;  %v4085_v63 = vld [vmem:[#allocation15 + $0x110] sm:$0xff] }
 0xc27   :  { %6268 = vmatprep.subr.mxu1 %v6676_v5 }
 0xc28   :  { %6269 = vmatpush3.msra.mxu1 %v3818_v33  ;;  %v4010_v33 = vrot.slane %v8288_v27, %v8611_v61 }
 0xc29   :  { %6270 = vmatprep.subr.mxu1 %v6676_v5 }
 0xc2a   :  { %6271 = vmatpush3.msra.mxu1 %v3817_v29 }
 0xc2b   :  { %6272 = vmatprep.subr.mxu1 %v6676_v5 }
 0xc2c   :  { %6273 = vmatpush3.msra.mxu1 %v3816_v50 }
 0xc2d   :  { %6274 = vmatprep.subr.mxu1 %v6676_v5 }
 0xc2e   :  { %6275 = vmatpush3.msra.mxu1 %v3815_v10  ;;  %v4174_v10 = vld [vmem:[#allocation10] sm:$0xf] }
 0xc2f   :  { %6276 = vmatprep.subr.mxu1 %v6676_v5 }
 0xc30   :  { %6277 = vmatpush3.msra.mxu1 %v3814_v3  ;;  %v4264_v3 = vld [vmem:[#allocation15 + $0x1f0] sm:$0xff] }
 0xc31   :  { %6278 = vmatprep.subr.mxu1 %v6676_v5 }
 0xc32   :  { %6279 = vmatpush3.msra.mxu1 %v3813_v55  ;;  %v4261_v55 = vld [vmem:[#allocation15 + $0x1d8] sm:$0xff] }
 0xc33   :  { %6280 = vmatprep.subr.mxu1 %v6676_v5 }
 0xc34   :  { %6281 = vmatpush3.msra.mxu1 %v3812_v26  ;;  %v4260_v26 = vld [vmem:[#allocation15 + $0x1d0] sm:$0xff] }
 0xc35   :  { %6282 = vmatprep.subr.mxu1 %v6676_v5 }
 0xc36   :  { %6283 = vmatpush3.msra.mxu1 %v3811_v57  ;;  %v4259_v57 = vld [vmem:[#allocation15 + $0x1c8] sm:$0xff] }
 0xc37   :  { %6285 = vmatmul.mubr.f32.vlgmr.msra.gmra.mxu1 %v3828_v15  ;;  %6322 = vmatprep.subr.mxu1 %v6676_v5  ;;  %v4258_v15 = vld [vmem:[#allocation15 + $0x1c0] sm:$0xff] }
 0xc38   :  { %6354 = vmatprep.mubr.msk.f32.mxu1 %vm6677_vm11, %v6676_v5  ;;  %6323 = vmatpush3.msra.mxu1 %v4006_v54  ;;  %v4256_v54 = vld [vmem:[#allocation15 + $0x1b0] sm:$0xff] }
 0xc39   :  { %6324 = vmatprep.subr.mxu1 %v6676_v5 }
 0xc3a   :  { %6325 = vmatpush3.msra.mxu1 %v4005_v19  ;;  %v4255_v19 = vld [vmem:[#allocation15 + $0x1a8] sm:$0xff] }
 0xc3b   :  { %6326 = vmatprep.subr.mxu1 %v6676_v5 }
 0xc3c   :  { %6327 = vmatpush3.msra.mxu1 %v4004_v60  ;;  %v4254_v60 = vld [vmem:[#allocation15 + $0x1a0] sm:$0xff] }
 0xc3d   :  { %6328 = vmatprep.subr.mxu1 %v6676_v5 }
 0xc3e   :  { %6329 = vmatpush3.msra.mxu1 %v4003_v43  ;;  %v4253_v43 = vld [vmem:[#allocation15 + $0x198] sm:$0xff] }
 0xc3f   :  { %6330 = vmatprep.subr.mxu1 %v6676_v5 }
 0xc40   :  { %6331 = vmatpush3.msra.mxu1 %v4002_v31  ;;  %v4252_v31 = vld [vmem:[#allocation15 + $0x190] sm:$0xff] }
 0xc41   :  { %6332 = vmatprep.subr.mxu1 %v6676_v5 }
 0xc42   :  { %6333 = vmatpush3.msra.mxu1 %v4001_v14  ;;  %v4251_v14 = vld [vmem:[#allocation15 + $0x188] sm:$0xff] }
 0xc43   :  { %6334 = vmatprep.subr.mxu1 %v6676_v5 }
 0xc44   :  { %6335 = vmatpush3.msra.mxu1 %v4000_v30  ;;  %v4250_v30 = vld [vmem:[#allocation15 + $0x180] sm:$0xff] }
 0xc45   :  { %6336 = vmatprep.subr.mxu1 %v6676_v5 }
 0xc46   :  { %6337 = vmatpush3.msra.mxu1 %v3999_v11 }
 0xc47   :  { %6338 = vmatprep.subr.mxu1 %v6676_v5 }
 0xc48   :  { %6339 = vmatpush3.msra.mxu1 %v3998_v58 }
 0xc49   :  { %6340 = vmatprep.subr.mxu1 %v6676_v5 }
 0xc4a   :  { %6341 = vmatpush3.msra.mxu1 %v3997_v28  ;;  %v4269_v28 = vrot.slane %v8288_v27, %v8607_v8 }
 0xc4b   :  { %6342 = vmatprep.subr.mxu1 %v6676_v5 }
 0xc4c   :  { %6343 = vmatpush3.msra.mxu1 %v3996_v7 }
 0xc4d   :  { %6344 = vmatprep.subr.mxu1 %v6676_v5 }
 0xc4e   :  { %6345 = vmatpush3.msra.mxu1 %v3995_v23 }
 0xc4f   :  { %6346 = vmatprep.subr.mxu1 %v6676_v5 }
 0xc50   :  { %6347 = vmatpush3.msra.mxu1 %v3994_v20 }
 0xc51   :  { %6348 = vmatprep.subr.mxu1 %v6676_v5 }
 0xc52   :  { %6349 = vmatpush3.msra.mxu1 %v3993_v53 }
 0xc53   :  { %6350 = vmatprep.subr.mxu1 %v6676_v5 }
 0xc54   :  { %6351 = vmatpush3.msra.mxu1 %v3992_v45 }
 0xc55   :  { %6352 = vmatprep.subr.mxu1 %v6676_v5 }
 0xc56   :  { %6353 = vmatpush3.msra.mxu1 %v3991_v1 }
 0xc57   :  { %6392 = vmatprep.subr.mxu1 %v6676_v5 }
 0xcf7   :  { %v3895_v49 = vpop.f32.mrf.mxu1 }
 0xcf8   :  { %6320 = vmatmul.mubr.f32.vlgmr.msra.gmra.mxu0 %v3895_v49 }
 0xcf9   :  { %v6286_v62 = vpop.f32.mrf.mxu1  ;;  %6389 = vmatprep.mubr.msk.f32.mxu0 %vm6677_vm11, %v6676_v5  ;;  %6358 = vmatpush3.msra.mxu0 %v4098_v2 }
 0xcfa   :  { %6359 = vmatprep.subr.mxu0 %v6676_v5 }
 0xcfb   :  { %6360 = vmatpush3.msra.mxu0 %v4097_v32 }
 0xcfc   :  { %6361 = vmatprep.subr.mxu0 %v6676_v5 }
 0xcfd   :  { %6362 = vmatpush3.msra.mxu0 %v4096_v48 }
 0xcfe   :  { %6363 = vmatprep.subr.mxu0 %v6676_v5 }
 0xcff   :  { %6364 = vmatpush3.msra.mxu0 %v4095_v6 }
 0xd00   :  { %6365 = vmatprep.subr.mxu0 %v6676_v5 }
 0xd01   :  { %6366 = vmatpush3.msra.mxu0 %v4094_v59 }
 0xd02   :  { %6367 = vmatprep.subr.mxu0 %v6676_v5 }
 0xd03   :  { %6368 = vmatpush3.msra.mxu0 %v4093_v41 }
 0xd04   :  { %6369 = vmatprep.subr.mxu0 %v6676_v5 }
 0xd05   :  { %6370 = vmatpush3.msra.mxu0 %v4092_v36 }
 0xd06   :  { %6371 = vmatprep.subr.mxu0 %v6676_v5 }
 0xd07   :  { %6372 = vmatpush3.msra.mxu0 %v4091_v24 }
 0xd08   :  { %6373 = vmatprep.subr.mxu0 %v6676_v5 }
 0xd09   :  { %6374 = vmatpush3.msra.mxu0 %v4090_v25 }
 0xd0a   :  { %6375 = vmatprep.subr.mxu0 %v6676_v5 }
 0xd0b   :  { %6376 = vmatpush3.msra.mxu0 %v4089_v38 }
 0xd0c   :  { %6377 = vmatprep.subr.mxu0 %v6676_v5 }
 0xd0d   :  { %6378 = vmatpush3.msra.mxu0 %v4088_v34 }
 0xd0e   :  { %6379 = vmatprep.subr.mxu0 %v6676_v5 }
 0xd0f   :  { %6380 = vmatpush3.msra.mxu0 %v4087_v37 }
 0xd10   :  { %6381 = vmatprep.subr.mxu0 %v6676_v5 }
 0xd11   :  { %6382 = vmatpush3.msra.mxu0 %v4086_v56 }
 0xd12   :  { %6383 = vmatprep.subr.mxu0 %v6676_v5 }
 0xd13   :  { %6384 = vmatpush3.msra.mxu0 %v4085_v63 }
 0xd14   :  { %6385 = vmatprep.subr.mxu0 %v6676_v5 }
 0xd15   :  { %6386 = vmatpush3.msra.mxu0 %v4084_v12 }
 0xd16   :  { %6387 = vmatprep.subr.mxu0 %v6676_v5 }
 0xd17   :  { %6388 = vmatpush3.msra.mxu0 %v4083_v46 }
 0xdb8   :  { %v3985_v22 = vpop.f32.mrf.mxu0 }
 0xdb9   :  { %v3986_v9 = vadd.f32 %v3985_v22, %v3918_v47 }
 0xdba   :  { %v6321_v4 = vpop.f32.mrf.mxu0 }
 0xdbb   :  { %v3989_v51 = vmax.f32 %v3986_v9, 0.0 }
 0xdbd   :  { %6355 = vmatmul.mubr.f32.vlgmr.msra.gmra.mxu1 %v3989_v51 }
 0xdbe   :  { %6394 = vmatprep.mubr.msk.f32.mxu1 %vm6677_vm11, %v6676_v5 }
 0xe7d   :  { %v4077_v39 = vpop.f32.mrf.mxu1 }
 0xe7e   :  { %v4078_v17 = vadd.f32 %v4077_v39, %v4010_v33 }
 0xe7f   :  { %v6356_v44 = vpop.f32.mrf.mxu1 }
 0xe80   :  { %v4081_v29 = vmax.f32 %v4078_v17, 0.0 }
 0xe82   :  { %6390 = vmatmul.mubr.f32.vlgmr.msra.gmra.mxu0 %v4081_v29 }
 0xf42   :  { %v4169_v18 = vpop.f32.mrf.mxu0 }
 0xf43   :  { %v4170_v50 = vadd.f32 %v4169_v18, %v4102_v21 }
 0xf44   :  { %v6391_v52 = vpop.f32.mrf.mxu0 }
 0xf45   :  { %v4173_v40 = vmax.f32 %v4170_v50, 0.0 }
 0xf47   :  { %6393 = vmatpush3.msra.mxu1 %v4173_v40 }
 0xf48   :  { %6395 = vmatmul.mubr.msk.f32.vlgmr.msra.gmra.mxu1 %vm4175_vm13, %v4174_v10  ;;  %6397 = vmatprep.subr.mxu1 %v6676_v5 }
 0xf49   :  { %6398 = vmatpush3.msra.mxu1 %v4265_v0  ;;  %6429 = vmatprep.mubr.msk.f32.mxu1 %vm6677_vm11, %v6676_v5 }
 0xf4a   :  { %6399 = vmatprep.subr.mxu1 %v6676_v5 }
 0xf4b   :  { %6400 = vmatpush3.msra.mxu1 %v4264_v3 }
 0xf4c   :  { %6401 = vmatprep.subr.mxu1 %v6676_v5 }
 0xf4d   :  { %6402 = vmatpush3.msra.mxu1 %v4263_v42 }
 0xf4e   :  { %6403 = vmatprep.subr.mxu1 %v6676_v5 }
 0xf4f   :  { %6404 = vmatpush3.msra.mxu1 %v4262_v13 }
 0xf50   :  { %6405 = vmatprep.subr.mxu1 %v6676_v5 }
 0xf51   :  { %6406 = vmatpush3.msra.mxu1 %v4261_v55 }
 0xf52   :  { %6407 = vmatprep.subr.mxu1 %v6676_v5 }
 0xf53   :  { %6408 = vmatpush3.msra.mxu1 %v4260_v26 }
 0xf54   :  { %6409 = vmatprep.subr.mxu1 %v6676_v5 }
 0xf55   :  { %6410 = vmatpush3.msra.mxu1 %v4259_v57 }
 0xf56   :  { %6411 = vmatprep.subr.mxu1 %v6676_v5 }
 0xf57   :  { %6412 = vmatpush3.msra.mxu1 %v4258_v15 }
 0xf58   :  { %6413 = vmatprep.subr.mxu1 %v6676_v5 }
 0xf59   :  { %6414 = vmatpush3.msra.mxu1 %v4257_v16 }
 0xf5a   :  { %6415 = vmatprep.subr.mxu1 %v6676_v5 }
 0xf5b   :  { %6416 = vmatpush3.msra.mxu1 %v4256_v54 }
 0xf5c   :  { %6417 = vmatprep.subr.mxu1 %v6676_v5 }
 0xf5d   :  { %6418 = vmatpush3.msra.mxu1 %v4255_v19 }
 0xf5e   :  { %6419 = vmatprep.subr.mxu1 %v6676_v5 }
 0xf5f   :  { %6420 = vmatpush3.msra.mxu1 %v4254_v60 }
 0xf60   :  { %6421 = vmatprep.subr.mxu1 %v6676_v5 }
 0xf61   :  { %6422 = vmatpush3.msra.mxu1 %v4253_v43 }
 0xf62   :  { %6423 = vmatprep.subr.mxu1 %v6676_v5 }
 0xf63   :  { %6424 = vmatpush3.msra.mxu1 %v4252_v31 }
 0xf64   :  { %6425 = vmatprep.subr.mxu1 %v6676_v5 }
 0xf65   :  { %6426 = vmatpush3.msra.mxu1 %v4251_v14 }
 0xf66   :  { %6427 = vmatprep.subr.mxu1 %v6676_v5 }
 0xf67   :  { %6428 = vmatpush3.msra.mxu1 %v4250_v30 }
0x1008   :  { %v4245_v11 = vpop.f32.mrf.mxu1 }
0x1009   :  { %6430 = vmatmul.mubr.f32.vlgmr.msra.gmra.mxu1 %v4245_v11 }
0x100a   :  { %v6396_v58 = vpop.f32.mrf.mxu1 }
0x10c9   :  { %v4336_v7 = vpop.f32.mrf.mxu1 }
0x10ca   :  { %v4337_v23 = vadd.f32 %v4336_v7, %v4269_v28 }
0x10cb   :  { %v6431_v20 = vpop.f32.mrf.mxu1 }
0x10cc   :  { %4340 = vst [vmem:[#allocation16] sm:$0xf] %v4337_v23 }
0x10cd   :  { %6643 = shalt.err (!%p6640_p11)
}
0x10ce   :  { %4350 = dma.vmem_to_hbm [thread:$0]  %s4348_s2, 64, %s8336_s13, [#allocation4]  }
0x10cf   :  { %6662 = dma.done.wait [#allocation4], 64  }
0x10d0   :  { %6663 = vsyncadd [#allocation4], 4294967232 }
0x10d1   :  { %4354 = vsyncpa [#allocation3], 1 }
0x10d2   :  { %4355 = vsyncpa [#allocation8], 1 }
0x10d3   :  { %4356 = vsyncpa [#allocation11], 1 }
0x10d4   :  { %4357 = vsyncpa [#allocation14], 1 }
0x10d5   :  { %4358 = vsyncpa [#allocation4], 1 }
0x10d6   :  { %4359 = vsyncpa [#allocation5], 1 }

</bundles_post_ra>
